<compile_context>
chip_gen: v5e
topology: v5e:2x2
jax: 0.10.0
libtpu: 0.0.40
codegen_flags: <defaults>
</compile_context>

<pallas_src>
import functools

import jax
import jax.numpy as jnp
from jax import lax
from jax.experimental import pallas as pl
from jax.experimental.pallas import tpu as pltpu


def _pick_tile(dim, cap, align):
    """Largest tile <= cap that divides `dim` and is a multiple of `align`;
    falls back to the full dim (a full-extent block is always legal)."""
    if dim <= cap:
        return dim
    t = (cap // align) * align
    while t >= align:
        if dim % t == 0:
            return t
        t -= align
    return dim


# ----------------------------------------------------------------------------
# Tiled linear kernels (qkv projection: no bias; output projection: bias)
# ----------------------------------------------------------------------------
def _matmul_kernel(x_ref, w_ref, o_ref, acc_ref):
    @pl.when(pl.program_id(2) == 0)
    def _():
        acc_ref[...] = jnp.zeros_like(acc_ref)

    acc_ref[...] += jnp.dot(x_ref[...], w_ref[...],
                            preferred_element_type=jnp.float32)

    @pl.when(pl.program_id(2) == pl.num_programs(2) - 1)
    def _():
        o_ref[...] = acc_ref[...].astype(o_ref.dtype)


def _matmul_bias_kernel(x_ref, w_ref, b_ref, o_ref, acc_ref):
    @pl.when(pl.program_id(2) == 0)
    def _():
        acc_ref[...] = jnp.zeros_like(acc_ref)

    acc_ref[...] += jnp.dot(x_ref[...], w_ref[...],
                            preferred_element_type=jnp.float32)

    @pl.when(pl.program_id(2) == pl.num_programs(2) - 1)
    def _():
        o_ref[...] = (acc_ref[...]
                      + b_ref[...].astype(jnp.float32)).astype(o_ref.dtype)


def pallas_linear(x2d, w, b=None, *, tm_cap=512, tn_cap=512, tk_cap=512):
    M, K = x2d.shape
    K2, n_out = w.shape
    assert K == K2
    tm = _pick_tile(M, tm_cap, 8)
    tn = _pick_tile(n_out, tn_cap, 128)
    tk = _pick_tile(K, tk_cap, 128)
    grid = (M // tm, n_out // tn, K // tk)

    x_spec = pl.BlockSpec((tm, tk), lambda i, j, k: (i, k))
    w_spec = pl.BlockSpec((tk, tn), lambda i, j, k: (k, j))
    o_spec = pl.BlockSpec((tm, tn), lambda i, j, k: (i, j))

    itemsize = x2d.dtype.itemsize
    cost = pl.CostEstimate(
        flops=2 * M * K * n_out,
        transcendentals=0,
        bytes_accessed=(M * K + K * n_out + M * n_out) * itemsize)
    cp = pltpu.CompilerParams(
        dimension_semantics=("parallel", "parallel", "arbitrary"))
    scratch = [pltpu.VMEM((tm, tn), jnp.float32)]

    if b is None:
        return pl.pallas_call(
            _matmul_kernel,
            out_shape=jax.ShapeDtypeStruct((M, n_out), x2d.dtype),
            grid_spec=pltpu.PrefetchScalarGridSpec(
                num_scalar_prefetch=0, grid=grid,
                in_specs=[x_spec, w_spec],
                out_specs=o_spec,
                scratch_shapes=scratch),
            compiler_params=cp,
            cost_estimate=cost,
        )(x2d, w)

    b2d = b.reshape(1, n_out)
    b_spec = pl.BlockSpec((1, tn), lambda i, j, k: (0, j))
    return pl.pallas_call(
        _matmul_bias_kernel,
        out_shape=jax.ShapeDtypeStruct((M, n_out), x2d.dtype),
        grid_spec=pltpu.PrefetchScalarGridSpec(
            num_scalar_prefetch=0, grid=grid,
            in_specs=[x_spec, w_spec, b_spec],
            out_specs=o_spec,
            scratch_shapes=scratch),
        compiler_params=cp,
        cost_estimate=cost,
    )(x2d, w, b2d)


# ----------------------------------------------------------------------------
# Flash-style attention reading the packed qkv buffer directly
# ----------------------------------------------------------------------------
def _flash_attn_kernel(q_ref, k_ref, v_ref, o_ref, m_sc, l_sc, acc_sc, *,
                       scale, num_heads):
    # q_ref: (1, tq, H*Dh), k_ref/v_ref: (1, tkv, H*Dh), o_ref: (1, tq, H*Dh)
    kv_idx = pl.program_id(2)
    hd = q_ref.shape[-1] // num_heads

    @pl.when(kv_idx == 0)
    def _():
        m_sc[...] = jnp.full_like(m_sc, -jnp.inf)
        l_sc[...] = jnp.zeros_like(l_sc)
        acc_sc[...] = jnp.zeros_like(acc_sc)

    # Matmul operands stay in the input dtype (bf16 at scale); accumulation in
    # f32 via preferred_element_type. Softmax math stays in f32.
    q = q_ref[0] * jnp.asarray(scale, q_ref.dtype)   # (tq, H*Dh)
    k = k_ref[0]                                     # (tkv, H*Dh)
    v = v_ref[0]                                     # (tkv, H*Dh)

    for h in range(num_heads):                       # static, unrolled
        sl = slice(h * hd, (h + 1) * hd)
        qh = q[:, sl]                                # (tq, Dh)
        kh = k[:, sl]                                # (tkv, Dh)
        vh = v[:, sl]                                # (tkv, Dh)

        # (tq, tkv): contract on Dh -- no explicit k transpose.
        s = lax.dot_general(qh, kh, (((1,), (1,)), ((), ())),
                            preferred_element_type=jnp.float32)

        m_prev = m_sc[h]                             # (tq, 1)
        m_new = jnp.maximum(m_prev, jnp.max(s, axis=-1, keepdims=True))
        alpha = jnp.exp(m_prev - m_new)
        p = jnp.exp(s - m_new)                       # (tq, tkv) f32
        l_sc[h] = alpha * l_sc[h] + jnp.sum(p, axis=-1, keepdims=True)
        acc_sc[h] = alpha * acc_sc[h] + jnp.dot(
            p.astype(vh.dtype), vh, preferred_element_type=jnp.float32)
        m_sc[h] = m_new

    @pl.when(kv_idx == pl.num_programs(2) - 1)
    def _():
        outs = []
        for h in range(num_heads):
            inv_l = pl.reciprocal(l_sc[h], approx=True)   # EUP, ~free
            outs.append(acc_sc[h] * inv_l)                # (tq, Dh)
        # Single lane-dense (tq, H*Dh) store -> output already in (B,N,H*Dh).
        o_ref[0] = jnp.concatenate(outs, axis=-1).astype(o_ref.dtype)


def pallas_attention_from_qkv(qkv, num_heads, scale, *, tq_cap=512,
                              tkv_cap=512):
    B, N, three_ahd = qkv.shape
    assert three_ahd % 3 == 0
    ahd = three_ahd // 3
    hd = ahd // num_heads
    assert ahd % 128 == 0, "all_head_dim must be a multiple of 128 (lane dim)"

    tq = _pick_tile(N, tq_cap, 8)
    tkv = _pick_tile(N, tkv_cap, 8)
    grid = (B, N // tq, N // tkv)        # kv axis innermost (reduction)

    # q / k / v are the 0th / 1st / 2nd (ahd)-wide blocks of the packed buffer.
    q_spec = pl.BlockSpec((1, tq, ahd), lambda b, qi, ki: (b, qi, 0))
    k_spec = pl.BlockSpec((1, tkv, ahd), lambda b, qi, ki: (b, ki, 1))
    v_spec = pl.BlockSpec((1, tkv, ahd), lambda b, qi, ki: (b, ki, 2))
    o_spec = pl.BlockSpec((1, tq, ahd), lambda b, qi, ki: (b, qi, 0))

    itemsize = qkv.dtype.itemsize
    cost = pl.CostEstimate(
        flops=4 * B * num_heads * N * N * hd,
        transcendentals=B * num_heads * N * N,
        bytes_accessed=4 * B * N * ahd * itemsize)

    return pl.pallas_call(
        functools.partial(_flash_attn_kernel, scale=scale,
                          num_heads=num_heads),
        out_shape=jax.ShapeDtypeStruct((B, N, ahd), qkv.dtype),
        grid_spec=pltpu.PrefetchScalarGridSpec(
            num_scalar_prefetch=0,
            grid=grid,
            in_specs=[q_spec, k_spec, v_spec],
            out_specs=o_spec,
            scratch_shapes=[
                pltpu.VMEM((num_heads, tq, 1), jnp.float32),    # running max
                pltpu.VMEM((num_heads, tq, 1), jnp.float32),    # running sum
                pltpu.VMEM((num_heads, tq, hd), jnp.float32),   # accumulator
            ]),
        compiler_params=pltpu.CompilerParams(
            dimension_semantics=("parallel", "parallel", "arbitrary")),
        cost_estimate=cost,
    )(qkv, qkv, qkv)


# ----------------------------------------------------------------------------
# Module forward
# ----------------------------------------------------------------------------
def attention_forward(x, params, num_heads):
    B, N, C = x.shape
    w_qkv = params["qkv_w"]          # (C, 3*all_head_dim)   == qkv.weight.T
    w_proj = params["proj_w"]        # (all_head_dim, C)     == proj.weight.T
    b_proj = params["proj_b"]        # (C,)
    all_head_dim = w_qkv.shape[1] // 3
    head_dim = all_head_dim // num_heads
    scale = head_dim ** (-0.5)

    # qkv = F.linear(x, qkv.weight, bias=None) -- bias-free kernel variant.
    qkv = pallas_linear(x.reshape(B * N, C), w_qkv)           # (B*N, 3*ahd)
    qkv = qkv.reshape(B, N, 3 * all_head_dim)                 # free reshape

    # Flash attention directly on the packed buffer; output is (B, N, H*Dh),
    # so the PyTorch transpose(1,2).reshape(B,N,-1) is a no-op here.
    ctx = pallas_attention_from_qkv(qkv, num_heads, scale)

    # proj (with bias); proj_drop is identity.
    y = pallas_linear(ctx.reshape(B * N, all_head_dim), w_proj, b_proj)
    return y.reshape(B, N, C)


# TODO(synk): window_size / relative_position_bias, rel_pos_bias arg,
# gumbel_softmax and sinkformer branches are disabled by the default
# constructor args and are not implemented here.


if __name__ == "__main__":
    B, N, C, H = 2, 64, 128, 4          # head_dim = 32, all_head_dim = 128
    key = jax.random.PRNGKey(0)
    kx, kq, kp, kb = jax.random.split(key, 4)

    x = jax.random.normal(kx, (B, N, C), dtype=jnp.float32)
    params = {
        # stored pre-transposed relative to PyTorch nn.Linear.weight
        "qkv_w": 0.02 * jax.random.normal(kq, (C, 3 * C), dtype=jnp.float32),
        "proj_w": 0.02 * jax.random.normal(kp, (C, C), dtype=jnp.float32),
        "proj_b": 0.02 * jax.random.normal(kb, (C,), dtype=jnp.float32),
    }

    fwd = jax.jit(functools.partial(attention_forward, num_heads=H))
    y = fwd(x, params)
    jax.block_until_ready(y)

    # pure-JAX reference check
    head_dim = C // H
    qkv_r = (x.reshape(B * N, C) @ params["qkv_w"]).reshape(B, N, 3, H, head_dim)
    qkv_r = qkv_r.transpose(2, 0, 3, 1, 4)
    q_r = qkv_r[0] * head_dim ** -0.5
    k_r, v_r = qkv_r[1], qkv_r[2]
    attn_r = jax.nn.softmax(jnp.einsum("bhnd,bhmd->bhnm", q_r, k_r), axis=-1)
    o_r = jnp.einsum("bhnm,bhmd->bhnd", attn_r, v_r).transpose(0, 2, 1, 3)
    y_ref = (o_r.reshape(B * N, C) @ params["proj_w"] + params["proj_b"])
    y_ref = y_ref.reshape(B, N, C)

    err = float(jnp.max(jnp.abs(y - y_ref)))
    assert jnp.allclose(y, y_ref, atol=5e-3, rtol=5e-2), f"mismatch: {err}"
    print("KERNEL_OK")
</pallas_src>

<mosaic_0001>
module attributes {stable_mosaic.version = 11 : i64} {
  func.func @_matmul_bias_kernel(%arg0: i32, %arg1: i32, %arg2: i32, %arg3: memref<128x128xf32, #tpu.memory_space<vmem>>, %arg4: memref<128x128xf32, #tpu.memory_space<vmem>>, %arg5: memref<1x128xf32, #tpu.memory_space<vmem>>, %arg6: memref<128x128xf32, #tpu.memory_space<vmem>>, %arg7: memref<128x128xf32, #tpu.memory_space<vmem>>) attributes {dimension_semantics = [#tpu.dimension_semantics<parallel>, #tpu.dimension_semantics<parallel>, #tpu.dimension_semantics<arbitrary>], iteration_bounds = array<i64: 1, 1, 1>, scalar_prefetch = 0 : i64, scratch_operands = 1 : i64, tpu.core_type = #tpu.core_type<tc>, window_params = [{transform_indices = @transform_0, window_bounds = array<i64: 128, 128>}, {transform_indices = @transform_1, window_bounds = array<i64: 128, 128>}, {transform_indices = @transform_2, window_bounds = array<i64: 1, 128>}, {transform_indices = @transform_3, window_bounds = array<i64: 128, 128>}]} {
    %c0_i32 = arith.constant 0 : i32
    %0 = arith.cmpi eq, %arg2, %c0_i32 : i32
    %1 = arith.extui %0 : i1 to i32
    %c0_i32_0 = arith.constant 0 : i32
    %2 = arith.cmpi ne, %1, %c0_i32_0 : i32
    scf.if %2 {
      %cst_10 = arith.constant 0.000000e+00 : f32
      %12 = vector.broadcast %cst_10 : f32 to vector<128x128xf32>
      %c0_11 = arith.constant 0 : index
      %c0_12 = arith.constant 0 : index
      %13 = vector.load %arg7[%c0_11, %c0_12] : memref<128x128xf32, #tpu.memory_space<vmem>>, vector<128x128xf32>
      tpu.vector_store %arg7[%c0_11, %c0_12], %12 {strides = array<i32>} : memref<128x128xf32, #tpu.memory_space<vmem>>, vector<128x128xf32>,
    } else {
    }
    %c0 = arith.constant 0 : index
    %c0_1 = arith.constant 0 : index
    %3 = vector.load %arg7[%c0, %c0_1] : memref<128x128xf32, #tpu.memory_space<vmem>>, vector<128x128xf32>
    %c0_2 = arith.constant 0 : index
    %c0_3 = arith.constant 0 : index
    %4 = vector.load %arg3[%c0_2, %c0_3] : memref<128x128xf32, #tpu.memory_space<vmem>>, vector<128x128xf32>
    %c0_4 = arith.constant 0 : index
    %c0_5 = arith.constant 0 : index
    %5 = vector.load %arg4[%c0_4, %c0_5] : memref<128x128xf32, #tpu.memory_space<vmem>>, vector<128x128xf32>
    %cst = arith.constant dense<0.000000e+00> : vector<128x128xf32>
    %6 = tpu.matmul %4, %5, %cst {dimension_numbers = #tpu.dot_dimension_numbers<[1], [0], [0], [1], [0, 0, 1, 1], [], []>} : vector<128x128xf32>, vector<128x128xf32>, vector<128x128xf32> -> vector<128x128xf32>
    %7 = arith.addf %3, %6 : vector<128x128xf32>
    %c0_6 = arith.constant 0 : index
    %c0_7 = arith.constant 0 : index
    %8 = vector.load %arg7[%c0_6, %c0_7] : memref<128x128xf32, #tpu.memory_space<vmem>>, vector<128x128xf32>
    tpu.vector_store %arg7[%c0_6, %c0_7], %7 {strides = array<i32>} : memref<128x128xf32, #tpu.memory_space<vmem>>, vector<128x128xf32>,
    %c0_i32_8 = arith.constant 0 : i32
    %9 = arith.cmpi eq, %arg2, %c0_i32_8 : i32
    %10 = arith.extui %9 : i1 to i32
    %c0_i32_9 = arith.constant 0 : i32
    %11 = arith.cmpi ne, %10, %c0_i32_9 : i32
    scf.if %11 {
      %c0_10 = arith.constant 0 : index
      %c0_11 = arith.constant 0 : index
      %12 = vector.load %arg7[%c0_10, %c0_11] : memref<128x128xf32, #tpu.memory_space<vmem>>, vector<128x128xf32>
      %c0_12 = arith.constant 0 : index
      %c0_13 = arith.constant 0 : index
      %13 = vector.load %arg5[%c0_12, %c0_13] : memref<1x128xf32, #tpu.memory_space<vmem>>, vector<1x128xf32>
      %14 = vector.broadcast %13 : vector<1x128xf32> to vector<128x128xf32>
      %15 = arith.addf %12, %14 : vector<128x128xf32>
      %c0_14 = arith.constant 0 : index
      %c0_15 = arith.constant 0 : index
      %16 = vector.load %arg6[%c0_14, %c0_15] : memref<128x128xf32, #tpu.memory_space<vmem>>, vector<128x128xf32>
      tpu.vector_store %arg6[%c0_14, %c0_15], %15 {strides = array<i32>} : memref<128x128xf32, #tpu.memory_space<vmem>>, vector<128x128xf32>,
    } else {
    }
    return
  }
  func.func @transform_0(%arg0: i32, %arg1: i32, %arg2: i32) -> (i32, i32) {
    %c0_i32 = arith.constant 0 : i32
    return %arg0, %arg2 : i32, i32
  }
  func.func @transform_1(%arg0: i32, %arg1: i32, %arg2: i32) -> (i32, i32) {
    %c0_i32 = arith.constant 0 : i32
    return %arg2, %arg1 : i32, i32
  }
  func.func @transform_2(%arg0: i32, %arg1: i32, %arg2: i32) -> (i32, i32) {
    %c0_i32 = arith.constant 0 : i32
    %c0_i32_0 = arith.constant 0 : i32
    return %c0_i32, %arg1 : i32, i32
  }
  func.func @transform_3(%arg0: i32, %arg1: i32, %arg2: i32) -> (i32, i32) {
    %c0_i32 = arith.constant 0 : i32
    return %arg0, %arg1 : i32, i32
  }
}

module attributes {stable_mosaic.version = 11 : i64} {
  func.func @_matmul_kernel(%arg0: i32, %arg1: i32, %arg2: i32, %arg3: memref<128x128xf32, #tpu.memory_space<vmem>>, %arg4: memref<128x384xf32, #tpu.memory_space<vmem>>, %arg5: memref<128x384xf32, #tpu.memory_space<vmem>>, %arg6: memref<128x384xf32, #tpu.memory_space<vmem>>) attributes {dimension_semantics = [#tpu.dimension_semantics<parallel>, #tpu.dimension_semantics<parallel>, #tpu.dimension_semantics<arbitrary>], iteration_bounds = array<i64: 1, 1, 1>, scalar_prefetch = 0 : i64, scratch_operands = 1 : i64, tpu.core_type = #tpu.core_type<tc>, window_params = [{transform_indices = @transform_0, window_bounds = array<i64: 128, 128>}, {transform_indices = @transform_1, window_bounds = array<i64: 128, 384>}, {transform_indices = @transform_2, window_bounds = array<i64: 128, 384>}]} {
    %c0_i32 = arith.constant 0 : i32
    %0 = arith.cmpi eq, %arg2, %c0_i32 : i32
    %1 = arith.extui %0 : i1 to i32
    %c0_i32_0 = arith.constant 0 : i32
    %2 = arith.cmpi ne, %1, %c0_i32_0 : i32
    scf.if %2 {
      %cst_10 = arith.constant 0.000000e+00 : f32
      %12 = vector.broadcast %cst_10 : f32 to vector<128x384xf32>
      %c0_11 = arith.constant 0 : index
      %c0_12 = arith.constant 0 : index
      %13 = vector.load %arg6[%c0_11, %c0_12] : memref<128x384xf32, #tpu.memory_space<vmem>>, vector<128x384xf32>
      tpu.vector_store %arg6[%c0_11, %c0_12], %12 {strides = array<i32>} : memref<128x384xf32, #tpu.memory_space<vmem>>, vector<128x384xf32>,
    } else {
    }
    %c0 = arith.constant 0 : index
    %c0_1 = arith.constant 0 : index
    %3 = vector.load %arg6[%c0, %c0_1] : memref<128x384xf32, #tpu.memory_space<vmem>>, vector<128x384xf32>
    %c0_2 = arith.constant 0 : index
    %c0_3 = arith.constant 0 : index
    %4 = vector.load %arg3[%c0_2, %c0_3] : memref<128x128xf32, #tpu.memory_space<vmem>>, vector<128x128xf32>
    %c0_4 = arith.constant 0 : index
    %c0_5 = arith.constant 0 : index
    %5 = vector.load %arg4[%c0_4, %c0_5] : memref<128x384xf32, #tpu.memory_space<vmem>>, vector<128x384xf32>
    %cst = arith.constant dense<0.000000e+00> : vector<128x384xf32>
    %6 = tpu.matmul %4, %5, %cst {dimension_numbers = #tpu.dot_dimension_numbers<[1], [0], [0], [1], [0, 0, 1, 1], [], []>} : vector<128x128xf32>, vector<128x384xf32>, vector<128x384xf32> -> vector<128x384xf32>
    %7 = arith.addf %3, %6 : vector<128x384xf32>
    %c0_6 = arith.constant 0 : index
    %c0_7 = arith.constant 0 : index
    %8 = vector.load %arg6[%c0_6, %c0_7] : memref<128x384xf32, #tpu.memory_space<vmem>>, vector<128x384xf32>
    tpu.vector_store %arg6[%c0_6, %c0_7], %7 {strides = array<i32>} : memref<128x384xf32, #tpu.memory_space<vmem>>, vector<128x384xf32>,
    %c0_i32_8 = arith.constant 0 : i32
    %9 = arith.cmpi eq, %arg2, %c0_i32_8 : i32
    %10 = arith.extui %9 : i1 to i32
    %c0_i32_9 = arith.constant 0 : i32
    %11 = arith.cmpi ne, %10, %c0_i32_9 : i32
    scf.if %11 {
      %c0_10 = arith.constant 0 : index
      %c0_11 = arith.constant 0 : index
      %12 = vector.load %arg6[%c0_10, %c0_11] : memref<128x384xf32, #tpu.memory_space<vmem>>, vector<128x384xf32>
      %c0_12 = arith.constant 0 : index
      %c0_13 = arith.constant 0 : index
      %13 = vector.load %arg5[%c0_12, %c0_13] : memref<128x384xf32, #tpu.memory_space<vmem>>, vector<128x384xf32>
      tpu.vector_store %arg5[%c0_12, %c0_13], %12 {strides = array<i32>} : memref<128x384xf32, #tpu.memory_space<vmem>>, vector<128x384xf32>,
    } else {
    }
    return
  }
  func.func @transform_0(%arg0: i32, %arg1: i32, %arg2: i32) -> (i32, i32) {
    %c0_i32 = arith.constant 0 : i32
    return %arg0, %arg2 : i32, i32
  }
  func.func @transform_1(%arg0: i32, %arg1: i32, %arg2: i32) -> (i32, i32) {
    %c0_i32 = arith.constant 0 : i32
    return %arg2, %arg1 : i32, i32
  }
  func.func @transform_2(%arg0: i32, %arg1: i32, %arg2: i32) -> (i32, i32) {
    %c0_i32 = arith.constant 0 : i32
    return %arg0, %arg1 : i32, i32
  }
}

module attributes {stable_mosaic.version = 11 : i64} {
  func.func @_flash_attn_kernel(%arg0: i32, %arg1: i32, %arg2: i32, %arg3: memref<1x64x128xf32, #tpu.memory_space<vmem>>, %arg4: memref<1x64x128xf32, #tpu.memory_space<vmem>>, %arg5: memref<1x64x128xf32, #tpu.memory_space<vmem>>, %arg6: memref<1x64x128xf32, #tpu.memory_space<vmem>>, %arg7: memref<4x64x1xf32, #tpu.memory_space<vmem>>, %arg8: memref<4x64x1xf32, #tpu.memory_space<vmem>>, %arg9: memref<4x64x32xf32, #tpu.memory_space<vmem>>) attributes {dimension_semantics = [#tpu.dimension_semantics<parallel>, #tpu.dimension_semantics<parallel>, #tpu.dimension_semantics<arbitrary>], iteration_bounds = array<i64: 2, 1, 1>, scalar_prefetch = 0 : i64, scratch_operands = 3 : i64, tpu.core_type = #tpu.core_type<tc>, window_params = [{transform_indices = @transform_0, window_bounds = array<i64: 1, 64, 128>}, {transform_indices = @transform_1, window_bounds = array<i64: 1, 64, 128>}, {transform_indices = @transform_2, window_bounds = array<i64: 1, 64, 128>}, {transform_indices = @transform_3, window_bounds = array<i64: 1, 64, 128>}]} {
    %c0_i32 = arith.constant 0 : i32
    %0 = arith.cmpi eq, %arg2, %c0_i32 : i32
    %1 = arith.extui %0 : i1 to i32
    %c0_i32_0 = arith.constant 0 : i32
    %2 = arith.cmpi ne, %1, %c0_i32_0 : i32
    scf.if %2 {
      %cst_96 = arith.constant 0xFF800000 : f32
      %154 = vector.broadcast %cst_96 : f32 to vector<4x64x1xf32>
      %c0_97 = arith.constant 0 : index
      %c0_98 = arith.constant 0 : index
      %c0_99 = arith.constant 0 : index
      %155 = vector.load %arg7[%c0_97, %c0_98, %c0_99] : memref<4x64x1xf32, #tpu.memory_space<vmem>>, vector<4x64x1xf32>
      tpu.vector_store %arg7[%c0_97, %c0_98, %c0_99], %154 {strides = array<i32>} : memref<4x64x1xf32, #tpu.memory_space<vmem>>, vector<4x64x1xf32>,
      %cst_100 = arith.constant 0.000000e+00 : f32
      %156 = vector.broadcast %cst_100 : f32 to vector<4x64x1xf32>
      %c0_101 = arith.constant 0 : index
      %c0_102 = arith.constant 0 : index
      %c0_103 = arith.constant 0 : index
      %157 = vector.load %arg8[%c0_101, %c0_102, %c0_103] : memref<4x64x1xf32, #tpu.memory_space<vmem>>, vector<4x64x1xf32>
      tpu.vector_store %arg8[%c0_101, %c0_102, %c0_103], %156 {strides = array<i32>} : memref<4x64x1xf32, #tpu.memory_space<vmem>>, vector<4x64x1xf32>,
      %cst_104 = arith.constant 0.000000e+00 : f32
      %158 = vector.broadcast %cst_104 : f32 to vector<4x64x32xf32>
      %c0_105 = arith.constant 0 : index
      %c0_106 = arith.constant 0 : index
      %c0_107 = arith.constant 0 : index
      %159 = vector.load %arg9[%c0_105, %c0_106, %c0_107] : memref<4x64x32xf32, #tpu.memory_space<vmem>>, vector<4x64x32xf32>
      tpu.vector_store %arg9[%c0_105, %c0_106, %c0_107], %158 {strides = array<i32>} : memref<4x64x32xf32, #tpu.memory_space<vmem>>, vector<4x64x32xf32>,
    } else {
    }
    %c0 = arith.constant 0 : index
    %c0_1 = arith.constant 0 : index
    %c0_2 = arith.constant 0 : index
    %3 = vector.load %arg3[%c0, %c0_1, %c0_2] : memref<1x64x128xf32, #tpu.memory_space<vmem>>, vector<1x64x128xf32>
    %4 = vector.shape_cast %3 : vector<1x64x128xf32> to vector<64x128xf32>
    %cst = arith.constant 0.176776692 : f32
    %5 = vector.broadcast %cst : f32 to vector<64x128xf32>
    %6 = arith.mulf %4, %5 : vector<64x128xf32>
    %c0_3 = arith.constant 0 : index
    %c0_4 = arith.constant 0 : index
    %c0_5 = arith.constant 0 : index
    %7 = vector.load %arg4[%c0_3, %c0_4, %c0_5] : memref<1x64x128xf32, #tpu.memory_space<vmem>>, vector<1x64x128xf32>
    %8 = vector.shape_cast %7 : vector<1x64x128xf32> to vector<64x128xf32>
    %c0_6 = arith.constant 0 : index
    %c0_7 = arith.constant 0 : index
    %c0_8 = arith.constant 0 : index
    %9 = vector.load %arg5[%c0_6, %c0_7, %c0_8] : memref<1x64x128xf32, #tpu.memory_space<vmem>>, vector<1x64x128xf32>
    %10 = vector.shape_cast %9 : vector<1x64x128xf32> to vector<64x128xf32>
    %11 = vector.extract_strided_slice %6 {offsets = [0, 0], sizes = [64, 32], strides = [1, 1]} : vector<64x128xf32> to vector<64x32xf32>
    %12 = vector.extract_strided_slice %8 {offsets = [0, 0], sizes = [64, 32], strides = [1, 1]} : vector<64x128xf32> to vector<64x32xf32>
    %13 = vector.extract_strided_slice %10 {offsets = [0, 0], sizes = [64, 32], strides = [1, 1]} : vector<64x128xf32> to vector<64x32xf32>
    %cst_9 = arith.constant dense<0.000000e+00> : vector<64x64xf32>
    %14 = tpu.matmul %11, %12, %cst_9 {dimension_numbers = #tpu.dot_dimension_numbers<[1], [1], [0], [0], [0, 0, 1, 0], [], []>} : vector<64x32xf32>, vector<64x32xf32>, vector<64x64xf32> -> vector<64x64xf32>
    %c0_10 = arith.constant 0 : index
    %c0_11 = arith.constant 0 : index
    %c0_12 = arith.constant 0 : index
    %15 = vector.load %arg7[%c0_10, %c0_11, %c0_12] : memref<4x64x1xf32, #tpu.memory_space<vmem>>, vector<1x64x1xf32>
    %16 = vector.shape_cast %15 : vector<1x64x1xf32> to vector<64x1xf32>
    %cst_13 = arith.constant dense<0xFF800000> : vector<64xf32>
    %17 = vector.multi_reduction <maximumf>, %14, %cst_13 [1] : vector<64x64xf32> to vector<64xf32>
    %18 = vector.shape_cast %17 : vector<64xf32> to vector<64x1xf32>
    %19 = arith.maximumf %16, %18 : vector<64x1xf32>
    %20 = arith.subf %16, %19 : vector<64x1xf32>
    %21 = math.exp %20 : vector<64x1xf32>
    %22 = vector.broadcast %19 : vector<64x1xf32> to vector<64x64xf32>
    %23 = arith.subf %14, %22 : vector<64x64xf32>
    %24 = math.exp %23 : vector<64x64xf32>
    %c0_14 = arith.constant 0 : index
    %c0_15 = arith.constant 0 : index
    %c0_16 = arith.constant 0 : index
    %25 = vector.load %arg8[%c0_14, %c0_15, %c0_16] : memref<4x64x1xf32, #tpu.memory_space<vmem>>, vector<1x64x1xf32>
    %26 = vector.shape_cast %25 : vector<1x64x1xf32> to vector<64x1xf32>
    %27 = arith.mulf %21, %26 : vector<64x1xf32>
    %cst_17 = arith.constant dense<0.000000e+00> : vector<64xf32>
    %28 = vector.multi_reduction <add>, %24, %cst_17 [1] : vector<64x64xf32> to vector<64xf32>
    %29 = vector.shape_cast %28 : vector<64xf32> to vector<64x1xf32>
    %30 = arith.addf %27, %29 : vector<64x1xf32>
    %c0_18 = arith.constant 0 : index
    %c0_19 = arith.constant 0 : index
    %c0_20 = arith.constant 0 : index
    %31 = vector.load %arg8[%c0_18, %c0_19, %c0_20] : memref<4x64x1xf32, #tpu.memory_space<vmem>>, vector<1x64x1xf32>
    %32 = vector.shape_cast %31 : vector<1x64x1xf32> to vector<64x1xf32>
    %33 = vector.shape_cast %30 : vector<64x1xf32> to vector<1x64x1xf32>
    tpu.vector_store %arg8[%c0_18, %c0_19, %c0_20], %33 {strides = array<i32>} : memref<4x64x1xf32, #tpu.memory_space<vmem>>, vector<1x64x1xf32>,
    %c0_21 = arith.constant 0 : index
    %c0_22 = arith.constant 0 : index
    %c0_23 = arith.constant 0 : index
    %34 = vector.load %arg9[%c0_21, %c0_22, %c0_23] : memref<4x64x32xf32, #tpu.memory_space<vmem>>, vector<1x64x32xf32>
    %35 = vector.shape_cast %34 : vector<1x64x32xf32> to vector<64x32xf32>
    %36 = vector.broadcast %21 : vector<64x1xf32> to vector<64x32xf32>
    %37 = arith.mulf %36, %35 : vector<64x32xf32>
    %cst_24 = arith.constant dense<0.000000e+00> : vector<64x32xf32>
    %38 = tpu.matmul %24, %13, %cst_24 {dimension_numbers = #tpu.dot_dimension_numbers<[1], [0], [0], [1], [0, 0, 1, 1], [], []>} : vector<64x64xf32>, vector<64x32xf32>, vector<64x32xf32> -> vector<64x32xf32>
    %39 = arith.addf %37, %38 : vector<64x32xf32>
    %c0_25 = arith.constant 0 : index
    %c0_26 = arith.constant 0 : index
    %c0_27 = arith.constant 0 : index
    %40 = vector.load %arg9[%c0_25, %c0_26, %c0_27] : memref<4x64x32xf32, #tpu.memory_space<vmem>>, vector<1x64x32xf32>
    %41 = vector.shape_cast %40 : vector<1x64x32xf32> to vector<64x32xf32>
    %42 = vector.shape_cast %39 : vector<64x32xf32> to vector<1x64x32xf32>
    tpu.vector_store %arg9[%c0_25, %c0_26, %c0_27], %42 {strides = array<i32>} : memref<4x64x32xf32, #tpu.memory_space<vmem>>, vector<1x64x32xf32>,
    %c0_28 = arith.constant 0 : index
    %c0_29 = arith.constant 0 : index
    %c0_30 = arith.constant 0 : index
    %43 = vector.load %arg7[%c0_28, %c0_29, %c0_30] : memref<4x64x1xf32, #tpu.memory_space<vmem>>, vector<1x64x1xf32>
    %44 = vector.shape_cast %43 : vector<1x64x1xf32> to vector<64x1xf32>
    %45 = vector.shape_cast %19 : vector<64x1xf32> to vector<1x64x1xf32>
    tpu.vector_store %arg7[%c0_28, %c0_29, %c0_30], %45 {strides = array<i32>} : memref<4x64x1xf32, #tpu.memory_space<vmem>>, vector<1x64x1xf32>,
    %46 = vector.extract_strided_slice %6 {offsets = [0, 32], sizes = [64, 32], strides = [1, 1]} : vector<64x128xf32> to vector<64x32xf32>
    %47 = vector.extract_strided_slice %8 {offsets = [0, 32], sizes = [64, 32], strides = [1, 1]} : vector<64x128xf32> to vector<64x32xf32>
    %48 = vector.extract_strided_slice %10 {offsets = [0, 32], sizes = [64, 32], strides = [1, 1]} : vector<64x128xf32> to vector<64x32xf32>
    %cst_31 = arith.constant dense<0.000000e+00> : vector<64x64xf32>
    %49 = tpu.matmul %46, %47, %cst_31 {dimension_numbers = #tpu.dot_dimension_numbers<[1], [1], [0], [0], [0, 0, 1, 0], [], []>} : vector<64x32xf32>, vector<64x32xf32>, vector<64x64xf32> -> vector<64x64xf32>
    %c1 = arith.constant 1 : index
    %c0_32 = arith.constant 0 : index
    %c0_33 = arith.constant 0 : index
    %50 = vector.load %arg7[%c1, %c0_32, %c0_33] : memref<4x64x1xf32, #tpu.memory_space<vmem>>, vector<1x64x1xf32>
    %51 = vector.shape_cast %50 : vector<1x64x1xf32> to vector<64x1xf32>
    %cst_34 = arith.constant dense<0xFF800000> : vector<64xf32>
    %52 = vector.multi_reduction <maximumf>, %49, %cst_34 [1] : vector<64x64xf32> to vector<64xf32>
    %53 = vector.shape_cast %52 : vector<64xf32> to vector<64x1xf32>
    %54 = arith.maximumf %51, %53 : vector<64x1xf32>
    %55 = arith.subf %51, %54 : vector<64x1xf32>
    %56 = math.exp %55 : vector<64x1xf32>
    %57 = vector.broadcast %54 : vector<64x1xf32> to vector<64x64xf32>
    %58 = arith.subf %49, %57 : vector<64x64xf32>
    %59 = math.exp %58 : vector<64x64xf32>
    %c1_35 = arith.constant 1 : index
    %c0_36 = arith.constant 0 : index
    %c0_37 = arith.constant 0 : index
    %60 = vector.load %arg8[%c1_35, %c0_36, %c0_37] : memref<4x64x1xf32, #tpu.memory_space<vmem>>, vector<1x64x1xf32>
    %61 = vector.shape_cast %60 : vector<1x64x1xf32> to vector<64x1xf32>
    %62 = arith.mulf %56, %61 : vector<64x1xf32>
    %cst_38 = arith.constant dense<0.000000e+00> : vector<64xf32>
    %63 = vector.multi_reduction <add>, %59, %cst_38 [1] : vector<64x64xf32> to vector<64xf32>
    %64 = vector.shape_cast %63 : vector<64xf32> to vector<64x1xf32>
    %65 = arith.addf %62, %64 : vector<64x1xf32>
    %c1_39 = arith.constant 1 : index
    %c0_40 = arith.constant 0 : index
    %c0_41 = arith.constant 0 : index
    %66 = vector.load %arg8[%c1_39, %c0_40, %c0_41] : memref<4x64x1xf32, #tpu.memory_space<vmem>>, vector<1x64x1xf32>
    %67 = vector.shape_cast %66 : vector<1x64x1xf32> to vector<64x1xf32>
    %68 = vector.shape_cast %65 : vector<64x1xf32> to vector<1x64x1xf32>
    tpu.vector_store %arg8[%c1_39, %c0_40, %c0_41], %68 {strides = array<i32>} : memref<4x64x1xf32, #tpu.memory_space<vmem>>, vector<1x64x1xf32>,
    %c1_42 = arith.constant 1 : index
    %c0_43 = arith.constant 0 : index
    %c0_44 = arith.constant 0 : index
    %69 = vector.load %arg9[%c1_42, %c0_43, %c0_44] : memref<4x64x32xf32, #tpu.memory_space<vmem>>, vector<1x64x32xf32>
    %70 = vector.shape_cast %69 : vector<1x64x32xf32> to vector<64x32xf32>
    %71 = vector.broadcast %56 : vector<64x1xf32> to vector<64x32xf32>
    %72 = arith.mulf %71, %70 : vector<64x32xf32>
    %cst_45 = arith.constant dense<0.000000e+00> : vector<64x32xf32>
    %73 = tpu.matmul %59, %48, %cst_45 {dimension_numbers = #tpu.dot_dimension_numbers<[1], [0], [0], [1], [0, 0, 1, 1], [], []>} : vector<64x64xf32>, vector<64x32xf32>, vector<64x32xf32> -> vector<64x32xf32>
    %74 = arith.addf %72, %73 : vector<64x32xf32>
    %c1_46 = arith.constant 1 : index
    %c0_47 = arith.constant 0 : index
    %c0_48 = arith.constant 0 : index
    %75 = vector.load %arg9[%c1_46, %c0_47, %c0_48] : memref<4x64x32xf32, #tpu.memory_space<vmem>>, vector<1x64x32xf32>
    %76 = vector.shape_cast %75 : vector<1x64x32xf32> to vector<64x32xf32>
    %77 = vector.shape_cast %74 : vector<64x32xf32> to vector<1x64x32xf32>
    tpu.vector_store %arg9[%c1_46, %c0_47, %c0_48], %77 {strides = array<i32>} : memref<4x64x32xf32, #tpu.memory_space<vmem>>, vector<1x64x32xf32>,
    %c1_49 = arith.constant 1 : index
    %c0_50 = arith.constant 0 : index
    %c0_51 = arith.constant 0 : index
    %78 = vector.load %arg7[%c1_49, %c0_50, %c0_51] : memref<4x64x1xf32, #tpu.memory_space<vmem>>, vector<1x64x1xf32>
    %79 = vector.shape_cast %78 : vector<1x64x1xf32> to vector<64x1xf32>
    %80 = vector.shape_cast %54 : vector<64x1xf32> to vector<1x64x1xf32>
    tpu.vector_store %arg7[%c1_49, %c0_50, %c0_51], %80 {strides = array<i32>} : memref<4x64x1xf32, #tpu.memory_space<vmem>>, vector<1x64x1xf32>,
    %81 = vector.extract_strided_slice %6 {offsets = [0, 64], sizes = [64, 32], strides = [1, 1]} : vector<64x128xf32> to vector<64x32xf32>
    %82 = vector.extract_strided_slice %8 {offsets = [0, 64], sizes = [64, 32], strides = [1, 1]} : vector<64x128xf32> to vector<64x32xf32>
    %83 = vector.extract_strided_slice %10 {offsets = [0, 64], sizes = [64, 32], strides = [1, 1]} : vector<64x128xf32> to vector<64x32xf32>
    %cst_52 = arith.constant dense<0.000000e+00> : vector<64x64xf32>
    %84 = tpu.matmul %81, %82, %cst_52 {dimension_numbers = #tpu.dot_dimension_numbers<[1], [1], [0], [0], [0, 0, 1, 0], [], []>} : vector<64x32xf32>, vector<64x32xf32>, vector<64x64xf32> -> vector<64x64xf32>
    %c2 = arith.constant 2 : index
    %c0_53 = arith.constant 0 : index
    %c0_54 = arith.constant 0 : index
    %85 = vector.load %arg7[%c2, %c0_53, %c0_54] : memref<4x64x1xf32, #tpu.memory_space<vmem>>, vector<1x64x1xf32>
    %86 = vector.shape_cast %85 : vector<1x64x1xf32> to vector<64x1xf32>
    %cst_55 = arith.constant dense<0xFF800000> : vector<64xf32>
    %87 = vector.multi_reduction <maximumf>, %84, %cst_55 [1] : vector<64x64xf32> to vector<64xf32>
    %88 = vector.shape_cast %87 : vector<64xf32> to vector<64x1xf32>
    %89 = arith.maximumf %86, %88 : vector<64x1xf32>
    %90 = arith.subf %86, %89 : vector<64x1xf32>
    %91 = math.exp %90 : vector<64x1xf32>
    %92 = vector.broadcast %89 : vector<64x1xf32> to vector<64x64xf32>
    %93 = arith.subf %84, %92 : vector<64x64xf32>
    %94 = math.exp %93 : vector<64x64xf32>
    %c2_56 = arith.constant 2 : index
    %c0_57 = arith.constant 0 : index
    %c0_58 = arith.constant 0 : index
    %95 = vector.load %arg8[%c2_56, %c0_57, %c0_58] : memref<4x64x1xf32, #tpu.memory_space<vmem>>, vector<1x64x1xf32>
    %96 = vector.shape_cast %95 : vector<1x64x1xf32> to vector<64x1xf32>
    %97 = arith.mulf %91, %96 : vector<64x1xf32>
    %cst_59 = arith.constant dense<0.000000e+00> : vector<64xf32>
    %98 = vector.multi_reduction <add>, %94, %cst_59 [1] : vector<64x64xf32> to vector<64xf32>
    %99 = vector.shape_cast %98 : vector<64xf32> to vector<64x1xf32>
    %100 = arith.addf %97, %99 : vector<64x1xf32>
    %c2_60 = arith.constant 2 : index
    %c0_61 = arith.constant 0 : index
    %c0_62 = arith.constant 0 : index
    %101 = vector.load %arg8[%c2_60, %c0_61, %c0_62] : memref<4x64x1xf32, #tpu.memory_space<vmem>>, vector<1x64x1xf32>
    %102 = vector.shape_cast %101 : vector<1x64x1xf32> to vector<64x1xf32>
    %103 = vector.shape_cast %100 : vector<64x1xf32> to vector<1x64x1xf32>
    tpu.vector_store %arg8[%c2_60, %c0_61, %c0_62], %103 {strides = array<i32>} : memref<4x64x1xf32, #tpu.memory_space<vmem>>, vector<1x64x1xf32>,
    %c2_63 = arith.constant 2 : index
    %c0_64 = arith.constant 0 : index
    %c0_65 = arith.constant 0 : index
    %104 = vector.load %arg9[%c2_63, %c0_64, %c0_65] : memref<4x64x32xf32, #tpu.memory_space<vmem>>, vector<1x64x32xf32>
    %105 = vector.shape_cast %104 : vector<1x64x32xf32> to vector<64x32xf32>
    %106 = vector.broadcast %91 : vector<64x1xf32> to vector<64x32xf32>
    %107 = arith.mulf %106, %105 : vector<64x32xf32>
    %cst_66 = arith.constant dense<0.000000e+00> : vector<64x32xf32>
    %108 = tpu.matmul %94, %83, %cst_66 {dimension_numbers = #tpu.dot_dimension_numbers<[1], [0], [0], [1], [0, 0, 1, 1], [], []>} : vector<64x64xf32>, vector<64x32xf32>, vector<64x32xf32> -> vector<64x32xf32>
    %109 = arith.addf %107, %108 : vector<64x32xf32>
    %c2_67 = arith.constant 2 : index
    %c0_68 = arith.constant 0 : index
    %c0_69 = arith.constant 0 : index
    %110 = vector.load %arg9[%c2_67, %c0_68, %c0_69] : memref<4x64x32xf32, #tpu.memory_space<vmem>>, vector<1x64x32xf32>
    %111 = vector.shape_cast %110 : vector<1x64x32xf32> to vector<64x32xf32>
    %112 = vector.shape_cast %109 : vector<64x32xf32> to vector<1x64x32xf32>
    tpu.vector_store %arg9[%c2_67, %c0_68, %c0_69], %112 {strides = array<i32>} : memref<4x64x32xf32, #tpu.memory_space<vmem>>, vector<1x64x32xf32>,
    %c2_70 = arith.constant 2 : index
    %c0_71 = arith.constant 0 : index
    %c0_72 = arith.constant 0 : index
    %113 = vector.load %arg7[%c2_70, %c0_71, %c0_72] : memref<4x64x1xf32, #tpu.memory_space<vmem>>, vector<1x64x1xf32>
    %114 = vector.shape_cast %113 : vector<1x64x1xf32> to vector<64x1xf32>
    %115 = vector.shape_cast %89 : vector<64x1xf32> to vector<1x64x1xf32>
    tpu.vector_store %arg7[%c2_70, %c0_71, %c0_72], %115 {strides = array<i32>} : memref<4x64x1xf32, #tpu.memory_space<vmem>>, vector<1x64x1xf32>,
    %116 = vector.extract_strided_slice %6 {offsets = [0, 96], sizes = [64, 32], strides = [1, 1]} : vector<64x128xf32> to vector<64x32xf32>
    %117 = vector.extract_strided_slice %8 {offsets = [0, 96], sizes = [64, 32], strides = [1, 1]} : vector<64x128xf32> to vector<64x32xf32>
    %118 = vector.extract_strided_slice %10 {offsets = [0, 96], sizes = [64, 32], strides = [1, 1]} : vector<64x128xf32> to vector<64x32xf32>
    %cst_73 = arith.constant dense<0.000000e+00> : vector<64x64xf32>
    %119 = tpu.matmul %116, %117, %cst_73 {dimension_numbers = #tpu.dot_dimension_numbers<[1], [1], [0], [0], [0, 0, 1, 0], [], []>} : vector<64x32xf32>, vector<64x32xf32>, vector<64x64xf32> -> vector<64x64xf32>
    %c3 = arith.constant 3 : index
    %c0_74 = arith.constant 0 : index
    %c0_75 = arith.constant 0 : index
    %120 = vector.load %arg7[%c3, %c0_74, %c0_75] : memref<4x64x1xf32, #tpu.memory_space<vmem>>, vector<1x64x1xf32>
    %121 = vector.shape_cast %120 : vector<1x64x1xf32> to vector<64x1xf32>
    %cst_76 = arith.constant dense<0xFF800000> : vector<64xf32>
    %122 = vector.multi_reduction <maximumf>, %119, %cst_76 [1] : vector<64x64xf32> to vector<64xf32>
    %123 = vector.shape_cast %122 : vector<64xf32> to vector<64x1xf32>
    %124 = arith.maximumf %121, %123 : vector<64x1xf32>
    %125 = arith.subf %121, %124 : vector<64x1xf32>
    %126 = math.exp %125 : vector<64x1xf32>
    %127 = vector.broadcast %124 : vector<64x1xf32> to vector<64x64xf32>
    %128 = arith.subf %119, %127 : vector<64x64xf32>
    %129 = math.exp %128 : vector<64x64xf32>
    %c3_77 = arith.constant 3 : index
    %c0_78 = arith.constant 0 : index
    %c0_79 = arith.constant 0 : index
    %130 = vector.load %arg8[%c3_77, %c0_78, %c0_79] : memref<4x64x1xf32, #tpu.memory_space<vmem>>, vector<1x64x1xf32>
    %131 = vector.shape_cast %130 : vector<1x64x1xf32> to vector<64x1xf32>
    %132 = arith.mulf %126, %131 : vector<64x1xf32>
    %cst_80 = arith.constant dense<0.000000e+00> : vector<64xf32>
    %133 = vector.multi_reduction <add>, %129, %cst_80 [1] : vector<64x64xf32> to vector<64xf32>
    %134 = vector.shape_cast %133 : vector<64xf32> to vector<64x1xf32>
    %135 = arith.addf %132, %134 : vector<64x1xf32>
    %c3_81 = arith.constant 3 : index
    %c0_82 = arith.constant 0 : index
    %c0_83 = arith.constant 0 : index
    %136 = vector.load %arg8[%c3_81, %c0_82, %c0_83] : memref<4x64x1xf32, #tpu.memory_space<vmem>>, vector<1x64x1xf32>
    %137 = vector.shape_cast %136 : vector<1x64x1xf32> to vector<64x1xf32>
    %138 = vector.shape_cast %135 : vector<64x1xf32> to vector<1x64x1xf32>
    tpu.vector_store %arg8[%c3_81, %c0_82, %c0_83], %138 {strides = array<i32>} : memref<4x64x1xf32, #tpu.memory_space<vmem>>, vector<1x64x1xf32>,
    %c3_84 = arith.constant 3 : index
    %c0_85 = arith.constant 0 : index
    %c0_86 = arith.constant 0 : index
    %139 = vector.load %arg9[%c3_84, %c0_85, %c0_86] : memref<4x64x32xf32, #tpu.memory_space<vmem>>, vector<1x64x32xf32>
    %140 = vector.shape_cast %139 : vector<1x64x32xf32> to vector<64x32xf32>
    %141 = vector.broadcast %126 : vector<64x1xf32> to vector<64x32xf32>
    %142 = arith.mulf %141, %140 : vector<64x32xf32>
    %cst_87 = arith.constant dense<0.000000e+00> : vector<64x32xf32>
    %143 = tpu.matmul %129, %118, %cst_87 {dimension_numbers = #tpu.dot_dimension_numbers<[1], [0], [0], [1], [0, 0, 1, 1], [], []>} : vector<64x64xf32>, vector<64x32xf32>, vector<64x32xf32> -> vector<64x32xf32>
    %144 = arith.addf %142, %143 : vector<64x32xf32>
    %c3_88 = arith.constant 3 : index
    %c0_89 = arith.constant 0 : index
    %c0_90 = arith.constant 0 : index
    %145 = vector.load %arg9[%c3_88, %c0_89, %c0_90] : memref<4x64x32xf32, #tpu.memory_space<vmem>>, vector<1x64x32xf32>
    %146 = vector.shape_cast %145 : vector<1x64x32xf32> to vector<64x32xf32>
    %147 = vector.shape_cast %144 : vector<64x32xf32> to vector<1x64x32xf32>
    tpu.vector_store %arg9[%c3_88, %c0_89, %c0_90], %147 {strides = array<i32>} : memref<4x64x32xf32, #tpu.memory_space<vmem>>, vector<1x64x32xf32>,
    %c3_91 = arith.constant 3 : index
    %c0_92 = arith.constant 0 : index
    %c0_93 = arith.constant 0 : index
    %148 = vector.load %arg7[%c3_91, %c0_92, %c0_93] : memref<4x64x1xf32, #tpu.memory_space<vmem>>, vector<1x64x1xf32>
    %149 = vector.shape_cast %148 : vector<1x64x1xf32> to vector<64x1xf32>
    %150 = vector.shape_cast %124 : vector<64x1xf32> to vector<1x64x1xf32>
    tpu.vector_store %arg7[%c3_91, %c0_92, %c0_93], %150 {strides = array<i32>} : memref<4x64x1xf32, #tpu.memory_space<vmem>>, vector<1x64x1xf32>,
    %c0_i32_94 = arith.constant 0 : i32
    %151 = arith.cmpi eq, %arg2, %c0_i32_94 : i32
    %152 = arith.extui %151 : i1 to i32
    %c0_i32_95 = arith.constant 0 : i32
    %153 = arith.cmpi ne, %152, %c0_i32_95 : i32
    scf.if %153 {
      %c0_96 = arith.constant 0 : index
      %c0_97 = arith.constant 0 : index
      %c0_98 = arith.constant 0 : index
      %154 = vector.load %arg8[%c0_96, %c0_97, %c0_98] : memref<4x64x1xf32, #tpu.memory_space<vmem>>, vector<1x64x1xf32>
      %155 = vector.shape_cast %154 : vector<1x64x1xf32> to vector<64x1xf32>
      %156 = tpu.reciprocal %155 {approx = true} : vector<64x1xf32> -> vector<64x1xf32>
      %c0_99 = arith.constant 0 : index
      %c0_100 = arith.constant 0 : index
      %c0_101 = arith.constant 0 : index
      %157 = vector.load %arg9[%c0_99, %c0_100, %c0_101] : memref<4x64x32xf32, #tpu.memory_space<vmem>>, vector<1x64x32xf32>
      %158 = vector.shape_cast %157 : vector<1x64x32xf32> to vector<64x32xf32>
      %159 = vector.broadcast %156 : vector<64x1xf32> to vector<64x32xf32>
      %160 = arith.mulf %158, %159 : vector<64x32xf32>
      %c1_102 = arith.constant 1 : index
      %c0_103 = arith.constant 0 : index
      %c0_104 = arith.constant 0 : index
      %161 = vector.load %arg8[%c1_102, %c0_103, %c0_104] : memref<4x64x1xf32, #tpu.memory_space<vmem>>, vector<1x64x1xf32>
      %162 = vector.shape_cast %161 : vector<1x64x1xf32> to vector<64x1xf32>
      %163 = tpu.reciprocal %162 {approx = true} : vector<64x1xf32> -> vector<64x1xf32>
      %c1_105 = arith.constant 1 : index
      %c0_106 = arith.constant 0 : index
      %c0_107 = arith.constant 0 : index
      %164 = vector.load %arg9[%c1_105, %c0_106, %c0_107] : memref<4x64x32xf32, #tpu.memory_space<vmem>>, vector<1x64x32xf32>
      %165 = vector.shape_cast %164 : vector<1x64x32xf32> to vector<64x32xf32>
      %166 = vector.broadcast %163 : vector<64x1xf32> to vector<64x32xf32>
      %167 = arith.mulf %165, %166 : vector<64x32xf32>
      %c2_108 = arith.constant 2 : index
      %c0_109 = arith.constant 0 : index
      %c0_110 = arith.constant 0 : index
      %168 = vector.load %arg8[%c2_108, %c0_109, %c0_110] : memref<4x64x1xf32, #tpu.memory_space<vmem>>, vector<1x64x1xf32>
      %169 = vector.shape_cast %168 : vector<1x64x1xf32> to vector<64x1xf32>
      %170 = tpu.reciprocal %169 {approx = true} : vector<64x1xf32> -> vector<64x1xf32>
      %c2_111 = arith.constant 2 : index
      %c0_112 = arith.constant 0 : index
      %c0_113 = arith.constant 0 : index
      %171 = vector.load %arg9[%c2_111, %c0_112, %c0_113] : memref<4x64x32xf32, #tpu.memory_space<vmem>>, vector<1x64x32xf32>
      %172 = vector.shape_cast %171 : vector<1x64x32xf32> to vector<64x32xf32>
      %173 = vector.broadcast %170 : vector<64x1xf32> to vector<64x32xf32>
      %174 = arith.mulf %172, %173 : vector<64x32xf32>
      %c3_114 = arith.constant 3 : index
      %c0_115 = arith.constant 0 : index
      %c0_116 = arith.constant 0 : index
      %175 = vector.load %arg8[%c3_114, %c0_115, %c0_116] : memref<4x64x1xf32, #tpu.memory_space<vmem>>, vector<1x64x1xf32>
      %176 = vector.shape_cast %175 : vector<1x64x1xf32> to vector<64x1xf32>
      %177 = tpu.reciprocal %176 {approx = true} : vector<64x1xf32> -> vector<64x1xf32>
      %c3_117 = arith.constant 3 : index
      %c0_118 = arith.constant 0 : index
      %c0_119 = arith.constant 0 : index
      %178 = vector.load %arg9[%c3_117, %c0_118, %c0_119] : memref<4x64x32xf32, #tpu.memory_space<vmem>>, vector<1x64x32xf32>
      %179 = vector.shape_cast %178 : vector<1x64x32xf32> to vector<64x32xf32>
      %180 = vector.broadcast %177 : vector<64x1xf32> to vector<64x32xf32>
      %181 = arith.mulf %179, %180 : vector<64x32xf32>
      %182 = tpu.concatenate %160, %167, %174, %181 in 1 : vector<64x32xf32>, vector<64x32xf32>, vector<64x32xf32>, vector<64x32xf32> -> vector<64x128xf32>
      %c0_120 = arith.constant 0 : index
      %c0_121 = arith.constant 0 : index
      %c0_122 = arith.constant 0 : index
      %183 = vector.load %arg6[%c0_120, %c0_121, %c0_122] : memref<1x64x128xf32, #tpu.memory_space<vmem>>, vector<1x64x128xf32>
      %184 = vector.shape_cast %183 : vector<1x64x128xf32> to vector<64x128xf32>
      %185 = vector.shape_cast %182 : vector<64x128xf32> to vector<1x64x128xf32>
      tpu.vector_store %arg6[%c0_120, %c0_121, %c0_122], %185 {strides = array<i32>} : memref<1x64x128xf32, #tpu.memory_space<vmem>>, vector<1x64x128xf32>,
    } else {
    }
    return
  }
  func.func @transform_0(%arg0: i32, %arg1: i32, %arg2: i32) -> (i32, i32, i32) {
    %c0_i32 = arith.constant 0 : i32
    %c0_i32_0 = arith.constant 0 : i32
    return %arg0, %arg1, %c0_i32 : i32, i32, i32
  }
  func.func @transform_1(%arg0: i32, %arg1: i32, %arg2: i32) -> (i32, i32, i32) {
    %c1_i32 = arith.constant 1 : i32
    %c0_i32 = arith.constant 0 : i32
    return %arg0, %arg2, %c1_i32 : i32, i32, i32
  }
  func.func @transform_2(%arg0: i32, %arg1: i32, %arg2: i32) -> (i32, i32, i32) {
    %c2_i32 = arith.constant 2 : i32
    %c0_i32 = arith.constant 0 : i32
    return %arg0, %arg2, %c2_i32 : i32, i32, i32
  }
  func.func @transform_3(%arg0: i32, %arg1: i32, %arg2: i32) -> (i32, i32, i32) {
    %c0_i32 = arith.constant 0 : i32
    %c0_i32_0 = arith.constant 0 : i32
    return %arg0, %arg1, %c0_i32 : i32, i32, i32
  }
}

</mosaic_0001>

<bundles_post_ra>
// kernel: attention_forward.5
= control target key start
LH: loop header
LB: loop body
LE: loop exit
PB: predicated region body
PF: predicated region fallthrough
CT: control target
= control target key end

     0   :  { %s456_s0 = inlined_call_operand.vmem [shape: f32[128,128], index: 0, kind: input, shape index: {}]   ;;  %s457_s1 = inlined_call_operand.vmem [shape: f32[128,128], index: 1, kind: input, shape index: {}]   ;;  %s458_s2 = inlined_call_operand.vmem [shape: f32[1,128], index: 2, kind: input, shape index: {}]   ;;  %s459_s3 = inlined_call_operand.hbm [shape: f32[128,128], index: 3, kind: output, shape index: {}]  }
   0x1   :  { %v82_v0 = vld [vmem:[%s457_s1 + $0x78] sm:$0xff]  ;;  %v81_v1 = vld [vmem:[%s457_s1 + $0x70] sm:$0xff]  ;;  %v80_v2 = vld [vmem:[%s457_s1 + $0x68] sm:$0xff] }
   0x2   :  { %254 = vmatpush.msra.mxu2 %v82_v0  ;;  %255 = vmatpush.msra.mxu3 %v82_v0  ;;  %v79_v3 = vld [vmem:[%s457_s1 + $0x60] sm:$0xff]  ;;  %v78_v4 = vld [vmem:[%s457_s1 + $0x58] sm:$0xff] }
   0x3   :  { %83 = vmatpush.msra.mxu0 %v82_v0  ;;  %253 = vmatpush.msra.mxu1 %v82_v0 }
   0x4   :  { %257 = vmatpush.msra.mxu2 %v81_v1  ;;  %258 = vmatpush.msra.mxu3 %v81_v1 }
   0x5   :  { %84 = vmatpush.msra.mxu0 %v81_v1  ;;  %256 = vmatpush.msra.mxu1 %v81_v1 }
   0x6   :  { %260 = vmatpush.msra.mxu2 %v80_v2  ;;  %261 = vmatpush.msra.mxu3 %v80_v2 }
   0x7   :  { %85 = vmatpush.msra.mxu0 %v80_v2  ;;  %259 = vmatpush.msra.mxu1 %v80_v2 }
   0x8   :  { %263 = vmatpush.msra.mxu2 %v79_v3  ;;  %264 = vmatpush.msra.mxu3 %v79_v3 }
   0x9   :  { %8 = vsyncpa [#allocation4], 0  ;;  %v77_v5 = vld [vmem:[%s457_s1 + $0x50] sm:$0xff]  ;;  %86 = vmatpush.msra.mxu0 %v79_v3  ;;  %262 = vmatpush.msra.mxu1 %v79_v3  ;;  %v76_v6 = vld [vmem:[%s457_s1 + $0x48] sm:$0xff]  ;;  %s241_s24 = sshll.u32 %s459_s3, 4  ;;  %s332_s25 = smov 128   ;;  %s242_s24 = int_to_ptr.hbm [resolvable:$true] %s241_s24 }
   0xa   :  { %266 = vmatpush.msra.mxu2 %v78_v4  ;;  %267 = vmatpush.msra.mxu3 %v78_v4  ;;  %v75_v7 = vld [vmem:[%s457_s1 + $0x40] sm:$0xff]  ;;  %v74_v8 = vld [vmem:[%s457_s1 + $0x38] sm:$0xff]  ;;  %v73_v9 = vld [vmem:[%s457_s1 + $0x30] sm:$0xff]  ;;  %s333_s26 = smov 8  }
   0xb   :  { %87 = vmatpush.msra.mxu0 %v78_v4  ;;  %265 = vmatpush.msra.mxu1 %v78_v4  ;;  %v72_v10 = vld [vmem:[%s457_s1 + $0x28] sm:$0xff]  ;;  %v71_v11 = vld [vmem:[%s457_s1 + $0x20] sm:$0xff]  ;;  %v70_v12 = vld [vmem:[%s457_s1 + $0x18] sm:$0xff] }
   0xc   :  { %269 = vmatpush.msra.mxu2 %v77_v5  ;;  %270 = vmatpush.msra.mxu3 %v77_v5  ;;  %v69_v13 = vld [vmem:[%s457_s1 + $0x10] sm:$0xff]  ;;  %v68_v14 = vld [vmem:[%s457_s1 + $0x8] sm:$0xff]  ;;  %v67_v15 = vld [vmem:[%s457_s1] sm:$0xff] }
   0xd   :  { %88 = vmatpush.msra.mxu0 %v77_v5  ;;  %268 = vmatpush.msra.mxu1 %v77_v5  ;;  %v59_v16 = vld [vmem:[%s456_s0 + $0x40] sm:$0xff]  ;;  %v60_v20 = vld [vmem:[%s456_s0 + $0x48] sm:$0xff]  ;;  %v61_v24 = vld [vmem:[%s456_s0 + $0x50] sm:$0xff] }
   0xe   :  { %272 = vmatpush.msra.mxu2 %v76_v6  ;;  %273 = vmatpush.msra.mxu3 %v76_v6  ;;  %v63_v17 = vld [vmem:[%s456_s0 + $0x60] sm:$0xff]  ;;  %v64_v21 = vld [vmem:[%s456_s0 + $0x68] sm:$0xff]  ;;  %v65_v25 = vld [vmem:[%s456_s0 + $0x70] sm:$0xff] }
   0xf   :  { %89 = vmatpush.msra.mxu0 %v76_v6  ;;  %271 = vmatpush.msra.mxu1 %v76_v6  ;;  %v51_v18 = vld [vmem:[%s456_s0] sm:$0xff]  ;;  %v52_v22 = vld [vmem:[%s456_s0 + $0x8] sm:$0xff]  ;;  %v53_v26 = vld [vmem:[%s456_s0 + $0x10] sm:$0xff] }
  0x10   :  { %275 = vmatpush.msra.mxu2 %v75_v7  ;;  %276 = vmatpush.msra.mxu3 %v75_v7  ;;  %v55_v19 = vld [vmem:[%s456_s0 + $0x20] sm:$0xff]  ;;  %v56_v23 = vld [vmem:[%s456_s0 + $0x28] sm:$0xff]  ;;  %v57_v27 = vld [vmem:[%s456_s0 + $0x30] sm:$0xff] }
  0x11   :  { %90 = vmatpush.msra.mxu0 %v75_v7  ;;  %274 = vmatpush.msra.mxu1 %v75_v7  ;;  %v62_v28 = vld [vmem:[%s456_s0 + $0x58] sm:$0xff]  ;;  %v304_v32 = vld [vmem:[%s458_s2] ss:$0 sm:$0xff] }
  0x12   :  { %278 = vmatpush.msra.mxu2 %v74_v8  ;;  %279 = vmatpush.msra.mxu3 %v74_v8  ;;  %v66_v29 = vld [vmem:[%s456_s0 + $0x78] sm:$0xff] }
  0x13   :  { %91 = vmatpush.msra.mxu0 %v74_v8  ;;  %277 = vmatpush.msra.mxu1 %v74_v8  ;;  %v54_v30 = vld [vmem:[%s456_s0 + $0x18] sm:$0xff] }
  0x14   :  { %281 = vmatpush.msra.mxu2 %v73_v9  ;;  %282 = vmatpush.msra.mxu3 %v73_v9  ;;  %v58_v31 = vld [vmem:[%s456_s0 + $0x38] sm:$0xff]  ;;  %s331_s0 = smov [#allocation3]  }
  0x15   :  { %92 = vmatpush.msra.mxu0 %v73_v9  ;;  %280 = vmatpush.msra.mxu1 %v73_v9  ;;  %s239_s2 = sshll.u32 %s331_s0, 4  ;;  %s240_s2 = int_to_ptr.vmem [resolvable:$true] %s239_s2 }
  0x16   :  { %284 = vmatpush.msra.mxu2 %v72_v10  ;;  %285 = vmatpush.msra.mxu3 %v72_v10 }
  0x17   :  { %93 = vmatpush.msra.mxu0 %v72_v10  ;;  %283 = vmatpush.msra.mxu1 %v72_v10 }
  0x18   :  { %287 = vmatpush.msra.mxu2 %v71_v11  ;;  %288 = vmatpush.msra.mxu3 %v71_v11 }
  0x19   :  { %94 = vmatpush.msra.mxu0 %v71_v11  ;;  %286 = vmatpush.msra.mxu1 %v71_v11 }
  0x1a   :  { %290 = vmatpush.msra.mxu2 %v70_v12  ;;  %291 = vmatpush.msra.mxu3 %v70_v12 }
  0x1b   :  { %95 = vmatpush.msra.mxu0 %v70_v12  ;;  %289 = vmatpush.msra.mxu1 %v70_v12 }
  0x1c   :  { %293 = vmatpush.msra.mxu2 %v69_v13  ;;  %294 = vmatpush.msra.mxu3 %v69_v13 }
  0x1d   :  { %96 = vmatpush.msra.mxu0 %v69_v13  ;;  %292 = vmatpush.msra.mxu1 %v69_v13 }
  0x1e   :  { %296 = vmatpush.msra.mxu2 %v68_v14  ;;  %297 = vmatpush.msra.mxu3 %v68_v14 }
  0x1f   :  { %97 = vmatpush.msra.mxu0 %v68_v14  ;;  %295 = vmatpush.msra.mxu1 %v68_v14 }
  0x20   :  { %299 = vmatpush.msra.mxu2 %v67_v15  ;;  %300 = vmatpush.msra.mxu3 %v67_v15 }
  0x21   :  { %123 = vmatmul.f32.vlgmr.msra.gmra.mxu2 %v59_v16  ;;  %135 = vmatmul.f32.vlgmr.msra.gmra.mxu3 %v63_v17 }
  0x22   :  { %98 = vmatpush.msra.mxu0 %v67_v15  ;;  %298 = vmatpush.msra.mxu1 %v67_v15 }
  0x23   :  { %99 = vmatmul.f32.vlgmr.msra.gmra.mxu0 %v51_v18  ;;  %111 = vmatmul.f32.vlgmr.msra.gmra.mxu1 %v55_v19 }
  0x29   :  { %126 = vmatmul.f32.gmra.mxu2 %v60_v20  ;;  %138 = vmatmul.f32.gmra.mxu3 %v64_v21 }
  0x2b   :  { %102 = vmatmul.f32.gmra.mxu0 %v52_v22  ;;  %114 = vmatmul.f32.gmra.mxu1 %v56_v23 }
  0x31   :  { %129 = vmatmul.f32.gmra.mxu2 %v61_v24  ;;  %141 = vmatmul.f32.gmra.mxu3 %v65_v25 }
  0x33   :  { %105 = vmatmul.f32.gmra.mxu0 %v53_v26  ;;  %117 = vmatmul.f32.gmra.mxu1 %v57_v27 }
  0x39   :  { %132 = vmatmul.f32.gmra.mxu2 %v62_v28  ;;  %144 = vmatmul.f32.gmra.mxu3 %v66_v29 }
  0x3b   :  { %108 = vmatmul.f32.gmra.mxu0 %v54_v30  ;;  %120 = vmatmul.f32.gmra.mxu1 %v58_v31 }
  0xa0   :  { %v100_v33 = vpop.f32.mrf.mxu0  ;;  %v112_v34 = vpop.f32.mrf.mxu1 }
  0xa1   :  { %v203_v35 = vadd.f32 %v304_v32, %v100_v33  ;;  %v207_v36 = vadd.f32 %v304_v32, %v112_v34 }
  0xa3   :  { %219 = vst [vmem:[#allocation3] sm:$0xff] %v203_v35 }
  0xa4   :  { %223 = vst [vmem:[#allocation3 + $0x20] sm:$0xff] %v207_v36  ;;  %v124_v37 = vpop.f32.mrf.mxu2  ;;  %v136_v38 = vpop.f32.mrf.mxu3 }
  0xa5   :  { %v211_v39 = vadd.f32 %v304_v32, %v124_v37  ;;  %v215_v40 = vadd.f32 %v304_v32, %v136_v38 }
  0xa7   :  { %227 = vst [vmem:[#allocation3 + $0x40] sm:$0xff] %v211_v39 }
  0xa8   :  { %231 = vst [vmem:[#allocation3 + $0x60] sm:$0xff] %v215_v40  ;;  %v103_v41 = vpop.f32.mrf.mxu0  ;;  %v115_v42 = vpop.f32.mrf.mxu1 }
  0xa9   :  { %v204_v43 = vadd.f32 %v304_v32, %v103_v41  ;;  %v208_v44 = vadd.f32 %v304_v32, %v115_v42 }
  0xab   :  { %220 = vst [vmem:[#allocation3 + $0x8] sm:$0xff] %v204_v43 }
  0xac   :  { %224 = vst [vmem:[#allocation3 + $0x28] sm:$0xff] %v208_v44  ;;  %v127_v45 = vpop.f32.mrf.mxu2  ;;  %v139_v46 = vpop.f32.mrf.mxu3 }
  0xad   :  { %v212_v47 = vadd.f32 %v304_v32, %v127_v45  ;;  %v216_v48 = vadd.f32 %v304_v32, %v139_v46 }
  0xaf   :  { %228 = vst [vmem:[#allocation3 + $0x48] sm:$0xff] %v212_v47 }
  0xb0   :  { %232 = vst [vmem:[#allocation3 + $0x68] sm:$0xff] %v216_v48  ;;  %v106_v49 = vpop.f32.mrf.mxu0  ;;  %v118_v50 = vpop.f32.mrf.mxu1 }
  0xb1   :  { %v205_v51 = vadd.f32 %v304_v32, %v106_v49  ;;  %v209_v52 = vadd.f32 %v304_v32, %v118_v50 }
  0xb3   :  { %221 = vst [vmem:[#allocation3 + $0x10] sm:$0xff] %v205_v51 }
  0xb4   :  { %225 = vst [vmem:[#allocation3 + $0x30] sm:$0xff] %v209_v52  ;;  %v130_v53 = vpop.f32.mrf.mxu2  ;;  %v142_v54 = vpop.f32.mrf.mxu3 }
  0xb5   :  { %v213_v55 = vadd.f32 %v304_v32, %v130_v53  ;;  %v217_v56 = vadd.f32 %v304_v32, %v142_v54 }
  0xb7   :  { %229 = vst [vmem:[#allocation3 + $0x50] sm:$0xff] %v213_v55 }
  0xb8   :  { %233 = vst [vmem:[#allocation3 + $0x70] sm:$0xff] %v217_v56  ;;  %v109_v57 = vpop.f32.mrf.mxu0  ;;  %v121_v58 = vpop.f32.mrf.mxu1 }
  0xb9   :  { %v206_v59 = vadd.f32 %v304_v32, %v109_v57  ;;  %v210_v60 = vadd.f32 %v304_v32, %v121_v58 }
  0xbb   :  { %222 = vst [vmem:[#allocation3 + $0x18] sm:$0xff] %v206_v59 }
  0xbc   :  { %226 = vst [vmem:[#allocation3 + $0x38] sm:$0xff] %v210_v60  ;;  %v133_v61 = vpop.f32.mrf.mxu2  ;;  %v145_v62 = vpop.f32.mrf.mxu3 }
  0xbd   :  { %v214_v63 = vadd.f32 %v304_v32, %v133_v61  ;;  %v218_v0 = vadd.f32 %v304_v32, %v145_v62 }
  0xbf   :  { %230 = vst [vmem:[#allocation3 + $0x58] sm:$0xff] %v214_v63 }
  0xc0   :  { %234 = vst [vmem:[#allocation3 + $0x78] sm:$0xff] %v218_v0 }
  0xc1   :  { %247 = dma.vmem_to_hbm [thread:$0]  %s240_s2, 2048, %s242_s24, [#allocation4], %s332_s25, %s332_s25, %s333_s26  }
  0xc2   :  { %329 = dma.done.wait [#allocation4], 2048  }
  0xc3   :  { %330 = vsyncadd [#allocation4], 4294965248 }
  0xc4   :  { %252 = vsyncpa [#allocation4], 1 }

// kernel: attention_forward.3
= control target key start
LH: loop header
LB: loop body
LE: loop exit
PB: predicated region body
PF: predicated region fallthrough
CT: control target
= control target key end

     0   :  { %7 = vsyncpa [#allocation4], 0  ;;  %s1008_s0 = inlined_call_operand.hbm [shape: f32[128,128], index: 0, kind: input, shape index: {}]   ;;  %s1009_s1 = inlined_call_operand.hbm [shape: f32[128,384], index: 1, kind: input, shape index: {}]   ;;  %s1010_s2 = inlined_call_operand.vmem [shape: f32[128,384], index: 2, kind: output, shape index: {}]  }
   0x1   :  { %s13_s11 = sshll.u32 %s1008_s0, 4  ;;  %s14_s11 = int_to_ptr.hbm [resolvable:$true] %s13_s11 }
   0x2   :  { %8 = vsyncpa [#allocation6], 0  ;;  %s709_s12 = smov [#allocation3]   ;;  %s26_s16 = sshll.u32 %s1009_s1, 4  ;;  %s27_s16 = int_to_ptr.hbm [resolvable:$true] %s26_s16 }
   0x3   :  { %s15_s13 = sshll.u32 %s709_s12, 4  ;;  %s710_s17 = smov 128   ;;  %s16_s13 = int_to_ptr.vmem [resolvable:$true] %s15_s13 }
   0x4   :  { %s711_s18 = smov 8   ;;  %s712_s19 = smov [#allocation5]  }
   0x5   :  { %21 = dma.hbm_to_vmem [thread:$0]  %s14_s11, 2048, %s16_s13, [#allocation4], %s710_s17, %s710_s17, %s711_s18  }
   0x6   :  { %s28_s20 = sshll.u32 %s712_s19, 4  ;;  %s713_s21 = smov 384   ;;  %s29_s20 = int_to_ptr.vmem [resolvable:$true] %s28_s20 }
   0x7   :  { %s714_s22 = smov 24  }
   0x8   :  { %34 = dma.hbm_to_vmem [thread:$0]  %s27_s16, 6144, %s29_s20, [#allocation6], %s713_s21, %s713_s21, %s714_s22  }
   0x9   :  { %705 = dma.done.wait [#allocation4], 2048  }
   0xa   :  { %706 = vsyncadd [#allocation4], 4294965248 }
   0xb   :  { %707 = dma.done.wait [#allocation6], 6144  }
   0xc   :  { %708 = vsyncadd [#allocation6], 4294961152  ;;  %v204_v0 = vld [vmem:[#allocation5 + $0x168] sm:$0xff]  ;;  %v736_v1 = vld [vmem:[#allocation5 + $0x178] sm:$0xff] }
   0xd   :  { %v201_v2 = vld [vmem:[#allocation5 + $0x150] sm:$0xff]  ;;  %603 = vmatpush.msra.mxu3 %v204_v0  ;;  %337 = vmatpush.msra.mxu2 %v736_v1  ;;  %v739_v3 = vld [vmem:[#allocation5 + $0x160] sm:$0xff]  ;;  %v198_v4 = vld [vmem:[#allocation5 + $0x138] sm:$0xff] }
   0xe   :  { %v741_v5 = vld [vmem:[#allocation5 + $0x148] sm:$0xff]  ;;  %207 = vmatpush.msra.mxu0 %v204_v0  ;;  %v743_v6 = vld [vmem:[#allocation5 + $0x170] sm:$0xff]  ;;  %v746_v7 = vld [vmem:[#allocation5 + $0x158] sm:$0xff] }
   0xf   :  { %604 = vmatpush.msra.mxu3 %v201_v2  ;;  %338 = vmatpush.msra.mxu2 %v739_v3  ;;  %v195_v8 = vld [vmem:[#allocation5 + $0x120] sm:$0xff]  ;;  %v749_v9 = vld [vmem:[#allocation5 + $0x130] sm:$0xff]  ;;  %v192_v11 = vld [vmem:[#allocation5 + $0x108] sm:$0xff] }
  0x10   :  { %272 = vmatpush.msra.mxu1 %v743_v6  ;;  %208 = vmatpush.msra.mxu0 %v201_v2  ;;  %v752_v10 = vld [vmem:[#allocation5 + $0x140] sm:$0xff]  ;;  %v755_v12 = vld [vmem:[#allocation5 + $0x118] sm:$0xff]  ;;  %v758_v13 = vld [vmem:[#allocation5 + $0x128] sm:$0xff] }
  0x11   :  { %605 = vmatpush.msra.mxu3 %v198_v4  ;;  %339 = vmatpush.msra.mxu2 %v741_v5  ;;  %v189_v14 = vld [vmem:[#allocation5 + $0xf0] sm:$0xff]  ;;  %v761_v15 = vld [vmem:[#allocation5 + $0x100] sm:$0xff]  ;;  %v186_v17 = vld [vmem:[#allocation5 + $0xd8] sm:$0xff] }
  0x12   :  { %273 = vmatpush.msra.mxu1 %v746_v7  ;;  %209 = vmatpush.msra.mxu0 %v198_v4  ;;  %v764_v16 = vld [vmem:[#allocation5 + $0x110] sm:$0xff]  ;;  %v767_v18 = vld [vmem:[#allocation5 + $0xe8] sm:$0xff]  ;;  %v770_v19 = vld [vmem:[#allocation5 + $0xf8] sm:$0xff] }
  0x13   :  { %606 = vmatpush.msra.mxu3 %v195_v8  ;;  %340 = vmatpush.msra.mxu2 %v749_v9  ;;  %v183_v20 = vld [vmem:[#allocation5 + $0xc0] sm:$0xff]  ;;  %v773_v21 = vld [vmem:[#allocation5 + $0xd0] sm:$0xff]  ;;  %v180_v23 = vld [vmem:[#allocation5 + $0xa8] sm:$0xff] }
  0x14   :  { %274 = vmatpush.msra.mxu1 %v752_v10  ;;  %210 = vmatpush.msra.mxu0 %v195_v8  ;;  %v776_v22 = vld [vmem:[#allocation5 + $0xe0] sm:$0xff]  ;;  %v779_v24 = vld [vmem:[#allocation5 + $0xb8] sm:$0xff]  ;;  %v782_v25 = vld [vmem:[#allocation5 + $0xc8] sm:$0xff] }
  0x15   :  { %607 = vmatpush.msra.mxu3 %v192_v11  ;;  %341 = vmatpush.msra.mxu2 %v755_v12  ;;  %v177_v26 = vld [vmem:[#allocation5 + $0x90] sm:$0xff]  ;;  %v785_v27 = vld [vmem:[#allocation5 + $0xa0] sm:$0xff]  ;;  %v174_v29 = vld [vmem:[#allocation5 + $0x78] sm:$0xff] }
  0x16   :  { %275 = vmatpush.msra.mxu1 %v758_v13  ;;  %211 = vmatpush.msra.mxu0 %v192_v11  ;;  %v788_v28 = vld [vmem:[#allocation5 + $0xb0] sm:$0xff]  ;;  %v791_v30 = vld [vmem:[#allocation5 + $0x88] sm:$0xff]  ;;  %v794_v31 = vld [vmem:[#allocation5 + $0x98] sm:$0xff] }
  0x17   :  { %608 = vmatpush.msra.mxu3 %v189_v14  ;;  %342 = vmatpush.msra.mxu2 %v761_v15  ;;  %v171_v32 = vld [vmem:[#allocation5 + $0x60] sm:$0xff]  ;;  %v797_v33 = vld [vmem:[#allocation5 + $0x70] sm:$0xff]  ;;  %v168_v35 = vld [vmem:[#allocation5 + $0x48] sm:$0xff] }
  0x18   :  { %276 = vmatpush.msra.mxu1 %v764_v16  ;;  %212 = vmatpush.msra.mxu0 %v189_v14  ;;  %v800_v34 = vld [vmem:[#allocation5 + $0x80] sm:$0xff]  ;;  %v803_v36 = vld [vmem:[#allocation5 + $0x58] sm:$0xff]  ;;  %v172_v37 = vld [vmem:[#allocation5 + $0x68] sm:$0xff] }
  0x19   :  { %609 = vmatpush.msra.mxu3 %v186_v17  ;;  %343 = vmatpush.msra.mxu2 %v767_v18  ;;  %v165_v38 = vld [vmem:[#allocation5 + $0x30] sm:$0xff]  ;;  %v807_v39 = vld [vmem:[#allocation5 + $0x40] sm:$0xff]  ;;  %v162_v41 = vld [vmem:[#allocation5 + $0x18] sm:$0xff] }
  0x1a   :  { %277 = vmatpush.msra.mxu1 %v770_v19  ;;  %213 = vmatpush.msra.mxu0 %v186_v17  ;;  %v169_v40 = vld [vmem:[#allocation5 + $0x50] sm:$0xff]  ;;  %v810_v42 = vld [vmem:[#allocation5 + $0x28] sm:$0xff]  ;;  %v166_v43 = vld [vmem:[#allocation5 + $0x38] sm:$0xff] }
  0x1b   :  { %610 = vmatpush.msra.mxu3 %v183_v20  ;;  %344 = vmatpush.msra.mxu2 %v773_v21  ;;  %v159_v44 = vld [vmem:[#allocation5] sm:$0xff]  ;;  %v813_v45 = vld [vmem:[#allocation5 + $0x10] sm:$0xff]  ;;  %v160_v49 = vld [vmem:[#allocation5 + $0x8] sm:$0xff] }
  0x1c   :  { %278 = vmatpush.msra.mxu1 %v776_v22  ;;  %214 = vmatpush.msra.mxu0 %v183_v20  ;;  %v816_v46 = vld [vmem:[#allocation3 + $0x60] sm:$0xff]  ;;  %v823_v50 = vld [vmem:[#allocation3 + $0x68] sm:$0xff]  ;;  %v830_v52 = vld [vmem:[#allocation3 + $0x70] sm:$0xff] }
  0x1d   :  { %611 = vmatpush.msra.mxu3 %v180_v23  ;;  %345 = vmatpush.msra.mxu2 %v779_v24  ;;  %v143_v47 = vld [vmem:[#allocation3] sm:$0xff]  ;;  %v144_v51 = vld [vmem:[#allocation3 + $0x8] sm:$0xff]  ;;  %v145_v53 = vld [vmem:[#allocation3 + $0x10] sm:$0xff] }
  0x1e   :  { %279 = vmatpush.msra.mxu1 %v782_v25  ;;  %215 = vmatpush.msra.mxu0 %v180_v23  ;;  %v163_v48 = vld [vmem:[#allocation5 + $0x20] sm:$0xff]  ;;  %v837_v54 = vld [vmem:[#allocation3 + $0x78] sm:$0xff]  ;;  %v148_v57 = vld [vmem:[#allocation3 + $0x28] sm:$0xff] }
  0x1f   :  { %612 = vmatpush.msra.mxu3 %v177_v26  ;;  %346 = vmatpush.msra.mxu2 %v785_v27  ;;  %v146_v55 = vld [vmem:[#allocation3 + $0x18] sm:$0xff]  ;;  %v147_v56 = vld [vmem:[#allocation3 + $0x20] sm:$0xff]  ;;  %v149_v58 = vld [vmem:[#allocation3 + $0x30] sm:$0xff] }
  0x20   :  { %280 = vmatpush.msra.mxu1 %v788_v28  ;;  %216 = vmatpush.msra.mxu0 %v177_v26  ;;  %v150_v59 = vld [vmem:[#allocation3 + $0x38] sm:$0xff]  ;;  %v151_v60 = vld [vmem:[#allocation3 + $0x40] sm:$0xff]  ;;  %v152_v61 = vld [vmem:[#allocation3 + $0x48] sm:$0xff] }
  0x21   :  { %613 = vmatpush.msra.mxu3 %v174_v29  ;;  %347 = vmatpush.msra.mxu2 %v791_v30  ;;  %v153_v62 = vld [vmem:[#allocation3 + $0x50] sm:$0xff]  ;;  %v154_v63 = vld [vmem:[#allocation3 + $0x58] sm:$0xff] }
  0x22   :  { %281 = vmatpush.msra.mxu1 %v794_v31  ;;  %217 = vmatpush.msra.mxu0 %v174_v29 }
  0x23   :  { %614 = vmatpush.msra.mxu3 %v171_v32  ;;  %348 = vmatpush.msra.mxu2 %v797_v33 }
  0x24   :  { %282 = vmatpush.msra.mxu1 %v800_v34  ;;  %218 = vmatpush.msra.mxu0 %v171_v32 }
  0x25   :  { %615 = vmatpush.msra.mxu3 %v168_v35  ;;  %349 = vmatpush.msra.mxu2 %v803_v36 }
  0x26   :  { %283 = vmatpush.msra.mxu1 %v172_v37  ;;  %219 = vmatpush.msra.mxu0 %v168_v35 }
  0x27   :  { %616 = vmatpush.msra.mxu3 %v165_v38  ;;  %350 = vmatpush.msra.mxu2 %v807_v39 }
  0x28   :  { %284 = vmatpush.msra.mxu1 %v169_v40  ;;  %220 = vmatpush.msra.mxu0 %v165_v38 }
  0x29   :  { %617 = vmatpush.msra.mxu3 %v162_v41  ;;  %351 = vmatpush.msra.mxu2 %v810_v42 }
  0x2a   :  { %285 = vmatpush.msra.mxu1 %v166_v43  ;;  %221 = vmatpush.msra.mxu0 %v162_v41 }
  0x2b   :  { %618 = vmatpush.msra.mxu3 %v159_v44  ;;  %352 = vmatpush.msra.mxu2 %v813_v45 }
  0x2c   :  { %259 = vmatmul.f32.vlgmr.msra.gmra.mxu3 %v816_v46  ;;  %353 = vmatmul.f32.vlgmr.msra.gmra.mxu2 %v143_v47 }
  0x2d   :  { %619 = vmatpush.msrb.mxu3 %v743_v6  ;;  %286 = vmatpush.msra.mxu1 %v163_v48 }
  0x2e   :  { %222 = vmatpush.msra.mxu0 %v159_v44 }
  0x2f   :  { %620 = vmatpush.msrb.mxu3 %v746_v7  ;;  %287 = vmatpush.msra.mxu1 %v160_v49 }
  0x30   :  { %223 = vmatmul.f32.vlgmr.msra.gmra.mxu0 %v143_v47  ;;  %288 = vmatmul.f32.vlgmr.msra.gmra.mxu1 %v143_v47 }
  0x31   :  { %621 = vmatpush.msrb.mxu3 %v752_v10 }
  0x33   :  { %622 = vmatpush.msrb.mxu3 %v758_v13 }
  0x34   :  { %262 = vmatmul.f32.gmra.mxu3 %v823_v50  ;;  %356 = vmatmul.f32.gmra.mxu2 %v144_v51 }
  0x35   :  { %623 = vmatpush.msrb.mxu3 %v764_v16 }
  0x37   :  { %624 = vmatpush.msrb.mxu3 %v770_v19 }
  0x38   :  { %226 = vmatmul.f32.gmra.mxu0 %v144_v51  ;;  %291 = vmatmul.f32.gmra.mxu1 %v144_v51 }
  0x39   :  { %625 = vmatpush.msrb.mxu3 %v776_v22 }
  0x3b   :  { %626 = vmatpush.msrb.mxu3 %v782_v25 }
  0x3c   :  { %265 = vmatmul.f32.gmra.mxu3 %v830_v52  ;;  %359 = vmatmul.f32.gmra.mxu2 %v145_v53 }
  0x3d   :  { %627 = vmatpush.msrb.mxu3 %v788_v28 }
  0x3f   :  { %628 = vmatpush.msrb.mxu3 %v794_v31 }
  0x40   :  { %229 = vmatmul.f32.gmra.mxu0 %v145_v53  ;;  %294 = vmatmul.f32.gmra.mxu1 %v145_v53 }
  0x41   :  { %629 = vmatpush.msrb.mxu3 %v800_v34 }
  0x43   :  { %630 = vmatpush.msrb.mxu3 %v172_v37 }
  0x44   :  { %268 = vmatmul.f32.gmra.mxu3 %v837_v54  ;;  %362 = vmatmul.f32.gmra.mxu2 %v146_v55 }
  0x45   :  { %631 = vmatpush.msrb.mxu3 %v169_v40 }
  0x47   :  { %632 = vmatpush.msrb.mxu3 %v166_v43 }
  0x48   :  { %232 = vmatmul.f32.gmra.mxu0 %v146_v55  ;;  %297 = vmatmul.f32.gmra.mxu1 %v146_v55 }
  0x49   :  { %633 = vmatpush.msrb.mxu3 %v163_v48 }
  0x4b   :  { %634 = vmatpush.msrb.mxu3 %v160_v49 }
  0x4c   :  { %324 = vmatmul.f32.vlgmr.msrb.gmra.mxu3 %v816_v46  ;;  %365 = vmatmul.f32.gmra.mxu2 %v147_v56 }
  0x4d   :  { %635 = vmatpush.msra.mxu3 %v736_v1 }
  0x4f   :  { %636 = vmatpush.msra.mxu3 %v739_v3 }
  0x50   :  { %235 = vmatmul.f32.gmra.mxu0 %v147_v56  ;;  %300 = vmatmul.f32.gmra.mxu1 %v147_v56 }
  0x51   :  { %637 = vmatpush.msra.mxu3 %v741_v5 }
  0x53   :  { %638 = vmatpush.msra.mxu3 %v749_v9 }
  0x54   :  { %327 = vmatmul.f32.gmra.mxu3 %v823_v50  ;;  %368 = vmatmul.f32.gmra.mxu2 %v148_v57 }
  0x55   :  { %639 = vmatpush.msra.mxu3 %v755_v12 }
  0x57   :  { %640 = vmatpush.msra.mxu3 %v761_v15 }
  0x58   :  { %238 = vmatmul.f32.gmra.mxu0 %v148_v57  ;;  %303 = vmatmul.f32.gmra.mxu1 %v148_v57 }
  0x59   :  { %641 = vmatpush.msra.mxu3 %v767_v18 }
  0x5b   :  { %642 = vmatpush.msra.mxu3 %v773_v21 }
  0x5c   :  { %330 = vmatmul.f32.gmra.mxu3 %v830_v52  ;;  %371 = vmatmul.f32.gmra.mxu2 %v149_v58 }
  0x5d   :  { %643 = vmatpush.msra.mxu3 %v779_v24 }
  0x5f   :  { %644 = vmatpush.msra.mxu3 %v785_v27 }
  0x60   :  { %241 = vmatmul.f32.gmra.mxu0 %v149_v58  ;;  %306 = vmatmul.f32.gmra.mxu1 %v149_v58 }
  0x61   :  { %645 = vmatpush.msra.mxu3 %v791_v30 }
  0x63   :  { %646 = vmatpush.msra.mxu3 %v797_v33 }
  0x64   :  { %333 = vmatmul.f32.gmra.mxu3 %v837_v54  ;;  %374 = vmatmul.f32.gmra.mxu2 %v150_v59 }
  0x65   :  { %647 = vmatpush.msra.mxu3 %v803_v36 }
  0x67   :  { %648 = vmatpush.msra.mxu3 %v807_v39 }
  0x68   :  { %244 = vmatmul.f32.gmra.mxu0 %v150_v59  ;;  %309 = vmatmul.f32.gmra.mxu1 %v150_v59 }
  0x69   :  { %649 = vmatpush.msra.mxu3 %v810_v42 }
  0x6b   :  { %650 = vmatpush.msra.mxu3 %v813_v45 }
  0x6c   :  { %377 = vmatmul.f32.gmra.mxu2 %v151_v60  ;;  %389 = vmatmul.f32.vlgmr.msra.gmra.mxu3 %v816_v46 }
  0x70   :  { %247 = vmatmul.f32.gmra.mxu0 %v151_v60  ;;  %312 = vmatmul.f32.gmra.mxu1 %v151_v60 }
  0x74   :  { %380 = vmatmul.f32.gmra.mxu2 %v152_v61  ;;  %392 = vmatmul.f32.gmra.mxu3 %v823_v50 }
  0x78   :  { %250 = vmatmul.f32.gmra.mxu0 %v152_v61  ;;  %315 = vmatmul.f32.gmra.mxu1 %v152_v61 }
  0x7c   :  { %383 = vmatmul.f32.gmra.mxu2 %v153_v62  ;;  %395 = vmatmul.f32.gmra.mxu3 %v830_v52 }
  0x80   :  { %253 = vmatmul.f32.gmra.mxu0 %v153_v62  ;;  %318 = vmatmul.f32.gmra.mxu1 %v153_v62 }
  0x84   :  { %386 = vmatmul.f32.gmra.mxu2 %v154_v63  ;;  %398 = vmatmul.f32.gmra.mxu3 %v837_v54 }
  0x88   :  { %256 = vmatmul.f32.gmra.mxu0 %v154_v63  ;;  %321 = vmatmul.f32.gmra.mxu1 %v154_v63 }
  0xad   :  { %v224_v0 = vpop.f32.mrf.mxu0  ;;  %v289_v1 = vpop.f32.mrf.mxu1 }
  0xae   :  { %549 = vst [vmem:[%s1010_s2] sm:$0xff] %v224_v0 }
  0xaf   :  { %v260_v2 = vpop.f32.mrf.mxu3  ;;  %550 = vst [vmem:[%s1010_s2 + $0x8] sm:$0xff] %v289_v1  ;;  %v354_v3 = vpop.f32.mrf.mxu2 }
  0xb0   :  { %585 = vst [vmem:[%s1010_s2 + $0x120] sm:$0xff] %v260_v2 }
  0xb1   :  { %551 = vst [vmem:[%s1010_s2 + $0x10] sm:$0xff] %v354_v3 }
  0xb5   :  { %v227_v4 = vpop.f32.mrf.mxu0  ;;  %v292_v5 = vpop.f32.mrf.mxu1 }
  0xb6   :  { %552 = vst [vmem:[%s1010_s2 + $0x18] sm:$0xff] %v227_v4 }
  0xb7   :  { %v263_v6 = vpop.f32.mrf.mxu3  ;;  %553 = vst [vmem:[%s1010_s2 + $0x20] sm:$0xff] %v292_v5  ;;  %v357_v7 = vpop.f32.mrf.mxu2 }
  0xb8   :  { %588 = vst [vmem:[%s1010_s2 + $0x138] sm:$0xff] %v263_v6 }
  0xb9   :  { %554 = vst [vmem:[%s1010_s2 + $0x28] sm:$0xff] %v357_v7 }
  0xbd   :  { %v230_v8 = vpop.f32.mrf.mxu0  ;;  %v295_v9 = vpop.f32.mrf.mxu1 }
  0xbe   :  { %555 = vst [vmem:[%s1010_s2 + $0x30] sm:$0xff] %v230_v8 }
  0xbf   :  { %v266_v10 = vpop.f32.mrf.mxu3  ;;  %556 = vst [vmem:[%s1010_s2 + $0x38] sm:$0xff] %v295_v9  ;;  %v360_v11 = vpop.f32.mrf.mxu2 }
  0xc0   :  { %591 = vst [vmem:[%s1010_s2 + $0x150] sm:$0xff] %v266_v10 }
  0xc1   :  { %557 = vst [vmem:[%s1010_s2 + $0x40] sm:$0xff] %v360_v11 }
  0xc5   :  { %v233_v12 = vpop.f32.mrf.mxu0  ;;  %v298_v13 = vpop.f32.mrf.mxu1 }
  0xc6   :  { %558 = vst [vmem:[%s1010_s2 + $0x48] sm:$0xff] %v233_v12 }
  0xc7   :  { %v269_v14 = vpop.f32.mrf.mxu3  ;;  %559 = vst [vmem:[%s1010_s2 + $0x50] sm:$0xff] %v298_v13  ;;  %v363_v15 = vpop.f32.mrf.mxu2 }
  0xc8   :  { %594 = vst [vmem:[%s1010_s2 + $0x168] sm:$0xff] %v269_v14 }
  0xc9   :  { %560 = vst [vmem:[%s1010_s2 + $0x58] sm:$0xff] %v363_v15 }
  0xcd   :  { %v236_v16 = vpop.f32.mrf.mxu0  ;;  %v301_v17 = vpop.f32.mrf.mxu1 }
  0xce   :  { %561 = vst [vmem:[%s1010_s2 + $0x60] sm:$0xff] %v236_v16 }
  0xcf   :  { %562 = vst [vmem:[%s1010_s2 + $0x68] sm:$0xff] %v301_v17  ;;  %v325_v18 = vpop.f32.mrf.mxu3  ;;  %v366_v19 = vpop.f32.mrf.mxu2 }
  0xd0   :  { %586 = vst [vmem:[%s1010_s2 + $0x128] sm:$0xff] %v325_v18 }
  0xd1   :  { %563 = vst [vmem:[%s1010_s2 + $0x70] sm:$0xff] %v366_v19 }
  0xd5   :  { %v239_v20 = vpop.f32.mrf.mxu0  ;;  %v304_v21 = vpop.f32.mrf.mxu1 }
  0xd6   :  { %564 = vst [vmem:[%s1010_s2 + $0x78] sm:$0xff] %v239_v20 }
  0xd7   :  { %565 = vst [vmem:[%s1010_s2 + $0x80] sm:$0xff] %v304_v21  ;;  %v328_v22 = vpop.f32.mrf.mxu3  ;;  %v369_v23 = vpop.f32.mrf.mxu2 }
  0xd8   :  { %589 = vst [vmem:[%s1010_s2 + $0x140] sm:$0xff] %v328_v22 }
  0xd9   :  { %566 = vst [vmem:[%s1010_s2 + $0x88] sm:$0xff] %v369_v23 }
  0xdd   :  { %v242_v24 = vpop.f32.mrf.mxu0  ;;  %v307_v25 = vpop.f32.mrf.mxu1 }
  0xde   :  { %567 = vst [vmem:[%s1010_s2 + $0x90] sm:$0xff] %v242_v24 }
  0xdf   :  { %568 = vst [vmem:[%s1010_s2 + $0x98] sm:$0xff] %v307_v25  ;;  %v331_v26 = vpop.f32.mrf.mxu3  ;;  %v372_v27 = vpop.f32.mrf.mxu2 }
  0xe0   :  { %592 = vst [vmem:[%s1010_s2 + $0x158] sm:$0xff] %v331_v26 }
  0xe1   :  { %569 = vst [vmem:[%s1010_s2 + $0xa0] sm:$0xff] %v372_v27 }
  0xe5   :  { %v245_v28 = vpop.f32.mrf.mxu0  ;;  %v310_v29 = vpop.f32.mrf.mxu1 }
  0xe6   :  { %570 = vst [vmem:[%s1010_s2 + $0xa8] sm:$0xff] %v245_v28 }
  0xe7   :  { %571 = vst [vmem:[%s1010_s2 + $0xb0] sm:$0xff] %v310_v29  ;;  %v334_v30 = vpop.f32.mrf.mxu3  ;;  %v375_v31 = vpop.f32.mrf.mxu2 }
  0xe8   :  { %595 = vst [vmem:[%s1010_s2 + $0x170] sm:$0xff] %v334_v30 }
  0xe9   :  { %572 = vst [vmem:[%s1010_s2 + $0xb8] sm:$0xff] %v375_v31 }
  0xed   :  { %v248_v32 = vpop.f32.mrf.mxu0  ;;  %v313_v33 = vpop.f32.mrf.mxu1 }
  0xee   :  { %573 = vst [vmem:[%s1010_s2 + $0xc0] sm:$0xff] %v248_v32 }
  0xef   :  { %574 = vst [vmem:[%s1010_s2 + $0xc8] sm:$0xff] %v313_v33  ;;  %v378_v34 = vpop.f32.mrf.mxu2  ;;  %v390_v35 = vpop.f32.mrf.mxu3 }
  0xf0   :  { %575 = vst [vmem:[%s1010_s2 + $0xd0] sm:$0xff] %v378_v34 }
  0xf1   :  { %587 = vst [vmem:[%s1010_s2 + $0x130] sm:$0xff] %v390_v35 }
  0xf5   :  { %v251_v36 = vpop.f32.mrf.mxu0  ;;  %v316_v37 = vpop.f32.mrf.mxu1 }
  0xf6   :  { %576 = vst [vmem:[%s1010_s2 + $0xd8] sm:$0xff] %v251_v36 }
  0xf7   :  { %577 = vst [vmem:[%s1010_s2 + $0xe0] sm:$0xff] %v316_v37  ;;  %v381_v38 = vpop.f32.mrf.mxu2  ;;  %v393_v39 = vpop.f32.mrf.mxu3 }
  0xf8   :  { %578 = vst [vmem:[%s1010_s2 + $0xe8] sm:$0xff] %v381_v38 }
  0xf9   :  { %590 = vst [vmem:[%s1010_s2 + $0x148] sm:$0xff] %v393_v39 }
  0xfd   :  { %v254_v40 = vpop.f32.mrf.mxu0  ;;  %v319_v41 = vpop.f32.mrf.mxu1 }
  0xfe   :  { %579 = vst [vmem:[%s1010_s2 + $0xf0] sm:$0xff] %v254_v40 }
  0xff   :  { %580 = vst [vmem:[%s1010_s2 + $0xf8] sm:$0xff] %v319_v41  ;;  %v384_v42 = vpop.f32.mrf.mxu2  ;;  %v396_v43 = vpop.f32.mrf.mxu3 }
 0x100   :  { %581 = vst [vmem:[%s1010_s2 + $0x100] sm:$0xff] %v384_v42 }
 0x101   :  { %593 = vst [vmem:[%s1010_s2 + $0x160] sm:$0xff] %v396_v43 }
 0x105   :  { %v257_v44 = vpop.f32.mrf.mxu0  ;;  %v322_v45 = vpop.f32.mrf.mxu1 }
 0x106   :  { %582 = vst [vmem:[%s1010_s2 + $0x108] sm:$0xff] %v257_v44 }
 0x107   :  { %583 = vst [vmem:[%s1010_s2 + $0x110] sm:$0xff] %v322_v45  ;;  %v387_v46 = vpop.f32.mrf.mxu2  ;;  %v399_v47 = vpop.f32.mrf.mxu3 }
 0x108   :  { %584 = vst [vmem:[%s1010_s2 + $0x118] sm:$0xff] %v387_v46 }
 0x109   :  { %596 = vst [vmem:[%s1010_s2 + $0x178] sm:$0xff] %v399_v47 }
 0x10a   :  { %601 = vsyncpa [#allocation4], 1 }
 0x10b   :  { %602 = vsyncpa [#allocation6], 1 }

// kernel: attention_forward.4
= control target key start
LH: loop header
LB: loop body
LE: loop exit
PB: predicated region body
PF: predicated region fallthrough
CT: control target
= control target key end

     0   :  { %s3479_s12 = smov 0   ;;  %s3481_s13 = smov 0   ;;  %s5105_s0 = inlined_call_operand.vmem [shape: f32[2,64,384], index: 0, kind: input, shape index: {}, may-alias: {0,1,2}]   ;;  %s5106_s1 = inlined_call_operand.vmem [shape: f32[2,64,384], index: 1, kind: input, shape index: {}, may-alias: {0,1,2}]   ;;  %s5107_s2 = inlined_call_operand.vmem [shape: f32[2,64,384], index: 2, kind: input, shape index: {}, may-alias: {0,1,2}]   ;;  %s5108_s3 = inlined_call_operand.vmem [shape: f32[2,64,128], index: 3, kind: output, shape index: {}]  }
   0x1   :  { %s3483_s14 = smov 0   ;;  %s3485_s15 = smov 0  }
   0x2   :  { %s3487_s16 = smov 0  }
   0x3 LB: > { %s32_s17 = sadd.s32 1, %s3447_s15  ;;  %p48_p1 = scmp.ne.s32.totalorder %s3439_s13, %s3435_s12  ;;  %s3451_s16 = sphi %s3487_s16, %s13_s16   ;;  %s3447_s15 = sphi %s3485_s15, %s5134_s15   ;;  %s3443_s14 = sphi %s3483_s14, %s5133_s14   ;;  %s3439_s13 = sphi %s3481_s13, %s5132_s13   ;;  %s3435_s12 = sphi %s3479_s12, %s5131_s12  }
   0x4   : > { %p34_p0 = scmp.ge.s32.totalorder %s32_s17, 2  ;;  %p49_p2 = scmp.eq.s32.totalorder %s3451_s16, 0 }
   0x5   : > { %s41_s20 = sadd.s32 1, %s3439_s13  ;;  %p2959_p5 = scmp.ge.s32.totalorder %s3451_s16, 2 }
   0x6   : > { %s5136_s17 = smov (%p34_p0, %s32_s17), 0  ;;  %p3510_p3 = por %p49_p2, %p48_p1 }
   0x7   : > { %s36_s19 = ssub.s32 %s3447_s15, %s5136_s17  ;;  %158 = sbr.rel (%p2959_p5) target bundleno = 51 (0x33), region = 16 }
   0x8   : > { %p39_p4 = scmp.eq.s32.totalorder %s36_s19, 0 }
   0xa   : > { %s3518_s21 = scalar_select %p39_p4, %s3439_s13, %s41_s20  }
   0xc   : > { %161 = sbr.rel (!%p3510_p3) target bundleno = 25 (0x19), region = 20  ;;  %s163_s22 = sand.u32 (%p3510_p3), 1, %s3439_s13  }
   0xd   : > { %s3103_s23 = smul.u32 (%p3510_p3), 192, %s3447_s15  ;;  %s2960_s24 = sshll.u32 (%p3510_p3), %s163_s22, 6 }
   0xe   : > { %s165_s28 = scalar_lea.vmem (%p3510_p3), [#allocation5], %s2960_s24 }
   0xf   : > { %s171_s27 = scalar_lea.vmem (%p3510_p3), %s5105_s0, %s3103_s23 }
  0x10   : > { %v214_v0 = vld [vmem:[%s171_s27] sm:$0xff] (%p3510_p3)  ;;  %v216_v1 = vld [vmem:[%s171_s27 + $0x18] sm:$0xff] (%p3510_p3)  ;;  %v218_v2 = vld [vmem:[%s171_s27 + $0x30] sm:$0xff] (%p3510_p3) }
  0x11   : > { %215 = vst [vmem:[%s165_s28] sm:$0xff] %v214_v0  ;;  %v220_v3 = vld [vmem:[%s171_s27 + $0x48] sm:$0xff]  ;;  %v222_v4 = vld [vmem:[%s171_s27 + $0x60] sm:$0xff]  ;;  %v224_v5 = vld [vmem:[%s171_s27 + $0x78] sm:$0xff] }
  0x12   : > { %217 = vst [vmem:[%s165_s28 + $0x8] sm:$0xff] %v216_v1  ;;  %v226_v6 = vld [vmem:[%s171_s27 + $0x90] sm:$0xff]  ;;  %v228_v7 = vld [vmem:[%s171_s27 + $0xa8] sm:$0xff] }
  0x13   : > { %219 = vst [vmem:[%s165_s28 + $0x10] sm:$0xff] %v218_v2 }
  0x14   : > { %221 = vst [vmem:[%s165_s28 + $0x18] sm:$0xff] %v220_v3 }
  0x15   : > { %223 = vst [vmem:[%s165_s28 + $0x20] sm:$0xff] %v222_v4 }
  0x16   : > { %225 = vst [vmem:[%s165_s28 + $0x28] sm:$0xff] %v224_v5 }
  0x17   : > { %227 = vst [vmem:[%s165_s28 + $0x30] sm:$0xff] %v226_v6 }
  0x18   : > { %229 = vst [vmem:[%s165_s28 + $0x38] sm:$0xff] %v228_v7 }
  0x19 PF: > { %235 = sbr.rel (!%p3510_p3) target bundleno = 38 (0x26), region = 58  ;;  %s237_s29 = sand.u32 (%p3510_p3), 1, %s3439_s13  }
  0x1a   : > { %s2963_s30 = smul.u32 (%p3510_p3), 192, %s3447_s15  ;;  %s2962_s4 = sshll.u32 (%p3510_p3), %s237_s29, 6 }
  0x1b   : > { %s239_s8 = scalar_lea.vmem (%p3510_p3), [#allocation6], %s2962_s4 }
  0x1c   : > { %s2862_s7 = scalar_lea.vmem (%p3510_p3), %s5106_s1, %s2963_s30 }
  0x1d   : > { %v2964_v8 = vld [vmem:[%s2862_s7 + $0x8] sm:$0xff] (%p3510_p3)  ;;  %v2965_v9 = vld [vmem:[%s2862_s7 + $0x20] sm:$0xff] (%p3510_p3)  ;;  %v2966_v10 = vld [vmem:[%s2862_s7 + $0x38] sm:$0xff] (%p3510_p3) }
  0x1e   : > { %290 = vst [vmem:[%s239_s8] sm:$0xff] %v2964_v8  ;;  %v2967_v11 = vld [vmem:[%s2862_s7 + $0x50] sm:$0xff]  ;;  %v2968_v12 = vld [vmem:[%s2862_s7 + $0x68] sm:$0xff]  ;;  %v2969_v13 = vld [vmem:[%s2862_s7 + $0x80] sm:$0xff] }
  0x1f   : > { %292 = vst [vmem:[%s239_s8 + $0x8] sm:$0xff] %v2965_v9  ;;  %v2970_v14 = vld [vmem:[%s2862_s7 + $0x98] sm:$0xff]  ;;  %v2971_v15 = vld [vmem:[%s2862_s7 + $0xb0] sm:$0xff] }
  0x20   : > { %294 = vst [vmem:[%s239_s8 + $0x10] sm:$0xff] %v2966_v10 }
  0x21   : > { %296 = vst [vmem:[%s239_s8 + $0x18] sm:$0xff] %v2967_v11 }
  0x22   : > { %298 = vst [vmem:[%s239_s8 + $0x20] sm:$0xff] %v2968_v12 }
  0x23   : > { %300 = vst [vmem:[%s239_s8 + $0x28] sm:$0xff] %v2969_v13 }
  0x24   : > { %302 = vst [vmem:[%s239_s8 + $0x30] sm:$0xff] %v2970_v14 }
  0x25   : > { %304 = vst [vmem:[%s239_s8 + $0x38] sm:$0xff] %v2971_v15 }
  0x26 PF: > { %310 = sbr.rel (!%p3510_p3) target bundleno = 51 (0x33), region = 96  ;;  %s312_s9 = sand.u32 (%p3510_p3), 1, %s3439_s13  }
  0x27   : > { %s2973_s10 = smul.u32 (%p3510_p3), 192, %s3447_s15  ;;  %s2972_s11 = sshll.u32 (%p3510_p3), %s312_s9, 6 }
  0x28   : > { %s314_s23 = scalar_lea.vmem (%p3510_p3), [#allocation7], %s2972_s11 }
  0x29   : > { %s2870_s22 = scalar_lea.vmem (%p3510_p3), %s5107_s2, %s2973_s10 }
  0x2a   : > { %v2974_v16 = vld [vmem:[%s2870_s22 + $0x10] sm:$0xff] (%p3510_p3)  ;;  %v2975_v17 = vld [vmem:[%s2870_s22 + $0x28] sm:$0xff] (%p3510_p3)  ;;  %v2976_v18 = vld [vmem:[%s2870_s22 + $0x40] sm:$0xff] (%p3510_p3) }
  0x2b   : > { %365 = vst [vmem:[%s314_s23] sm:$0xff] %v2974_v16  ;;  %v2977_v19 = vld [vmem:[%s2870_s22 + $0x58] sm:$0xff]  ;;  %v2978_v20 = vld [vmem:[%s2870_s22 + $0x70] sm:$0xff]  ;;  %v2979_v21 = vld [vmem:[%s2870_s22 + $0x88] sm:$0xff] }
  0x2c   : > { %367 = vst [vmem:[%s314_s23 + $0x8] sm:$0xff] %v2975_v17  ;;  %v2980_v22 = vld [vmem:[%s2870_s22 + $0xa0] sm:$0xff]  ;;  %v2981_v23 = vld [vmem:[%s2870_s22 + $0xb8] sm:$0xff] }
  0x2d   : > { %369 = vst [vmem:[%s314_s23 + $0x10] sm:$0xff] %v2976_v18 }
  0x2e   : > { %371 = vst [vmem:[%s314_s23 + $0x18] sm:$0xff] %v2977_v19 }
  0x2f   : > { %373 = vst [vmem:[%s314_s23 + $0x20] sm:$0xff] %v2978_v20 }
  0x30   : > { %375 = vst [vmem:[%s314_s23 + $0x28] sm:$0xff] %v2979_v21 }
  0x31   : > { %377 = vst [vmem:[%s314_s23 + $0x30] sm:$0xff] %v2980_v22 }
  0x32   : > { %379 = vst [vmem:[%s314_s23 + $0x38] sm:$0xff] %v2981_v23 }
  0x33 PF: > { %p2982_p6 = scmp.ge.s32.totalorder %s3451_s16, 1  ;;  %p384_p7 = scmp.lt.s32.totalorder %s3451_s16, 3 }
  0x35   : > { %p385_p8 = pnand %p2982_p6, %p384_p7 }
  0x37   : > { %388 = sbr.rel (%p385_p8) target bundleno = 1919 (0x77f), region = 134 }
  0x3c   : > { %s391_s18 = sand.u32 1, %s3435_s12   ;;  %vm522_vm0 = vcmask 261120   ;;  %s3453_s12 = smov 96   ;;  %vm685_vm1 = vcmask 523264   ;;  %vm457_vm2 = vcmask 7168   ;;  %vm2802_vm3 = vcmask 785408  }
  0x3d   : > { %s3545_s24 = sshll.u32 %s391_s18, 6  ;;  %s3454_s28 = smov 64  }
  0x3e   : > { %s3548_s25 = scalar_lea.vmem [#allocation5], %s3545_s24  ;;  %s3564_s26 = scalar_lea.vmem [#allocation6], %s3545_s24 }
  0x3f   : > { %v557_v24 = vld [vmem:[%s3548_s25 + $0x10] sm:$0xff]  ;;  %v556_v25 = vld [vmem:[%s3548_s25 + $0x8] sm:$0xff]  ;;  %v555_v28 = vld [vmem:[%s3548_s25] sm:$0xff]  ;;  %s3611_s27 = scalar_lea.vmem [#allocation7], %s3545_s24  ;;  %s3455_s29 = smov 32  }
  0x40   : > { %v3552_v26 = vmul.f32 0.17677669, %v557_v24  ;;  %v3554_v27 = vmul.f32 0.17677669, %v556_v25  ;;  %v3561_v29 = vmul.f32 0.17677669, %v555_v28 }
  0x41   : > { %v3567_v30 = vld [vmem:[%s3564_s26 + $0x38] sm:$0xff]  ;;  %v560_v31 = vld [vmem:[%s3548_s25 + $0x28] sm:$0xff]  ;;  %v559_v32 = vld [vmem:[%s3548_s25 + $0x20] sm:$0xff]  ;;  %p444_p9 = scmp.lt.s32.totalorder %s3443_s14, 1 }
  0x42   : > { %1012 = vrot.lane.b32.xlu0 %v3552_v26, %s3453_s12  ;;  %1010 = vrot.lane.b32.xlu1 %v3554_v27, %s3453_s12  ;;  %v3576_v33 = vld [vmem:[%s3564_s26 + $0x30] sm:$0xff]  ;;  %v558_v34 = vld [vmem:[%s3548_s25 + $0x18] sm:$0xff]  ;;  %v3579_v35 = vmul.f32 0.17677669, %v560_v31  ;;  %v3581_v36 = vmul.f32 0.17677669, %v559_v32 }
  0x43   : > { %2988 = vmatpush.xpose.msk.msra.mxu0 %vm522_vm0, %v3567_v30  ;;  %1008 = vrot.lane.b32.xlu2 %v3561_v29, %s3453_s12  ;;  %v3585_v37 = vmul.f32 0.17677669, %v558_v34  ;;  %v3588_v38 = vld [vmem:[%s3564_s26 + $0x28] sm:$0xff]  ;;  %v562_v39 = vld [vmem:[%s3548_s25 + $0x38] sm:$0xff]  ;;  %v3600_v40 = vld [vmem:[%s3564_s26 + $0x20] sm:$0xff]  ;;  %s5138_s14 = smov (!%p444_p9, %s3443_s14), 1 }
  0x44   : > { %v561_v41 = vld [vmem:[%s3548_s25 + $0x30] sm:$0xff]  ;;  %v3603_v42 = vmul.f32 0.17677669, %v562_v39  ;;  %v3606_v43 = vld [vmem:[%s3564_s26] sm:$0xff]  ;;  %v586_v44 = vld [vmem:[%s3611_s27 + $0x38] sm:$0xff]  ;;  %s3086_s30 = sshll.u32 %s5138_s14, 6 }
  0x45   : > { %v3614_v45 = vmul.f32 0.17677669, %v561_v41  ;;  %951 = vmatpush.msra.mxu1 %v586_v44  ;;  %v3621_v46 = vld [vmem:[%s3564_s26 + $0x18] sm:$0xff]  ;;  %v585_v47 = vld [vmem:[%s3611_s27 + $0x30] sm:$0xff]  ;;  %v584_v48 = vld [vmem:[%s3611_s27 + $0x28] sm:$0xff]  ;;  %s5051_s6 = scalar_lea.vmem %s5108_s3, %s3086_s30 }
  0x46   : > { %v3630_v49 = vld [vmem:[%s3564_s26 + $0x10] sm:$0xff]  ;;  %v583_v50 = vld [vmem:[%s3611_s27 + $0x20] sm:$0xff]  ;;  %v3636_v51 = vld [vmem:[%s3564_s26 + $0x8] sm:$0xff]  ;;  %v3165_v58 = vpack.i.bf16 %v586_v44, %v585_v47 }
  0x47   : > { %2989 = vmatpush.xpose.msk.msra.mxu0 %vm522_vm0, %v3576_v33  ;;  %952 = vmatpush.msra.mxu1 %v585_v47  ;;  %v582_v52 = vld [vmem:[%s3611_s27 + $0x18] sm:$0xff]  ;;  %v581_v53 = vld [vmem:[%s3611_s27 + $0x10] sm:$0xff]  ;;  %v580_v54 = vld [vmem:[%s3611_s27 + $0x8] sm:$0xff]  ;;  %v3160_v56 = vpack.i.bf16 %v584_v48, %v583_v50 }
  0x48   : > { %v579_v55 = vld [vmem:[%s3611_s27] sm:$0xff]  ;;  %v3155_v59 = vpack.i.bf16 %v582_v52, %v581_v53 }
  0x49   : > { %953 = vmatpush.msra.mxu1 %v584_v48  ;;  %v3150_v57 = vpack.i.bf16 %v580_v54, %v579_v55 }
  0x4a   : > { %1018 = vrot.lane.b32.xlu0 %v3579_v35, %s3453_s12  ;;  %1016 = vrot.lane.b32.xlu1 %v3581_v36, %s3453_s12 }
  0x4b   : > { %2990 = vmatpush.xpose.msk.msra.mxu0 %vm522_vm0, %v3588_v38  ;;  %1014 = vrot.lane.b32.xlu2 %v3585_v37, %s3453_s12 }
  0x4c   : > { %954 = vmatpush.msra.mxu1 %v583_v50 }
  0x4e   : > { %955 = vmatpush.msra.mxu1 %v582_v52 }
  0x4f   : > { %2991 = vmatpush.xpose.msk.msra.mxu0 %vm522_vm0, %v3600_v40 }
  0x50   : > { %956 = vmatpush.msra.mxu1 %v581_v53 }
  0x52   : > { %1024 = vrot.lane.b32.xlu0 %v3606_v43, %s3453_s12  ;;  %1022 = vrot.lane.b32.xlu1 %v3603_v42, %s3453_s12 }
  0x53   : > { %2992 = vmatpush.xpose.msk.msra.mxu0 %vm522_vm0, %v3621_v46  ;;  %1020 = vrot.lane.b32.xlu2 %v3614_v45, %s3453_s12 }
  0x54   : > { %957 = vmatpush.msra.mxu1 %v580_v54 }
  0x56   : > { %958 = vmatpush.msra.mxu1 %v579_v55 }
  0x57   : > { %2993 = vmatpush.xpose.msk.msra.mxu0 %vm522_vm0, %v3630_v49 }
  0x5a   : > { %1030 = vrot.lane.b32.xlu0 %v3621_v46, %s3453_s12  ;;  %1028 = vrot.lane.b32.xlu1 %v3630_v49, %s3453_s12 }
  0x5b   : > { %2994 = vmatpush.xpose.msk.msra.mxu0 %vm522_vm0, %v3636_v51  ;;  %1026 = vrot.lane.b32.xlu2 %v3636_v51, %s3453_s12 }
  0x5f   : > { %2995 = vmatpush.xpose.msk.msra.mxu0 %vm522_vm0, %v3606_v43 }
  0x62   : > { %1036 = vrot.lane.b32.xlu0 %v3576_v33, %s3453_s12  ;;  %1034 = vrot.lane.b32.xlu1 %v3588_v38, %s3453_s12 }
  0x63   : > { %2996 = vmatmul.msk.f32.vlgmr.msra.gmra.mxu0 %vm522_vm0, %v3561_v29  ;;  %1032 = vrot.lane.b32.xlu2 %v3600_v40, %s3453_s12 }
  0x6a   : > { %3161 = vrot.lane.b32.xlu0 %v3160_v56, %s3453_s12  ;;  %3151 = vrot.lane.b32.xlu1 %v3150_v57, %s3453_s12 }
  0x6b   : > { %2997 = vmatmul.msk.f32.gmra.mxu0 %vm522_vm0, %v3554_v27  ;;  %1038 = vrot.lane.b32.xlu2 %v3567_v30, %s3453_s12 }
  0x72   : > { %1479 = vrot.lane.b32.xlu0 %v3554_v27, %s3454_s28  ;;  %3166 = vrot.lane.b32.xlu1 %v3165_v58, %s3453_s12 }
  0x73   : > { %2998 = vmatmul.msk.f32.gmra.mxu0 %vm522_vm0, %v3552_v26  ;;  %3156 = vrot.lane.b32.xlu2 %v3155_v59, %s3453_s12 }
  0x7a   : > { %1485 = vrot.lane.b32.xlu0 %v3581_v36, %s3454_s28  ;;  %1481 = vrot.lane.b32.xlu1 %v3552_v26, %s3454_s28 }
  0x7b   : > { %2999 = vmatmul.msk.f32.gmra.mxu0 %vm522_vm0, %v3585_v37  ;;  %1477 = vrot.lane.b32.xlu2 %v3561_v29, %s3454_s28 }
  0x82   : > { %1491 = vrot.lane.b32.xlu0 %v3603_v42, %s3454_s28  ;;  %1487 = vrot.lane.b32.xlu1 %v3579_v35, %s3454_s28 }
  0x83   : > { %3000 = vmatmul.msk.f32.gmra.mxu0 %vm522_vm0, %v3581_v36  ;;  %1483 = vrot.lane.b32.xlu2 %v3585_v37, %s3454_s28 }
  0x8a   : > { %1497 = vrot.lane.b32.xlu0 %v3630_v49, %s3454_s28  ;;  %1493 = vrot.lane.b32.xlu1 %v3606_v43, %s3454_s28 }
  0x8b   : > { %3001 = vmatmul.msk.f32.gmra.mxu0 %vm522_vm0, %v3579_v35  ;;  %1489 = vrot.lane.b32.xlu2 %v3614_v45, %s3454_s28 }
  0x92   : > { %1503 = vrot.lane.b32.xlu0 %v3588_v38, %s3454_s28  ;;  %1499 = vrot.lane.b32.xlu1 %v3621_v46, %s3454_s28 }
  0x93   : > { %3002 = vmatmul.msk.f32.gmra.mxu0 %vm522_vm0, %v3614_v45  ;;  %1495 = vrot.lane.b32.xlu2 %v3636_v51, %s3454_s28 }
  0x9a   : > { %3171 = vrot.lane.b32.xlu0 %v3150_v57, %s3454_s28  ;;  %1505 = vrot.lane.b32.xlu1 %v3576_v33, %s3454_s28 }
  0x9b   : > { %3003 = vmatmul.msk.f32.gmra.mxu0 %vm522_vm0, %v3603_v42  ;;  %1501 = vrot.lane.b32.xlu2 %v3600_v40, %s3454_s28 }
  0x9d   : > { %v3711_v60 = vpop.permute.xlu2 %1008 }
  0xa2   : > { %3186 = vrot.lane.b32.xlu0 %v3165_v58, %s3454_s28  ;;  %3176 = vrot.lane.b32.xlu1 %v3155_v59, %s3454_s28  ;;  %v3456_v58 = vmov -inf  }
  0xa3   : > { %1507 = vrot.lane.b32.xlu2 %v3567_v30, %s3454_s28  ;;  %458 = vst.msk [vmem:[#allocation2] sm:$0xff] %vm457_vm2, %v3456_v58 }
  0xa4   : > { %459 = vst.msk [vmem:[#allocation2 + $0x8] sm:$0xff] %vm457_vm2, %v3456_v58 }
  0xa5   : > { %v3717_v61 = vpop.permute.xlu2 %1014  ;;  %460 = vst.msk [vmem:[#allocation2 + $0x10] sm:$0xff] %vm457_vm2, %v3456_v58 }
  0xa6   : > { %461 = vst.msk [vmem:[#allocation2 + $0x18] sm:$0xff] %vm457_vm2, %v3456_v58 }
  0xa7   : > { %462 = vst.msk [vmem:[#allocation2 + $0x20] sm:$0xff] %vm457_vm2, %v3456_v58 }
  0xa8   : > { %463 = vst.msk [vmem:[#allocation2 + $0x28] sm:$0xff] %vm457_vm2, %v3456_v58 }
  0xa9   : > { %464 = vst.msk [vmem:[#allocation2 + $0x30] sm:$0xff] %vm457_vm2, %v3456_v58 }
  0xaa   : > { %1964 = vrot.lane.b32.xlu0 %v3588_v38, %s3455_s29  ;;  %1968 = vrot.lane.b32.xlu1 %v3567_v30, %s3455_s29  ;;  %465 = vst.msk [vmem:[#allocation2 + $0x38] sm:$0xff] %vm457_vm2, %v3456_v58 }
  0xab   : > { %3181 = vrot.lane.b32.xlu2 %v3160_v56, %s3454_s28  ;;  %466 = vst.msk [vmem:[#allocation2 + $0x40] sm:$0xff] %vm457_vm2, %v3456_v58 }
  0xac   : > { %467 = vst.msk [vmem:[#allocation2 + $0x48] sm:$0xff] %vm457_vm2, %v3456_v58 }
  0xad   : > { %v3724_v62 = vpop.permute.xlu2 %1020  ;;  %468 = vst.msk [vmem:[#allocation2 + $0x50] sm:$0xff] %vm457_vm2, %v3456_v58 }
  0xae   : > { %469 = vst.msk [vmem:[#allocation2 + $0x58] sm:$0xff] %vm457_vm2, %v3456_v58 }
  0xaf   : > { %470 = vst.msk [vmem:[#allocation2 + $0x60] sm:$0xff] %vm457_vm2, %v3456_v58 }
  0xb0   : > { %471 = vst.msk [vmem:[#allocation2 + $0x68] sm:$0xff] %vm457_vm2, %v3456_v58 }
  0xb1   : > { %472 = vst.msk [vmem:[#allocation2 + $0x70] sm:$0xff] %vm457_vm2, %v3456_v58 }
  0xb2   : > { %1960 = vrot.lane.b32.xlu0 %v3621_v46, %s3455_s29  ;;  %1962 = vrot.lane.b32.xlu1 %v3600_v40, %s3455_s29  ;;  %473 = vst.msk [vmem:[#allocation2 + $0x78] sm:$0xff] %vm457_vm2, %v3456_v58 }
  0xb3   : > { %1966 = vrot.lane.b32.xlu2 %v3576_v33, %s3455_s29  ;;  %474 = vst.msk [vmem:[#allocation2 + $0x80] sm:$0xff] %vm457_vm2, %v3456_v58 }
  0xb4   : > { %v3730_v63 = vpop.permute.xlu0 %1012  ;;  %v3732_v0 = vpop.permute.xlu1 %1010  ;;  %475 = vst.msk [vmem:[#allocation2 + $0x88] sm:$0xff] %vm457_vm2, %v3456_v58 }
  0xb5   : > { %v1027_v1 = vpop.permute.xlu2 %1026  ;;  %476 = vst.msk [vmem:[#allocation2 + $0x90] sm:$0xff] %vm457_vm2, %v3456_v58 }
  0xb6   : > { %477 = vst.msk [vmem:[#allocation2 + $0x98] sm:$0xff] %vm457_vm2, %v3456_v58 }
  0xb7   : > { %478 = vst.msk [vmem:[#allocation2 + $0xa0] sm:$0xff] %vm457_vm2, %v3456_v58 }
  0xb8   : > { %479 = vst.msk [vmem:[#allocation2 + $0xa8] sm:$0xff] %vm457_vm2, %v3456_v58 }
  0xb9   : > { %480 = vst.msk [vmem:[#allocation2 + $0xb0] sm:$0xff] %vm457_vm2, %v3456_v58 }
  0xba   : > { %1940 = vrot.lane.b32.xlu0 %v3554_v27, %s3455_s29  ;;  %1958 = vrot.lane.b32.xlu1 %v3630_v49, %s3455_s29  ;;  %481 = vst.msk [vmem:[#allocation2 + $0xb8] sm:$0xff] %vm457_vm2, %v3456_v58 }
  0xbb   : > { %1938 = vrot.lane.b32.xlu2 %v3561_v29, %s3455_s29  ;;  %482 = vst.msk [vmem:[#allocation2 + $0xc0] sm:$0xff] %vm457_vm2, %v3456_v58 }
  0xbc   : > { %v3740_v2 = vpop.permute.xlu0 %1018  ;;  %v3742_v3 = vpop.permute.xlu1 %1016  ;;  %483 = vst.msk [vmem:[#allocation2 + $0xc8] sm:$0xff] %vm457_vm2, %v3456_v58 }
  0xbd   : > { %v1033_v4 = vpop.permute.xlu2 %1032  ;;  %484 = vst.msk [vmem:[#allocation2 + $0xd0] sm:$0xff] %vm457_vm2, %v3456_v58 }
  0xbe   : > { %485 = vst.msk [vmem:[#allocation2 + $0xd8] sm:$0xff] %vm457_vm2, %v3456_v58 }
  0xbf   : > { %486 = vst.msk [vmem:[#allocation2 + $0xe0] sm:$0xff] %vm457_vm2, %v3456_v58 }
  0xc0   : > { %487 = vst.msk [vmem:[#allocation2 + $0xe8] sm:$0xff] %vm457_vm2, %v3456_v58 }
  0xc1   : > { %488 = vst.msk [vmem:[#allocation2 + $0xf0] sm:$0xff] %vm457_vm2, %v3456_v58 }
  0xc2   : > { %1944 = vrot.lane.b32.xlu0 %v3585_v37, %s3455_s29  ;;  %1954 = vrot.lane.b32.xlu1 %v3606_v43, %s3455_s29  ;;  %489 = vst.msk [vmem:[#allocation2 + $0xf8] sm:$0xff] %vm457_vm2, %v3456_v58 }
  0xc3   : > { %1956 = vrot.lane.b32.xlu2 %v3636_v51, %s3455_s29 }
  0xc4   : > { %v1025_v5 = vpop.permute.xlu0 %1024  ;;  %v3750_v6 = vpop.permute.xlu1 %1022 }
  0xc5   : > { %v1039_v7 = vpop.permute.xlu2 %1038 }
  0xc6   : > { %3012 = vmatpush.xpose.msk.msra.mxu2 %vm522_vm0, %v1039_v7 }
  0xca   : > { %1950 = vrot.lane.b32.xlu0 %v3614_v45, %s3455_s29  ;;  %1946 = vrot.lane.b32.xlu1 %v3581_v36, %s3455_s29 }
  0xcb   : > { %1942 = vrot.lane.b32.xlu2 %v3552_v26, %s3455_s29 }
  0xcc   : > { %v1031_v8 = vpop.permute.xlu0 %1030  ;;  %v1029_v9 = vpop.permute.xlu1 %1028 }
  0xcd   : > { %v3157_v10 = vpop.permute.xlu2 %3156 }
  0xce   : > { %v3159_v27 = vunpack.i.h.bf16 %v3157_v10  ;;  %v3158_v29 = vunpack.i.l.bf16 %v3157_v10 }
  0xd2   : > { %1952 = vrot.lane.b32.xlu1 %v3603_v42, %s3455_s29 }
  0xd3   : > { %1948 = vrot.lane.b32.xlu2 %v3579_v35, %s3455_s29 }
  0xd4   : > { %v1037_v11 = vpop.permute.xlu0 %1036  ;;  %v1035_v12 = vpop.permute.xlu1 %1034 }
  0xd5   : > { %3013 = vmatpush.xpose.msk.msra.mxu2 %vm522_vm0, %v1037_v11  ;;  %v3766_v13 = vpop.permute.xlu2 %1477 }
  0xd9   : > { %3014 = vmatpush.xpose.msk.msra.mxu2 %vm522_vm0, %v1035_v12 }
  0xdc   : > { %v3162_v14 = vpop.permute.xlu0 %3161  ;;  %v3152_v15 = vpop.permute.xlu1 %3151 }
  0xdd   : > { %3015 = vmatpush.xpose.msk.msra.mxu2 %vm522_vm0, %v1033_v4  ;;  %v3770_v16 = vpop.permute.xlu2 %1483  ;;  %v3164_v22 = vunpack.i.h.bf16 %v3162_v14  ;;  %v3163_v23 = vunpack.i.l.bf16 %v3162_v14  ;;  %v3154_v30 = vunpack.i.h.bf16 %v3152_v15  ;;  %v3153_v32 = vunpack.i.l.bf16 %v3152_v15 }
  0xe0   : > { %v3779_v24 = vpop.f32.mrf.mxu0 }
  0xe1   : > { %3016 = vmatpush.xpose.msk.msra.mxu2 %vm522_vm0, %v1031_v8  ;;  %v686_v31 = vsel %vm685_vm1, %v3779_v24, -inf }
  0xe4   : > { %v3773_v17 = vpop.permute.xlu0 %1479  ;;  %v3167_v18 = vpop.permute.xlu1 %3166 }
  0xe5   : > { %3017 = vmatpush.xpose.msk.msra.mxu2 %vm522_vm0, %v1029_v9  ;;  %v3169_v19 = vunpack.i.h.bf16 %v3167_v18  ;;  %v3776_v20 = vpop.permute.xlu2 %1489  ;;  %v3168_v21 = vunpack.i.l.bf16 %v3167_v18  ;;  %v3457_v18 = vmov 0  }
  0xe6   : > { %3191 = vset.pattern.permute.xlu0 %v3457_v18  ;;  %3192 = vset.pattern.permute.xlu1 %v3457_v18 }
  0xe7   : > { %1420 = vmatpush.msra.mxu3 %v3169_v19  ;;  %3190 = vset.pattern.permute.xlu2 %v3457_v18 }
  0xe8   : > { %v3796_v35 = vpop.f32.mrf.mxu0 }
  0xe9   : > { %3018 = vmatpush.xpose.msk.msra.mxu2 %vm522_vm0, %v1027_v1  ;;  %1421 = vmatpush.msra.mxu3 %v3168_v21  ;;  %v689_v37 = vsel %vm685_vm1, %v3796_v35, -inf }
  0xeb   : > { %1422 = vmatpush.msra.mxu3 %v3164_v22 }
  0xec   : > { %v3781_v25 = vpop.permute.xlu0 %1485  ;;  %v3783_v26 = vpop.permute.xlu1 %1481 }
  0xed   : > { %3019 = vmatpush.xpose.msk.msra.mxu2 %vm522_vm0, %v1025_v5  ;;  %1423 = vmatpush.msra.mxu3 %v3163_v23  ;;  %v3786_v28 = vpop.permute.xlu2 %1495 }
  0xef   : > { %1424 = vmatpush.msra.mxu3 %v3159_v27  ;;  %v677_v27 = vld [vmem:[#allocation2] sm:$0xff] }
  0xf0   : > { %3020 = vmatmul.msk.f32.vlgmr.msra.gmra.mxu2 %vm522_vm0, %v3711_v60  ;;  %v3802_v41 = vpop.f32.mrf.mxu0 }
  0xf1   : > { %1425 = vmatpush.msra.mxu3 %v3158_v29  ;;  %v692_v42 = vsel %vm685_vm1, %v3802_v41, -inf }
  0xf3   : > { %1426 = vmatpush.msra.mxu3 %v3154_v30 }
  0xf4   : > { %v3792_v33 = vpop.permute.xlu0 %1491  ;;  %v3794_v34 = vpop.permute.xlu1 %1487  ;;  %687 = vmax.xlane.f32.xlu0 %v686_v31  ;;  %v3954_v31 = vld [vmem:[#allocation2 + $0x8] sm:$0xff] }
  0xf5   : > { %1427 = vmatpush.msra.mxu3 %v3153_v32  ;;  %v1502_v36 = vpop.permute.xlu2 %1501 }
  0xf8   : > { %3021 = vmatmul.msk.f32.gmra.mxu2 %vm522_vm0, %v3732_v0  ;;  %v3822_v56 = vpop.f32.mrf.mxu0 }
  0xf9   : > { %v695_v57 = vsel %vm685_vm1, %v3822_v56, -inf }
  0xfc   : > { %v1498_v38 = vpop.permute.xlu0 %1497  ;;  %v1494_v39 = vpop.permute.xlu1 %1493  ;;  %690 = vmax.xlane.f32.xlu0 %v689_v37  ;;  %693 = vmax.xlane.f32.xlu1 %v692_v42 }
  0xfd   : > { %v1508_v40 = vpop.permute.xlu2 %1507 }
  0xfe   : > { %3036 = vmatpush.xpose.msk.msrb.mxu1 %vm522_vm0, %v1508_v40  ;;  %v3966_v40 = vld [vmem:[#allocation2 + $0x10] sm:$0xff] }
 0x100   : > { %3022 = vmatmul.msk.f32.gmra.mxu2 %vm522_vm0, %v3730_v63  ;;  %v3855_v1 = vpop.f32.mrf.mxu0 }
 0x104   : > { %v1504_v43 = vpop.permute.xlu0 %1503  ;;  %v1500_v44 = vpop.permute.xlu1 %1499  ;;  %696 = vmax.xlane.f32.xlu1 %v695_v57  ;;  %v3996_v57 = vld [vmem:[#allocation2 + $0x18] sm:$0xff] }
 0x105   : > { %v3182_v47 = vpop.permute.xlu2 %3181 }
 0x106   : > { %v3184_v52 = vunpack.i.h.bf16 %v3182_v47  ;;  %v3183_v53 = vunpack.i.l.bf16 %v3182_v47 }
 0x108   : > { %3023 = vmatmul.msk.f32.gmra.mxu2 %vm522_vm0, %v3717_v61 }
 0x10c   : > { %v3172_v45 = vpop.permute.xlu0 %3171  ;;  %v1506_v46 = vpop.permute.xlu1 %1505 }
 0x10d   : > { %3037 = vmatpush.xpose.msk.msrb.mxu1 %vm522_vm0, %v1506_v46  ;;  %v3830_v59 = vpop.permute.xlu2 %1966  ;;  %v3174_v61 = vunpack.i.h.bf16 %v3172_v45 }
 0x110   : > { %3024 = vmatmul.msk.f32.gmra.mxu2 %vm522_vm0, %v3742_v3 }
 0x111   : > { %3038 = vmatpush.xpose.msk.msrb.mxu1 %vm522_vm0, %v1504_v43 }
 0x114   : > { %v3187_v48 = vpop.permute.xlu0 %3186  ;;  %v3177_v49 = vpop.permute.xlu1 %3176 }
 0x115   : > { %3039 = vmatpush.xpose.msk.msrb.mxu1 %vm522_vm0, %v1502_v36  ;;  %v3189_v50 = vunpack.i.h.bf16 %v3187_v48  ;;  %v3188_v51 = vunpack.i.l.bf16 %v3187_v48  ;;  %v3179_v55 = vunpack.i.h.bf16 %v3177_v49  ;;  %v3178_v60 = vunpack.i.l.bf16 %v3177_v49  ;;  %v1939_v3 = vpop.permute.xlu2 %1938 }
 0x117   : > { %1881 = vmatpush.msrb.mxu3 %v3189_v50 }
 0x118   : > { %3025 = vmatmul.msk.f32.gmra.mxu2 %vm522_vm0, %v3740_v2  ;;  %v698_v2 = vsel %vm685_vm1, %v3855_v1, -inf }
 0x119   : > { %3040 = vmatpush.xpose.msk.msrb.mxu1 %vm522_vm0, %v1500_v44  ;;  %1882 = vmatpush.msrb.mxu3 %v3188_v51 }
 0x11a   : > { %699 = vmax.xlane.f32.xlu2 %v698_v2 }
 0x11b   : > { %1883 = vmatpush.msrb.mxu3 %v3184_v52 }
 0x11c   : > { %v3819_v54 = vpop.permute.xlu1 %1968  ;;  %v3840_v63 = vpop.permute.xlu0 %1964 }
 0x11d   : > { %3041 = vmatpush.xpose.msk.msrb.mxu1 %vm522_vm0, %v1498_v38  ;;  %1884 = vmatpush.msrb.mxu3 %v3183_v53  ;;  %v3903_v7 = vpop.permute.xlu2 %1956 }
 0x11e   : > { %3060 = vmatpush.xpose.msk.msrb.mxu0 %vm522_vm0, %v3819_v54 }
 0x11f   : > { %1885 = vmatpush.msrb.mxu3 %v3179_v55 }
 0x120   : > { %3026 = vmatmul.msk.f32.gmra.mxu2 %vm522_vm0, %v3724_v62  ;;  %v3173_v62 = vunpack.i.l.bf16 %v3172_v45 }
 0x121   : > { %3042 = vmatpush.xpose.msk.msrb.mxu1 %vm522_vm0, %v3786_v28  ;;  %1886 = vmatpush.msrb.mxu3 %v3178_v60 }
 0x122   : > { %3061 = vmatpush.xpose.msk.msrb.mxu0 %vm522_vm0, %v3830_v59 }
 0x123   : > { %1887 = vmatpush.msrb.mxu3 %v3174_v61 }
 0x124   : > { %v3850_v0 = vpop.permute.xlu1 %1962  ;;  %v3877_v4 = vpop.permute.xlu0 %1960 }
 0x125   : > { %3043 = vmatpush.xpose.msk.msrb.mxu1 %vm522_vm0, %v1494_v39  ;;  %1888 = vmatpush.msrb.mxu3 %v3173_v62  ;;  %v1943_v21 = vpop.permute.xlu2 %1942 }
 0x126   : > { %3062 = vmatpush.xpose.msk.msrb.mxu0 %vm522_vm0, %v3840_v63 }
 0x128   : > { %3027 = vmatmul.msk.f32.gmra.mxu2 %vm522_vm0, %v3750_v6  ;;  %v3885_v6 = vpop.f32.mrf.mxu0 }
 0x129   : > { %v701_v12 = vsel %vm685_vm1, %v3885_v6, -inf }
 0x12a   : > { %3063 = vmatpush.xpose.msk.msrb.mxu0 %vm522_vm0, %v3850_v0  ;;  %702 = vmax.xlane.f32.xlu2 %v701_v12 }
 0x12c   : > { %v3883_v5 = vpop.permute.xlu1 %1958  ;;  %v1941_v11 = vpop.permute.xlu0 %1940 }
 0x12d   : > { %v1949_v38 = vpop.permute.xlu2 %1948 }
 0x12e   : > { %3064 = vmatpush.xpose.msk.msrb.mxu0 %vm522_vm0, %v3877_v4 }
 0x130   : > { %v3909_v8 = vpop.f32.mrf.mxu0 }
 0x131   : > { %v704_v9 = vsel %vm685_vm1, %v3909_v8, -inf }
 0x132   : > { %3065 = vmatpush.xpose.msk.msrb.mxu0 %vm522_vm0, %v3883_v5  ;;  %705 = vmax.xlane.f32.xlu0 %v704_v9 }
 0x134   : > { %v3919_v10 = vpop.permute.xlu1 %1954  ;;  %v1945_v19 = vpop.permute.xlu0 %1944 }
 0x136   : > { %3066 = vmatpush.xpose.msk.msrb.mxu0 %vm522_vm0, %v3903_v7 }
 0x138   : > { %v3941_v14 = vpop.f32.mrf.mxu0 }
 0x139   : > { %v707_v15 = vsel %vm685_vm1, %v3941_v14, -inf }
 0x13a   : > { %3067 = vmatpush.xpose.msk.msrb.mxu0 %vm522_vm0, %v3919_v10  ;;  %708 = vmax.xlane.f32.xlu1 %v707_v15 }
 0x13c   : > { %v1951_v22 = vpop.permute.xlu0 %1950  ;;  %v1947_v23 = vpop.permute.xlu1 %1946 }
 0x13d   : > { %3068 = vmatmul.msk.f32.vlgmr.msrb.gmra.mxu0 %vm522_vm0, %v1939_v3  ;;  %v3458_v3 = vmov 0.0  }
 0x13e   : > { %523 = vst.msk [vmem:[#allocation4] sm:$0xff] %vm522_vm0, %v3458_v3 }
 0x13f   : > { %490 = vst.msk [vmem:[#allocation3] sm:$0xff] %vm457_vm2, %v3458_v3 }
 0x140   : > { %491 = vst.msk [vmem:[#allocation3 + $0x8] sm:$0xff] %vm457_vm2, %v3458_v3 }
 0x141   : > { %492 = vst.msk [vmem:[#allocation3 + $0x10] sm:$0xff] %vm457_vm2, %v3458_v3 }
 0x142   : > { %493 = vst.msk [vmem:[#allocation3 + $0x18] sm:$0xff] %vm457_vm2, %v3458_v3 }
 0x143   : > { %494 = vst.msk [vmem:[#allocation3 + $0x20] sm:$0xff] %vm457_vm2, %v3458_v3 }
 0x144   : > { %v3951_v30 = vpop.permute.xlu1 %1952  ;;  %495 = vst.msk [vmem:[#allocation3 + $0x28] sm:$0xff] %vm457_vm2, %v3458_v3 }
 0x145   : > { %3069 = vmatmul.msk.f32.gmra.mxu0 %vm522_vm0, %v1941_v11  ;;  %496 = vst.msk [vmem:[#allocation3 + $0x30] sm:$0xff] %vm457_vm2, %v3458_v3  ;;  %v4029_v11 = vld [vmem:[#allocation2 + $0x20] sm:$0xff] }
 0x146   : > { %497 = vst.msk [vmem:[#allocation3 + $0x38] sm:$0xff] %vm457_vm2, %v3458_v3 }
 0x147   : > { %498 = vst.msk [vmem:[#allocation3 + $0x40] sm:$0xff] %vm457_vm2, %v3458_v3 }
 0x148   : > { %499 = vst.msk [vmem:[#allocation3 + $0x48] sm:$0xff] %vm457_vm2, %v3458_v3 }
 0x149   : > { %500 = vst.msk [vmem:[#allocation3 + $0x50] sm:$0xff] %vm457_vm2, %v3458_v3 }
 0x14a   : > { %501 = vst.msk [vmem:[#allocation3 + $0x58] sm:$0xff] %vm457_vm2, %v3458_v3 }
 0x14b   : > { %502 = vst.msk [vmem:[#allocation3 + $0x60] sm:$0xff] %vm457_vm2, %v3458_v3 }
 0x14c   : > { %503 = vst.msk [vmem:[#allocation3 + $0x68] sm:$0xff] %vm457_vm2, %v3458_v3 }
 0x14d   : > { %3070 = vmatmul.msk.f32.gmra.mxu0 %vm522_vm0, %v1943_v21  ;;  %504 = vst.msk [vmem:[#allocation3 + $0x70] sm:$0xff] %vm457_vm2, %v3458_v3  ;;  %v4054_v21 = vld [vmem:[#allocation2 + $0x30] sm:$0xff] }
 0x14e   : > { %505 = vst.msk [vmem:[#allocation3 + $0x78] sm:$0xff] %vm457_vm2, %v3458_v3 }
 0x14f   : > { %506 = vst.msk [vmem:[#allocation3 + $0x80] sm:$0xff] %vm457_vm2, %v3458_v3 }
 0x150   : > { %507 = vst.msk [vmem:[#allocation3 + $0x88] sm:$0xff] %vm457_vm2, %v3458_v3 }
 0x151   : > { %508 = vst.msk [vmem:[#allocation3 + $0x90] sm:$0xff] %vm457_vm2, %v3458_v3 }
 0x152   : > { %509 = vst.msk [vmem:[#allocation3 + $0x98] sm:$0xff] %vm457_vm2, %v3458_v3 }
 0x153   : > { %510 = vst.msk [vmem:[#allocation3 + $0xa0] sm:$0xff] %vm457_vm2, %v3458_v3 }
 0x154   : > { %511 = vst.msk [vmem:[#allocation3 + $0xa8] sm:$0xff] %vm457_vm2, %v3458_v3 }
 0x155   : > { %3071 = vmatmul.msk.f32.gmra.mxu0 %vm522_vm0, %v1945_v19  ;;  %512 = vst.msk [vmem:[#allocation3 + $0xb0] sm:$0xff] %vm457_vm2, %v3458_v3 }
 0x156   : > { %513 = vst.msk [vmem:[#allocation3 + $0xb8] sm:$0xff] %vm457_vm2, %v3458_v3 }
 0x157   : > { %514 = vst.msk [vmem:[#allocation3 + $0xc0] sm:$0xff] %vm457_vm2, %v3458_v3 }
 0x158   : > { %515 = vst.msk [vmem:[#allocation3 + $0xc8] sm:$0xff] %vm457_vm2, %v3458_v3 }
 0x159   : > { %516 = vst.msk [vmem:[#allocation3 + $0xd0] sm:$0xff] %vm457_vm2, %v3458_v3 }
 0x15a   : > { %517 = vst.msk [vmem:[#allocation3 + $0xd8] sm:$0xff] %vm457_vm2, %v3458_v3 }
 0x15b   : > { %518 = vst.msk [vmem:[#allocation3 + $0xe0] sm:$0xff] %vm457_vm2, %v3458_v3 }
 0x15c   : > { %519 = vst.msk [vmem:[#allocation3 + $0xe8] sm:$0xff] %vm457_vm2, %v3458_v3 }
 0x15d   : > { %3072 = vmatmul.msk.f32.gmra.mxu0 %vm522_vm0, %v1947_v23  ;;  %520 = vst.msk [vmem:[#allocation3 + $0xf0] sm:$0xff] %vm457_vm2, %v3458_v3 }
 0x15e   : > { %521 = vst.msk [vmem:[#allocation3 + $0xf8] sm:$0xff] %vm457_vm2, %v3458_v3 }
 0x15f   : > { %524 = vst.msk [vmem:[#allocation4 + $0x8] sm:$0xff] %vm522_vm0, %v3458_v3 }
 0x160   : > { %525 = vst.msk [vmem:[#allocation4 + $0x10] sm:$0xff] %vm522_vm0, %v3458_v3 }
 0x161   : > { %526 = vst.msk [vmem:[#allocation4 + $0x18] sm:$0xff] %vm522_vm0, %v3458_v3 }
 0x162   : > { %527 = vst.msk [vmem:[#allocation4 + $0x20] sm:$0xff] %vm522_vm0, %v3458_v3 }
 0x163   : > { %528 = vst.msk [vmem:[#allocation4 + $0x28] sm:$0xff] %vm522_vm0, %v3458_v3 }
 0x164   : > { %529 = vst.msk [vmem:[#allocation4 + $0x30] sm:$0xff] %vm522_vm0, %v3458_v3 }
 0x165   : > { %3073 = vmatmul.msk.f32.gmra.mxu0 %vm522_vm0, %v1949_v38  ;;  %v4071_v38 = vld [vmem:[#allocation2 + $0x38] sm:$0xff]  ;;  %530 = vst.msk [vmem:[#allocation4 + $0x38] sm:$0xff] %vm522_vm0, %v3458_v3 }
 0x166   : > { %531 = vst.msk [vmem:[#allocation4 + $0x40] sm:$0xff] %vm522_vm0, %v3458_v3 }
 0x167   : > { %v688_v28 = vpop.xlane.xlu0 %687  ;;  %532 = vst.msk [vmem:[#allocation4 + $0x48] sm:$0xff] %vm522_vm0, %v3458_v3 }
 0x168   : > { %v3947_v29 = vmax.f32 %v677_v27, %v688_v28  ;;  %533 = vst.msk [vmem:[#allocation4 + $0x50] sm:$0xff] %vm522_vm0, %v3458_v3 }
 0x169   : > { %534 = vst.msk [vmem:[#allocation4 + $0x58] sm:$0xff] %vm522_vm0, %v3458_v3 }
 0x16a   : > { %1000 = vst.msk [vmem:[#allocation2] sm:$0xff] %vm457_vm2, %v3947_v29  ;;  %v718_v47 = vsub.f32 %v677_v27, %v3947_v29  ;;  %v4061_v27 = vld [vmem:[#allocation2 + $0x28] sm:$0xff] }
 0x16b   : > { %535 = vst.msk [vmem:[#allocation4 + $0x60] sm:$0xff] %vm522_vm0, %v3458_v3 }
 0x16c   : > { %v726_v48 = vmul.f32 1.442695, %v718_v47  ;;  %536 = vst.msk [vmem:[#allocation4 + $0x68] sm:$0xff] %vm522_vm0, %v3458_v3 }
 0x16d   : > { %3074 = vmatmul.msk.f32.gmra.mxu0 %vm522_vm0, %v1951_v22  ;;  %537 = vst.msk [vmem:[#allocation4 + $0x70] sm:$0xff] %vm522_vm0, %v3458_v3 }
 0x16e   : > { %3213 = vpow2.f32 %v726_v48  ;;  %538 = vst.msk [vmem:[#allocation4 + $0x78] sm:$0xff] %vm522_vm0, %v3458_v3 }
 0x16f   : > { %v691_v32 = vpop.xlane.xlu0 %690  ;;  %v694_v43 = vpop.xlane.xlu1 %693  ;;  %539 = vst.msk [vmem:[#allocation4 + $0x80] sm:$0xff] %vm522_vm0, %v3458_v3 }
 0x170   : > { %v3957_v36 = vmax.f32 %v3954_v31, %v691_v32  ;;  %v3972_v44 = vmax.f32 %v3966_v40, %v694_v43  ;;  %540 = vst.msk [vmem:[#allocation4 + $0x88] sm:$0xff] %vm522_vm0, %v3458_v3 }
 0x171   : > { %541 = vst.msk [vmem:[#allocation4 + $0x90] sm:$0xff] %vm522_vm0, %v3458_v3 }
 0x172   : > { %v719_v37 = vsub.f32 %v3954_v31, %v3957_v36  ;;  %1001 = vst.msk [vmem:[#allocation2 + $0x8] sm:$0xff] %vm457_vm2, %v3957_v36  ;;  %749 = vperm.xlu0 %3191, %v3957_v36  }
 0x173   : > { %v3964_v39 = vpop.f32.mrf.mxu2  ;;  %1002 = vst.msk [vmem:[#allocation2 + $0x10] sm:$0xff] %vm457_vm2, %v3972_v44 }
 0x174   : > { %v1122_v42 = vsel %vm685_vm1, %v3964_v39, -inf  ;;  %v3984_v50 = vpop.eup %3213  ;;  %542 = vst.msk [vmem:[#allocation4 + $0x98] sm:$0xff] %vm522_vm0, %v3458_v3 }
 0x175   : > { %1123 = vmax.xlane.f32.xlu1 %v1122_v42  ;;  %543 = vst.msk [vmem:[#allocation4 + $0xa0] sm:$0xff] %vm522_vm0, %v3458_v3 }
 0x176   : > { %544 = vst.msk [vmem:[#allocation4 + $0xa8] sm:$0xff] %vm522_vm0, %v3458_v3 }
 0x177   : > { %v697_v58 = vpop.xlane.xlu1 %696  ;;  %545 = vst.msk [vmem:[#allocation4 + $0xb0] sm:$0xff] %vm522_vm0, %v3458_v3 }
 0x178   : > { %v3999_v60 = vmax.f32 %v3996_v57, %v697_v58  ;;  %546 = vst.msk [vmem:[#allocation4 + $0xb8] sm:$0xff] %vm522_vm0, %v3458_v3 }
 0x179   : > { %547 = vst.msk [vmem:[#allocation4 + $0xc0] sm:$0xff] %vm522_vm0, %v3458_v3 }
 0x17a   : > { %1003 = vst.msk [vmem:[#allocation2 + $0x18] sm:$0xff] %vm457_vm2, %v3999_v60 }
 0x17b   : > { %v3978_v46 = vpop.f32.mrf.mxu2  ;;  %548 = vst.msk [vmem:[#allocation4 + $0xc8] sm:$0xff] %vm522_vm0, %v3458_v3 }
 0x17c   : > { %v1125_v55 = vsel %vm685_vm1, %v3978_v46, -inf  ;;  %549 = vst.msk [vmem:[#allocation4 + $0xd0] sm:$0xff] %vm522_vm0, %v3458_v3 }
 0x17d   : > { %550 = vst.msk [vmem:[#allocation4 + $0xd8] sm:$0xff] %vm522_vm0, %v3458_v3 }
 0x17e   : > { %551 = vst.msk [vmem:[#allocation4 + $0xe0] sm:$0xff] %vm522_vm0, %v3458_v3 }
 0x17f   : > { %552 = vst.msk [vmem:[#allocation4 + $0xe8] sm:$0xff] %vm522_vm0, %v3458_v3 }
 0x180   : > { %553 = vst.msk [vmem:[#allocation4 + $0xf0] sm:$0xff] %vm522_vm0, %v3458_v3 }
 0x181   : > { %554 = vst.msk [vmem:[#allocation4 + $0xf8] sm:$0xff] %vm522_vm0, %v3458_v3 }
 0x183   : > { %v3982_v49 = vpop.f32.mrf.mxu2 }
 0x18b   : > { %v3986_v51 = vpop.f32.mrf.mxu2 }
 0x18c   : > { %v1131_v28 = vsel %vm685_vm1, %v3986_v51, -inf }
 0x18d   : > { %v700_v12 = vpop.xlane.xlu2 %699 }
 0x18e   : > { %873 = vperm.xlu1 %3192, %v3984_v50   ;;  %v4034_v15 = vmax.f32 %v4029_v11, %v700_v12 }
 0x190   : > { %1004 = vst.msk [vmem:[#allocation2 + $0x20] sm:$0xff] %vm457_vm2, %v4034_v15 }
 0x193   : > { %v3989_v52 = vpop.f32.mrf.mxu2 }
 0x194   : > { %v1134_v62 = vsel %vm685_vm1, %v3989_v52, -inf }
 0x196   : > { %754 = vperm.xlu1 %3192, %v3972_v44  }
 0x19b   : > { %v3992_v53 = vpop.f32.mrf.mxu2 }
 0x19c   : > { %1126 = vmax.xlane.f32.xlu0 %v1125_v55  ;;  %v721_v55 = vsub.f32 %v3996_v57, %v3999_v60  ;;  %v728_v57 = vmul.f32 1.442695, %v719_v37 }
 0x19d   : > { %v703_v32 = vpop.xlane.xlu2 %702 }
 0x19e   : > { %v4074_v42 = vmax.f32 %v4061_v27, %v703_v32  ;;  %v732_v58 = vmul.f32 1.442695, %v721_v55 }
 0x1a0   : > { %1005 = vst.msk [vmem:[#allocation2 + $0x28] sm:$0xff] %vm457_vm2, %v4074_v42  ;;  %3215 = vpow2.f32 %v732_v58 }
 0x1a1   : > { %3217 = vpow2.f32 %v728_v57  ;;  %v4210_v57 = vld [vmem:[#allocation2 + $0x78] sm:$0xff] }
 0x1a3   : > { %v4001_v61 = vpop.f32.mrf.mxu2 }
 0x1a4   : > { %5117 = vst [vmem:[#allocation8_spill] sm:$0xff] %v4001_v61  ;;  %1135 = vmax.xlane.f32.xlu0 %v1134_v62 }
 0x1a5   : > { %v706_v22 = vpop.xlane.xlu0 %705 }
 0x1a6   : > { %v4059_v23 = vmax.f32 %v4054_v21, %v706_v22  ;;  %v4131_v31 = vpop.eup %3215  ;;  %v1115_v22 = vld [vmem:[#allocation2 + $0x48] sm:$0xff] }
 0x1a7   : > { %v4139_v36 = vpop.eup %3217 }
 0x1a8   : > { %1006 = vst.msk [vmem:[#allocation2 + $0x30] sm:$0xff] %vm457_vm2, %v4059_v23  ;;  %v724_v3 = vsub.f32 %v4054_v21, %v4059_v23 }
 0x1ab   : > { %v4007_v2 = vpop.f32.mrf.mxu2 }
 0x1ac   : > { %5118 = vst [vmem:[#allocation9_spill] sm:$0xff] %v4007_v2  ;;  %v1143_v9 = vsel %vm685_vm1, %v4007_v2, -inf }
 0x1ad   : > { %1144 = vmax.xlane.f32.xlu0 %v1143_v9  ;;  %v709_v43 = vpop.xlane.xlu1 %708  ;;  %v1128_v9 = vsel %vm685_vm1, %v3982_v49, -inf }
 0x1ae   : > { %v4085_v48 = vmax.f32 %v4071_v38, %v709_v43  ;;  %v4200_v43 = vld [vmem:[#allocation2 + $0x60] sm:$0xff] }
 0x1b0   : > { %1007 = vst.msk [vmem:[#allocation2 + $0x38] sm:$0xff] %vm457_vm2, %v4085_v48 }
 0x1ba   : > { %v4046_v18 = vpop.f32.mrf.mxu0 }
 0x1bb   : > { %5119 = vst [vmem:[#allocation10_spill] sm:$0xff] %v4046_v18  ;;  %v2052_v19 = vsel %vm685_vm1, %v4046_v18, -inf  ;;  %v4229_v18 = vld [vmem:[#allocation2 + $0x58] sm:$0xff] }
 0x1bc   : > { %2053 = vmax.xlane.f32.xlu2 %v2052_v19  ;;  %v1140_v19 = vsel %vm685_vm1, %v4001_v61, -inf }
 0x1c0   : > { %1132 = vmax.xlane.f32.xlu1 %v1131_v28 }
 0x1d4   : > { %744 = vperm.xlu2 %3190, %v3947_v29   ;;  %v4170_v29 = vld [vmem:[#allocation2 + $0x40] sm:$0xff] }
 0x1d9   : > { %888 = vperm.xlu1 %3192, %v4131_v31  }
 0x1dc   : > { %878 = vperm.xlu2 %3190, %v4139_v36  }
 0x1e1   : > { %769 = vperm.xlu1 %3192, %v4074_v42  }
 0x1e4   : > { %v750_v12 = vpop.permute.xlu0 %749 }
 0x1e8   : > { %v1124_v37 = vpop.xlane.xlu1 %1123 }
 0x1e9   : > { %v4179_v62 = vmax.f32 %v4170_v29, %v1124_v37 }
 0x1eb   : > { %1469 = vst.msk [vmem:[#allocation2 + $0x40] sm:$0xff] %vm457_vm2, %v4179_v62 }
 0x205   : > { %1129 = vmax.xlane.f32.xlu2 %v1128_v9  ;;  %v738_v9 = vmul.f32 1.442695, %v724_v3  ;;  %v4224_v3 = vld [vmem:[#allocation2 + $0xc0] sm:$0xff] }
 0x206   : > { %5121 = vst [vmem:[#allocation12_spill] sm:$0xff] %v4224_v3 }
 0x207   : > { %3219 = vpow2.f32 %v738_v9 }
 0x20b   : > { %1141 = vmax.xlane.f32.xlu1 %v1140_v19  ;;  %v4212_v19 = vpop.permute.xlu1 %873 }
 0x20d   : > { %v4221_v21 = vpop.eup %3219 }
 0x20e   : > { %5120 = vst [vmem:[#allocation11_spill] sm:$0xff] %v4221_v21 }
 0x20f   : > { %v1127_v28 = vpop.xlane.xlu0 %1126 }
 0x210   : > { %v1147_v32 = vmax.f32 %v1115_v22, %v1127_v28 }
 0x212   : > { %1470 = vst.msk [vmem:[#allocation2 + $0x48] sm:$0xff] %vm457_vm2, %v1147_v32 }
 0x217   : > { %v1136_v55 = vpop.xlane.xlu0 %1135 }
 0x218   : > { %v4203_v58 = vmax.f32 %v4200_v43, %v1136_v55  ;;  %v1155_v55 = vsub.f32 %v1115_v22, %v1147_v32 }
 0x21a   : > { %1473 = vst.msk [vmem:[#allocation2 + $0x60] sm:$0xff] %vm457_vm2, %v4203_v58  ;;  %v1164_v45 = vmul.f32 1.442695, %v1155_v55  ;;  %v783_v55 = vsub.f32 %v3796_v35, %v750_v12  ;;  %v4252_v12 = vpop.f32.mrf.mxu0 }
 0x21c   : > { %3221 = vpow2.f32 %v1164_v45  ;;  %v792_v61 = vmul.f32 1.442695, %v783_v55 }
 0x21d   : > { %759 = vperm.xlu2 %3190, %v3999_v60   ;;  %v755_v60 = vpop.permute.xlu1 %754 }
 0x220   : > { %v1145_v37 = vpop.xlane.xlu0 %1144 }
 0x221   : > { %v4215_v28 = vmax.f32 %v4210_v57, %v1145_v37 }
 0x223   : > { %1476 = vst.msk [vmem:[#allocation2 + $0x78] sm:$0xff] %vm457_vm2, %v4215_v28 }
 0x224   : > { %779 = vperm.xlu1 %3192, %v4085_v48  }
 0x225   : > { %764 = vperm.xlu2 %3190, %v4034_v15  }
 0x22c   : > { %903 = vperm.xlu1 %3192, %v4221_v21  }
 0x22f   : > { %v2054_v47 = vpop.xlane.xlu2 %2053 }
 0x230   : > { %v4227_v37 = vmax.f32 %v4224_v3, %v2054_v47  ;;  %v4239_v3 = vpop.eup %3221 }
 0x232   : > { %5122 = vst [vmem:[#allocation13_spill] sm:$0xff] %v4227_v37 }
 0x233   : > { %2391 = vst.msk [vmem:[#allocation2 + $0xc0] sm:$0xff] %vm457_vm2, %v4227_v37  ;;  %v1133_v9 = vpop.xlane.xlu1 %1132 }
 0x234   : > { %v4234_v2 = vmax.f32 %v4229_v18, %v1133_v9  ;;  %1185 = vperm.xlu1 %3192, %v1147_v32   ;;  %v784_v32 = vsub.f32 %v3802_v41, %v755_v60  ;;  %v1137_v41 = vsel %vm685_vm1, %v3992_v53, -inf }
 0x236   : > { %1472 = vst.msk [vmem:[#allocation2 + $0x58] sm:$0xff] %vm457_vm2, %v4234_v2 }
 0x237   : > { %v745_v22 = vpop.permute.xlu2 %744 }
 0x238   : > { %v782_v21 = vsub.f32 %v3779_v24, %v745_v22  ;;  %v794_v24 = vmul.f32 1.442695, %v784_v32 }
 0x23a   : > { %v790_v47 = vmul.f32 1.442695, %v782_v21 }
 0x23c   : > { %3223 = vpow2.f32 %v790_v47  ;;  %1315 = vperm.xlu1 %3192, %v4239_v3  }
 0x23d   : > { %3225 = vpow2.f32 %v792_v61  ;;  %v2055_v61 = vsel %vm685_vm1, %v4252_v12, -inf }
 0x23e   : > { %3227 = vpow2.f32 %v794_v24 }
 0x242   : > { %v3224_v37 = vpop.eup %3223 }
 0x243   : > { %3004 = vmatmul.msk.f32.vlgmr.msra.gmra.mxu1 %vm685_vm1, %v3224_v37  ;;  %v822_v45 = vsel %vm685_vm1, %v3224_v37, 0.0  ;;  %v4250_v35 = vpop.eup %3225 }
 0x244   : > { %3087 = vmatpush.xpose.msk.msra.mxu1 %vm522_vm0, %v3819_v54  ;;  %823 = vadd.xlane.f32.xlu0 %v822_v45  ;;  %v3228_v54 = vpop.eup %3227 }
 0x248   : > { %3088 = vmatpush.xpose.msk.msra.mxu1 %vm522_vm0, %v3830_v59  ;;  %v5123_v59 = vsub.f32 %v3966_v40, %v3972_v44 }
 0x24a   : > { %v730_v21 = vmul.f32 1.442695, %v5123_v59 }
 0x24b   : > { %3005 = vmatmul.msk.f32.gmra.mxu1 %vm685_vm1, %v4250_v35 }
 0x24c   : > { %3089 = vmatpush.xpose.msk.msra.mxu1 %vm522_vm0, %v3840_v63  ;;  %2056 = vmax.xlane.f32.xlu0 %v2055_v61  ;;  %3229 = vpow2.f32 %v730_v21  ;;  %v722_v63 = vsub.f32 %v4029_v11, %v4034_v15  ;;  %v828_v11 = vsel %vm685_vm1, %v3228_v54, 0.0 }
 0x24e   : > { %1138 = vmax.xlane.f32.xlu2 %v1137_v41 }
 0x250   : > { %3090 = vmatpush.xpose.msk.msra.mxu1 %vm522_vm0, %v3850_v0  ;;  %v734_v0 = vmul.f32 1.442695, %v722_v63 }
 0x252   : > { %v4276_v60 = vpop.eup %3229  ;;  %3231 = vpow2.f32 %v734_v0 }
 0x253   : > { %3006 = vmatmul.msk.f32.gmra.mxu1 %vm685_vm1, %v3228_v54 }
 0x254   : > { %3091 = vmatpush.xpose.msk.msra.mxu1 %vm522_vm0, %v3877_v4  ;;  %v725_v4 = vsub.f32 %v4071_v38, %v4085_v48  ;;  %v4298_v38 = vpop.permute.xlu2 %878  ;;  %v4304_v48 = vld [vmem:[#allocation2 + $0x50] sm:$0xff] }
 0x256   : > { %v740_v44 = vmul.f32 1.442695, %v725_v4 }
 0x258   : > { %3092 = vmatpush.xpose.msk.msra.mxu1 %vm522_vm0, %v3883_v5  ;;  %v5124_v5 = vsub.f32 %v4061_v27, %v4074_v42 }
 0x25a   : > { %v736_v40 = vmul.f32 1.442695, %v5124_v5 }
 0x25c   : > { %3093 = vmatpush.xpose.msk.msra.mxu1 %vm522_vm0, %v3903_v7  ;;  %v4288_v7 = vpop.eup %3231  ;;  %3233 = vpow2.f32 %v736_v40  ;;  %v806_v40 = vld [vmem:[#allocation3] sm:$0xff] }
 0x25d   : > { %3235 = vpow2.f32 %v740_v44 }
 0x260   : > { %3094 = vmatpush.xpose.msk.msra.mxu1 %vm522_vm0, %v3919_v10  ;;  %883 = vperm.xlu0 %3191, %v4276_v60   ;;  %v4291_v10 = vpop.permute.xlu1 %888 }
 0x262   : > { %v4293_v15 = vpop.eup %3233 }
 0x263   : > { %v4296_v27 = vpop.eup %3235 }
 0x266   : > { %774 = vperm.xlu2 %3190, %v4059_v23   ;;  %829 = vadd.xlane.f32.xlu1 %v828_v11  ;;  %v1154_v23 = vsub.f32 %v4170_v29, %v4179_v62  ;;  %v4314_v29 = vld [vmem:[#allocation2 + $0x70] sm:$0xff] }
 0x268   : > { %893 = vperm.xlu0 %3191, %v4288_v7   ;;  %v770_v42 = vpop.permute.xlu1 %769  ;;  %v1162_v37 = vmul.f32 1.442695, %v1154_v23 }
 0x26a   : > { %3237 = vpow2.f32 %v1162_v37 }
 0x26e   : > { %898 = vperm.xlu2 %3190, %v4293_v15  }
 0x270   : > { %908 = vperm.xlu0 %3191, %v4296_v27   ;;  %v4322_v24 = vpop.eup %3237 }
 0x276   : > { %1180 = vperm.xlu2 %3190, %v4179_v62  }
 0x278   : > { %v1130_v9 = vpop.xlane.xlu2 %1129 }
 0x279   : > { %v4307_v22 = vmax.f32 %v4304_v48, %v1130_v9  ;;  %v4345_v9 = vld [vmem:[#allocation2 + $0xc8] sm:$0xff] }
 0x27b   : > { %v1156_v47 = vsub.f32 %v4304_v48, %v4307_v22  ;;  %1471 = vst.msk [vmem:[#allocation2 + $0x50] sm:$0xff] %vm457_vm2, %v4307_v22  ;;  %1190 = vperm.xlu0 %3191, %v4307_v22  }
 0x27e   : > { %v1142_v55 = vpop.xlane.xlu1 %1141 }
 0x27f   : > { %v4317_v62 = vmax.f32 %v4314_v29, %v1142_v55 }
 0x280   : > { %v760_v45 = vpop.permute.xlu2 %759 }
 0x281   : > { %1475 = vst.msk [vmem:[#allocation2 + $0x70] sm:$0xff] %vm457_vm2, %v4317_v62  ;;  %v785_v32 = vsub.f32 %v3822_v56, %v760_v45  ;;  %v787_v56 = vsub.f32 %v3885_v6, %v770_v42  ;;  %v814_v6 = vmul.f32 %v3984_v50, %v806_v40  ;;  %v863_v42 = vld [vmem:[#allocation4] sm:$0xff]  ;;  %v4348_v45 = vld [vmem:[#allocation2 + $0x68] sm:$0xff] }
 0x283   : > { %v796_v61 = vmul.f32 1.442695, %v785_v32  ;;  %1310 = vperm.xlu0 %3191, %v4322_v24   ;;  %v800_v63 = vmul.f32 1.442695, %v787_v56 }
 0x285   : > { %3239 = vpow2.f32 %v796_v61 }
 0x288   : > { %v765_v41 = vpop.permute.xlu2 %764 }
 0x289   : > { %v786_v54 = vsub.f32 %v3855_v1, %v765_v41  ;;  %v825_v1 = vsel %vm685_vm1, %v4250_v35, 0.0  ;;  %v911_v35 = vmul.f32 %v4212_v19, %v863_v42 }
 0x28b   : > { %v798_v59 = vmul.f32 1.442695, %v786_v54  ;;  %1200 = vperm.xlu0 %3191, %v4203_v58   ;;  %v4327_v21 = vpop.eup %3239 }
 0x28c   : > { %3007 = vmatmul.msk.f32.gmra.mxu1 %vm685_vm1, %v4327_v21 }
 0x28d   : > { %3241 = vpow2.f32 %v798_v59  ;;  %v864_v59 = vld [vmem:[#allocation4 + $0x8] sm:$0xff] }
 0x28e   : > { %3243 = vpow2.f32 %v800_v63  ;;  %v912_v19 = vmul.f32 %v4298_v38, %v864_v59 }
 0x293   : > { %v3242_v0 = vpop.eup %3241 }
 0x294   : > { %3008 = vmatmul.msk.f32.gmra.mxu1 %vm685_vm1, %v3242_v0  ;;  %v4333_v4 = vpop.eup %3243  ;;  %v834_v44 = vsel %vm685_vm1, %v3242_v0, 0.0 }
 0x296   : > { %v780_v5 = vpop.permute.xlu1 %779 }
 0x29c   : > { %3009 = vmatmul.msk.f32.gmra.mxu1 %vm685_vm1, %v4333_v4 }
 0x29e   : > { %v4343_v37 = vpop.permute.xlu1 %903 }
 0x29f   : > { %826 = vadd.xlane.f32.xlu2 %v825_v1 }
 0x2a6   : > { %v1186_v56 = vpop.permute.xlu1 %1185 }
 0x2b5   : > { %835 = vadd.xlane.f32.xlu0 %v834_v44 }
 0x2b7   : > { %v824_v11 = vpop.xlane.xlu0 %823  ;;  %1195 = vperm.xlu2 %3190, %v4234_v2  }
 0x2b8   : > { %v846_v23 = vadd.f32 %v824_v11, %v814_v6  ;;  %v789_v6 = vsub.f32 %v3941_v14, %v780_v5  ;;  %v865_v11 = vld [vmem:[#allocation4 + $0x10] sm:$0xff] }
 0x2ba   : > { %855 = vst.msk [vmem:[#allocation3] sm:$0xff] %vm457_vm2, %v846_v23  ;;  %v4367_v23 = vpop.permute.xlu1 %1315  ;;  %v804_v38 = vmul.f32 1.442695, %v789_v6  ;;  %v1219_v6 = vsub.f32 %v3978_v46, %v1186_v56 }
 0x2bf   : > { %v2057_v55 = vpop.xlane.xlu0 %2056 }
 0x2c0   : > { %v4351_v32 = vmax.f32 %v4345_v9, %v2057_v55  ;;  %v960_v50 = vpop.f32.mrf.mxu1 }
 0x2c1   : > { %v984_v61 = vadd.f32 %v960_v50, %v911_v35  ;;  %v1139_v41 = vpop.xlane.xlu2 %1138 }
 0x2c2   : > { %2392 = vst.msk [vmem:[#allocation2 + $0xc8] sm:$0xff] %vm457_vm2, %v4351_v32  ;;  %v4356_v54 = vmax.f32 %v4348_v45, %v1139_v41 }
 0x2c3   : > { %992 = vst.msk [vmem:[#allocation4] sm:$0xff] %vm522_vm0, %v984_v61 }
 0x2c4   : > { %1474 = vst.msk [vmem:[#allocation2 + $0x68] sm:$0xff] %vm457_vm2, %v4356_v54  ;;  %1205 = vperm.xlu1 %3192, %v4356_v54  }
 0x2c8   : > { %v963_v63 = vpop.f32.mrf.mxu1 }
 0x2c9   : > { %v985_v0 = vadd.f32 %v963_v63, %v912_v19  ;;  %v775_v1 = vpop.permute.xlu2 %774  ;;  %1215 = vperm.xlu0 %3191, %v4215_v28  }
 0x2ca   : > { %v788_v40 = vsub.f32 %v3909_v8, %v775_v1  ;;  %v808_v8 = vld [vmem:[#allocation3 + $0x10] sm:$0xff] }
 0x2cb   : > { %993 = vst.msk [vmem:[#allocation4 + $0x8] sm:$0xff] %vm522_vm0, %v985_v0  ;;  %v816_v14 = vmul.f32 %v4276_v60, %v808_v8  ;;  %v831_v60 = vsel %vm685_vm1, %v4327_v21, 0.0  ;;  %v1166_v21 = vmul.f32 1.442695, %v1156_v47 }
 0x2cc   : > { %v802_v44 = vmul.f32 1.442695, %v788_v40 }
 0x2ce   : > { %3245 = vpow2.f32 %v802_v44  ;;  %v4381_v44 = vpop.f32.mrf.mxu0 }
 0x2cf   : > { %3247 = vpow2.f32 %v804_v38 }
 0x2d0   : > { %v966_v61 = vpop.f32.mrf.mxu1 }
 0x2d1   : > { %v4369_v42 = vpop.permute.xlu2 %898 }
 0x2d2   : > { %v884_v35 = vpop.permute.xlu0 %883 }
 0x2d3   : > { %v913_v55 = vmul.f32 %v884_v35, %v865_v11  ;;  %v1228_v11 = vmul.f32 1.442695, %v1219_v6 }
 0x2d4   : > { %v4371_v50 = vpop.eup %3245 }
 0x2d5   : > { %v986_v41 = vadd.f32 %v966_v61, %v913_v55  ;;  %3010 = vmatmul.msk.f32.gmra.mxu1 %vm685_vm1, %v4371_v50  ;;  %v3248_v1 = vpop.eup %3247  ;;  %v837_v55 = vsel %vm685_vm1, %v4333_v4, 0.0 }
 0x2d6   : > { %v4395_v35 = vpop.f32.mrf.mxu0  ;;  %v843_v47 = vsel %vm685_vm1, %v3248_v1, 0.0 }
 0x2d7   : > { %994 = vst.msk [vmem:[#allocation4 + $0x10] sm:$0xff] %vm522_vm0, %v986_v41 }
 0x2d9   : > { %v1181_v5 = vpop.permute.xlu2 %1180  ;;  %v830_v59 = vpop.xlane.xlu1 %829 }
 0x2da   : > { %v1218_v19 = vsub.f32 %v3964_v39, %v1181_v5  ;;  %v848_v63 = vadd.f32 %v830_v59, %v816_v14  ;;  %v4378_v0 = vpop.permute.xlu0 %893  ;;  %v1158_v14 = vsub.f32 %v4200_v43, %v4203_v58  ;;  %v867_v59 = vld [vmem:[#allocation4 + $0x20] sm:$0xff]  ;;  %v1161_v43 = vsub.f32 %v4210_v57, %v4215_v28 }
 0x2db   : > { %v915_v58 = vmul.f32 %v4378_v0, %v867_v59 }
 0x2dc   : > { %v1226_v40 = vmul.f32 1.442695, %v1218_v19  ;;  %857 = vst.msk [vmem:[#allocation3 + $0x10] sm:$0xff] %vm457_vm2, %v848_v63  ;;  %v807_v19 = vld [vmem:[#allocation3 + $0x8] sm:$0xff] }
 0x2dd   : > { %3011 = vmatmul.msk.f32.gmra.mxu1 %vm685_vm1, %v3248_v1  ;;  %v815_v63 = vmul.f32 %v4139_v36, %v807_v19 }
 0x2de   : > { %3249 = vpow2.f32 %v1226_v40  ;;  %v4409_v41 = vpop.f32.mrf.mxu0 }
 0x2df   : > { %3251 = vpow2.f32 %v1228_v11  ;;  %v2064_v48 = vsel %vm685_vm1, %v4409_v41, -inf }
 0x2e0   : > { %832 = vadd.xlane.f32.xlu2 %v831_v60  ;;  %3253 = vpow2.f32 %v1166_v21  ;;  %v1176_v60 = vmul.f32 1.442695, %v1161_v43  ;;  %v868_v21 = vld [vmem:[#allocation4 + $0x28] sm:$0xff] }
 0x2e1   : > { %v916_v36 = vmul.f32 %v4369_v42, %v868_v21 }
 0x2e2   : > { %v4389_v38 = vpop.permute.xlu0 %908 }
 0x2e4   : > { %v4387_v39 = vpop.eup %3249 }
 0x2e5   : > { %3028 = vmatmul.msk.f32.vlgmr.msra.gmra.mxu3 %vm685_vm1, %v4387_v39  ;;  %3044 = vmatmul.msk.f32.vlgmr.msrb.gmra.mxu1 %vm522_vm0, %v3766_v13  ;;  %v4397_v46 = vpop.eup %3251 }
 0x2e6   : > { %v4415_v22 = vpop.eup %3253 }
 0x2ed   : > { %v1191_v56 = vpop.permute.xlu0 %1190  ;;  %3029 = vmatmul.msk.f32.gmra.mxu3 %vm685_vm1, %v4397_v46  ;;  %3045 = vmatmul.msk.f32.gmra.mxu1 %vm522_vm0, %v3773_v17 }
 0x2ee   : > { %v1220_v13 = vsub.f32 %v3982_v49, %v1191_v56  ;;  %838 = vadd.xlane.f32.xlu1 %v837_v55  ;;  %v1159_v49 = vsub.f32 %v4348_v45, %v4356_v54  ;;  %v866_v54 = vld [vmem:[#allocation4 + $0x18] sm:$0xff] }
 0x2f0   : > { %v1230_v61 = vmul.f32 1.442695, %v1220_v13  ;;  %v1172_v4 = vmul.f32 1.442695, %v1159_v49 }
 0x2f2   : > { %3255 = vpow2.f32 %v1230_v61 }
 0x2f3   : > { %2065 = vmax.xlane.f32.xlu0 %v2064_v48  ;;  %3257 = vpow2.f32 %v1172_v4  ;;  %v810_v48 = vld [vmem:[#allocation3 + $0x20] sm:$0xff] }
 0x2f5   : > { %3046 = vmatmul.msk.f32.gmra.mxu1 %vm522_vm0, %v3783_v26  ;;  %v1157_v26 = vsub.f32 %v4229_v18, %v4234_v2  ;;  %v1170_v18 = vmul.f32 1.442695, %v1158_v14 }
 0x2f7   : > { %v1168_v8 = vmul.f32 1.442695, %v1157_v26 }
 0x2f8   : > { %v4417_v17 = vpop.eup %3255  ;;  %1320 = vperm.xlu2 %3190, %v4415_v22  }
 0x2f9   : > { %3030 = vmatmul.msk.f32.gmra.mxu3 %vm685_vm1, %v4417_v17  ;;  %v4432_v45 = vpop.eup %3257  ;;  %3259 = vpow2.f32 %v1168_v8 }
 0x2fa   : > { %3261 = vpow2.f32 %v1170_v18 }
 0x2fb   : > { %844 = vadd.xlane.f32.xlu0 %v843_v47  ;;  %3263 = vpow2.f32 %v1176_v60 }
 0x2fd   : > { %3047 = vmatmul.msk.f32.gmra.mxu1 %vm522_vm0, %v3770_v16  ;;  %v914_v16 = vmul.f32 %v4291_v10, %v866_v54  ;;  %v4447_v10 = vpop.permute.xlu0 %1310  ;;  %v4484_v54 = vpop.f32.mrf.mxu0 }
 0x2fe   : > { %v2067_v14 = vsel %vm685_vm1, %v4484_v54, -inf }
 0x300   : > { %1210 = vperm.xlu2 %3190, %v4317_v62  }
 0x305   : > { %3048 = vmatmul.msk.f32.gmra.mxu1 %vm522_vm0, %v3781_v25  ;;  %v4441_v25 = vpop.eup %3259  ;;  %v1201_v55 = vpop.permute.xlu0 %1200 }
 0x306   : > { %v4453_v11 = vpop.eup %3261  ;;  %v1222_v61 = vsub.f32 %v3989_v52, %v1201_v55  ;;  %v840_v52 = vsel %vm685_vm1, %v4371_v50, 0.0 }
 0x307   : > { %1335 = vperm.xlu1 %3192, %v4432_v45  }
 0x308   : > { %v1234_v42 = vmul.f32 1.442695, %v1222_v61 }
 0x309   : > { %v969_v5 = vpop.f32.mrf.mxu1 }
 0x30a   : > { %v987_v2 = vadd.f32 %v969_v5, %v914_v16 }
 0x30c   : > { %995 = vst.msk [vmem:[#allocation4 + $0x18] sm:$0xff] %vm522_vm0, %v987_v2  ;;  %v1259_v2 = vsel %vm685_vm1, %v4387_v39, 0.0  ;;  %v870_v39 = vld [vmem:[#allocation4 + $0x38] sm:$0xff] }
 0x30d   : > { %3049 = vmatmul.msk.f32.gmra.mxu1 %vm522_vm0, %v3794_v34 }
 0x30f   : > { %1325 = vperm.xlu0 %3191, %v4441_v25  }
 0x311   : > { %v972_v1 = vpop.f32.mrf.mxu1 }
 0x312   : > { %v827_v40 = vpop.xlane.xlu2 %826  ;;  %v988_v6 = vadd.f32 %v972_v1, %v915_v58  ;;  %v918_v1 = vmul.f32 %v4389_v38, %v870_v39  ;;  %v4508_v38 = vld [vmem:[#allocation2 + $0xe0] sm:$0xff] }
 0x313   : > { %v847_v34 = vadd.f32 %v827_v40, %v815_v63  ;;  %v5125_v40 = vld [vmem:[#allocation13_spill] sm:$0xff] }
 0x314   : > { %996 = vst.msk [vmem:[#allocation4 + $0x20] sm:$0xff] %vm522_vm0, %v988_v6 }
 0x315   : > { %3050 = vmatmul.msk.f32.gmra.mxu1 %vm522_vm0, %v3776_v20  ;;  %856 = vst.msk [vmem:[#allocation3 + $0x8] sm:$0xff] %vm457_vm2, %v847_v34  ;;  %v4462_v20 = vpop.eup %3263 }
 0x317   : > { %1330 = vperm.xlu0 %3191, %v4453_v11  }
 0x319   : > { %v975_v57 = vpop.f32.mrf.mxu1 }
 0x31a   : > { %v1196_v28 = vpop.permute.xlu2 %1195  ;;  %v989_v0 = vadd.f32 %v975_v57, %v916_v36 }
 0x31b   : > { %v1221_v56 = vsub.f32 %v3986_v51, %v1196_v28 }
 0x31c   : > { %997 = vst.msk [vmem:[#allocation4 + $0x28] sm:$0xff] %vm522_vm0, %v989_v0  ;;  %v1300_v0 = vld [vmem:[#allocation4 + $0x40] sm:$0xff] }
 0x31d   : > { %v1232_v13 = vmul.f32 1.442695, %v1221_v56  ;;  %3051 = vmatmul.msk.f32.gmra.mxu1 %vm522_vm0, %v3792_v33  ;;  %v818_v33 = vmul.f32 %v4288_v7, %v810_v48  ;;  %v1160_v7 = vsub.f32 %v4314_v29, %v4317_v62  ;;  %v809_v29 = vld [vmem:[#allocation3 + $0x18] sm:$0xff]  ;;  %v5126_v56 = vld [vmem:[#allocation8_spill] sm:$0xff] }
 0x31e   : > { %v817_v19 = vmul.f32 %v4131_v31, %v809_v29 }
 0x31f   : > { %3265 = vpow2.f32 %v1232_v13  ;;  %1345 = vperm.xlu0 %3191, %v4462_v20   ;;  %v1174_v26 = vmul.f32 1.442695, %v1160_v7  ;;  %v1301_v7 = vld [vmem:[#allocation4 + $0x48] sm:$0xff] }
 0x320   : > { %3267 = vpow2.f32 %v1234_v42  ;;  %v1348_v42 = vmul.f32 %v4447_v10, %v1300_v0  ;;  %v1303_v0 = vld [vmem:[#allocation4 + $0x58] sm:$0xff] }
 0x321   : > { %3269 = vpow2.f32 %v1174_v26 }
 0x325   : > { %v4466_v49 = vpop.eup %3265  ;;  %3075 = vmatmul.msk.f32.vlgmr.msra.gmra.mxu1 %vm522_vm0, %v3951_v30  ;;  %v2058_v30 = vsel %vm685_vm1, %v4381_v44, -inf }
 0x326   : > { %3031 = vmatmul.msk.f32.gmra.mxu3 %vm685_vm1, %v4466_v49  ;;  %v4476_v4 = vpop.eup %3267 }
 0x327   : > { %v4489_v5 = vpop.eup %3269 }
 0x328   : > { %v836_v51 = vpop.xlane.xlu0 %835 }
 0x329   : > { %v850_v47 = vadd.f32 %v836_v51, %v818_v33  ;;  %841 = vadd.xlane.f32.xlu2 %v840_v52  ;;  %v5127_v33 = vld [vmem:[#allocation9_spill] sm:$0xff] }
 0x32b   : > { %859 = vst.msk [vmem:[#allocation3 + $0x20] sm:$0xff] %vm457_vm2, %v850_v47  ;;  %v2061_v47 = vsel %vm685_vm1, %v4395_v35, -inf }
 0x32e   : > { %3032 = vmatmul.msk.f32.gmra.mxu3 %vm685_vm1, %v4476_v4 }
 0x331   : > { %2059 = vmax.xlane.f32.xlu1 %v2058_v30  ;;  %v813_v30 = vld [vmem:[#allocation3 + $0x38] sm:$0xff] }
 0x332   : > { %v821_v26 = vmul.f32 %v4296_v27, %v813_v30 }
 0x336   : > { %v1206_v8 = vpop.permute.xlu1 %1205 }
 0x337   : > { %v1223_v50 = vsub.f32 %v3992_v53, %v1206_v8  ;;  %v869_v53 = vld [vmem:[#allocation4 + $0x30] sm:$0xff] }
 0x338   : > { %v917_v62 = vmul.f32 %v4343_v37, %v869_v53  ;;  %v811_v37 = vld [vmem:[#allocation3 + $0x28] sm:$0xff] }
 0x339   : > { %v1236_v16 = vmul.f32 1.442695, %v1223_v50  ;;  %2068 = vmax.xlane.f32.xlu1 %v2067_v14  ;;  %v819_v31 = vmul.f32 %v4293_v15, %v811_v37  ;;  %v4521_v50 = vpop.f32.mrf.mxu0 }
 0x33b   : > { %3271 = vpow2.f32 %v1236_v16  ;;  %v1216_v21 = vpop.permute.xlu0 %1215  ;;  %v1349_v16 = vmul.f32 %v4367_v23, %v1301_v7  ;;  %v1262_v23 = vsel %vm685_vm1, %v4397_v46, 0.0 }
 0x33c   : > { %v1225_v51 = vsub.f32 %v5127_v33, %v1216_v21  ;;  %v4555_v33 = vld [vmem:[#allocation2 + $0xe8] sm:$0xff] }
 0x33e   : > { %v1240_v10 = vmul.f32 1.442695, %v1225_v51 }
 0x341   : > { %v4493_v18 = vpop.eup %3271  ;;  %1260 = vadd.xlane.f32.xlu1 %v1259_v2  ;;  %1340 = vperm.xlu2 %3190, %v4489_v5  }
 0x342   : > { %3033 = vmatmul.msk.f32.gmra.mxu3 %vm685_vm1, %v4493_v18 }
 0x352   : > { %v978_v59 = vpop.f32.mrf.mxu1 }
 0x353   : > { %v990_v43 = vadd.f32 %v978_v59, %v917_v62  ;;  %v833_v58 = vpop.xlane.xlu2 %832  ;;  %v2070_v62 = vsel %vm685_vm1, %v4521_v50, -inf  ;;  %v1302_v59 = vld [vmem:[#allocation4 + $0x50] sm:$0xff] }
 0x354   : > { %v849_v63 = vadd.f32 %v833_v58, %v817_v19 }
 0x355   : > { %998 = vst.msk [vmem:[#allocation4 + $0x30] sm:$0xff] %vm522_vm0, %v990_v43 }
 0x356   : > { %858 = vst.msk [vmem:[#allocation3 + $0x18] sm:$0xff] %vm457_vm2, %v849_v63  ;;  %v1268_v63 = vsel %vm685_vm1, %v4466_v49, 0.0 }
 0x35a   : > { %2110 = vperm.xlu1 %3192, %v5125_v40   ;;  %v981_v6 = vpop.f32.mrf.mxu1 }
 0x35b   : > { %v991_v34 = vadd.f32 %v981_v6, %v918_v1  ;;  %v1321_v60 = vpop.permute.xlu2 %1320 }
 0x35c   : > { %v1350_v19 = vmul.f32 %v1321_v60, %v1302_v59  ;;  %v5128_v60 = vld [vmem:[#allocation11_spill] sm:$0xff] }
 0x35d   : > { %999 = vst.msk [vmem:[#allocation4 + $0x38] sm:$0xff] %vm522_vm0, %v991_v34  ;;  %v812_v34 = vld [vmem:[#allocation3 + $0x30] sm:$0xff] }
 0x35e   : > { %v820_v37 = vmul.f32 %v5128_v60, %v812_v34 }
 0x361   : > { %v839_v36 = vpop.xlane.xlu1 %838 }
 0x362   : > { %v851_v57 = vadd.f32 %v839_v36, %v819_v31  ;;  %v4535_v39 = vpop.f32.mrf.mxu1  ;;  %v4545_v36 = vld [vmem:[#allocation2 + $0xd0] sm:$0xff] }
 0x363   : > { %v1211_v28 = vpop.permute.xlu2 %1210 }
 0x364   : > { %860 = vst.msk [vmem:[#allocation3 + $0x28] sm:$0xff] %vm457_vm2, %v851_v57  ;;  %v1224_v55 = vsub.f32 %v5126_v56, %v1211_v28 }
 0x366   : > { %v1238_v13 = vmul.f32 1.442695, %v1224_v55  ;;  %v2066_v61 = vpop.xlane.xlu0 %2065 }
 0x367   : > { %v4512_v48 = vmax.f32 %v4508_v38, %v2066_v61 }
 0x368   : > { %3273 = vpow2.f32 %v1238_v13  ;;  %v1429_v15 = vpop.f32.mrf.mxu3 }
 0x369   : > { %2395 = vst.msk [vmem:[#allocation2 + $0xe0] sm:$0xff] %vm457_vm2, %v4512_v48  ;;  %v1453_v52 = vadd.f32 %v1429_v15, %v1348_v42  ;;  %3275 = vpow2.f32 %v1240_v10  ;;  %v1304_v15 = vld [vmem:[#allocation4 + $0x60] sm:$0xff] }
 0x36a   : > { %2062 = vmax.xlane.f32.xlu2 %v2061_v47  ;;  %v4538_v6 = vpop.f32.mrf.mxu1  ;;  %v1243_v10 = vld [vmem:[#allocation3 + $0x40] sm:$0xff] }
 0x36b   : > { %1461 = vst.msk [vmem:[#allocation4 + $0x40] sm:$0xff] %vm522_vm0, %v1453_v52  ;;  %v1594_v46 = vsel %vm685_vm1, %v4538_v6, -inf }
 0x36e   : > { %v3274_v8 = vpop.eup %3273  ;;  %v845_v14 = vpop.xlane.xlu0 %844 }
 0x36f   : > { %v853_v2 = vadd.f32 %v845_v14, %v821_v26  ;;  %3034 = vmatmul.msk.f32.gmra.mxu3 %vm685_vm1, %v3274_v8  ;;  %v3276_v27 = vpop.eup %3275  ;;  %v1277_v1 = vsel %vm685_vm1, %v3274_v8, 0.0  ;;  %v1251_v14 = vmul.f32 %v4322_v24, %v1243_v10  ;;  %v1265_v24 = vsel %vm685_vm1, %v4417_v17, 0.0 }
 0x370   : > { %v1432_v53 = vpop.f32.mrf.mxu3  ;;  %v1591_v17 = vsel %vm685_vm1, %v4535_v39, -inf }
 0x371   : > { %862 = vst.msk [vmem:[#allocation3 + $0x38] sm:$0xff] %vm457_vm2, %v853_v2  ;;  %v1454_v29 = vadd.f32 %v1432_v53, %v1349_v16  ;;  %v1271_v53 = vsel %vm685_vm1, %v4476_v4, 0.0  ;;  %v4577_v4 = vld [vmem:[#allocation2 + $0xd8] sm:$0xff] }
 0x372   : > { %2071 = vmax.xlane.f32.xlu2 %v2070_v62  ;;  %v1280_v62 = vsel %vm685_vm1, %v3276_v27, 0.0 }
 0x373   : > { %1462 = vst.msk [vmem:[#allocation4 + $0x48] sm:$0xff] %vm522_vm0, %v1454_v29  ;;  %v1305_v29 = vld [vmem:[#allocation4 + $0x68] sm:$0xff] }
 0x377   : > { %3035 = vmatmul.msk.f32.gmra.mxu3 %vm685_vm1, %v3276_v27  ;;  %v4579_v27 = vpop.f32.mrf.mxu1 }
 0x379   : > { %v1336_v21 = vpop.permute.xlu1 %1335 }
 0x37a   : > { %1263 = vadd.xlane.f32.xlu2 %v1262_v23  ;;  %v1353_v59 = vmul.f32 %v1336_v21, %v1305_v29  ;;  %v1244_v21 = vld [vmem:[#allocation3 + $0x48] sm:$0xff] }
 0x37c   : > { %v1435_v43 = vpop.f32.mrf.mxu3 }
 0x37d   : > { %v1455_v58 = vadd.f32 %v1435_v43, %v1350_v19 }
 0x37f   : > { %1463 = vst.msk [vmem:[#allocation4 + $0x50] sm:$0xff] %vm522_vm0, %v1455_v58  ;;  %v1274_v58 = vsel %vm685_vm1, %v4493_v18, 0.0  ;;  %v4591_v18 = vld [vmem:[#allocation2 + $0xf0] sm:$0xff]  ;;  %v4593_v60 = vpop.f32.mrf.mxu1 }
 0x381   : > { %v1326_v57 = vpop.permute.xlu0 %1325 }
 0x382   : > { %v1351_v13 = vmul.f32 %v1326_v57, %v1303_v0  ;;  %v1306_v57 = vld [vmem:[#allocation4 + $0x70] sm:$0xff] }
 0x384   : > { %1269 = vadd.xlane.f32.xlu1 %v1268_v63 }
 0x389   : > { %v1331_v52 = vpop.permute.xlu0 %1330 }
 0x38a   : > { %v1352_v7 = vmul.f32 %v1331_v52, %v1304_v15  ;;  %v1246_v15 = vld [vmem:[#allocation3 + $0x58] sm:$0xff] }
 0x38b   : > { %v1307_v52 = vld [vmem:[#allocation4 + $0x78] sm:$0xff] }
 0x38c   : > { %1278 = vadd.xlane.f32.xlu1 %v1277_v1 }
 0x392   : > { %2115 = vperm.xlu2 %3190, %v4351_v32  }
 0x394   : > { %1595 = vmax.xlane.f32.xlu1 %v1594_v46 }
 0x39c   : > { %v842_v31 = vpop.xlane.xlu2 %841 }
 0x39d   : > { %v852_v49 = vadd.f32 %v842_v31, %v820_v37  ;;  %v1252_v31 = vmul.f32 %v4239_v3, %v1244_v21  ;;  %v1254_v3 = vmul.f32 %v4441_v25, %v1246_v15  ;;  %v1597_v25 = vsel %vm685_vm1, %v4579_v27, -inf }
 0x39f   : > { %861 = vst.msk [vmem:[#allocation3 + $0x30] sm:$0xff] %vm457_vm2, %v852_v49 }
 0x3a4   : > { %v2060_v28 = vpop.xlane.xlu1 %2059  ;;  %v1341_v43 = vpop.permute.xlu2 %1340 }
 0x3a5   : > { %v4548_v56 = vmax.f32 %v4545_v36, %v2060_v28 }
 0x3a7   : > { %v2086_v55 = vsub.f32 %v4545_v36, %v4548_v56  ;;  %2393 = vst.msk [vmem:[#allocation2 + $0xd0] sm:$0xff] %vm457_vm2, %v4548_v56  ;;  %2120 = vperm.xlu0 %3191, %v4548_v56  }
 0x3a9   : > { %v1438_v61 = vpop.f32.mrf.mxu3 }
 0x3aa   : > { %v1456_v42 = vadd.f32 %v1438_v61, %v1351_v13  ;;  %v4601_v13 = vpop.f32.mrf.mxu1  ;;  %v1354_v61 = vmul.f32 %v1341_v43, %v1306_v57 }
 0x3ab   : > { %v1603_v21 = vsel %vm685_vm1, %v4601_v13, -inf }
 0x3ac   : > { %1464 = vst.msk [vmem:[#allocation4 + $0x58] sm:$0xff] %vm522_vm0, %v1456_v42  ;;  %v2069_v51 = vpop.xlane.xlu1 %2068 }
 0x3ad   : > { %v4559_v47 = vmax.f32 %v4555_v33, %v2069_v51 }
 0x3af   : > { %v2089_v30 = vsub.f32 %v4555_v33, %v4559_v47  ;;  %2396 = vst.msk [vmem:[#allocation2 + $0xe8] sm:$0xff] %vm457_vm2, %v4559_v47 }
 0x3b1   : > { %v1441_v26 = vpop.f32.mrf.mxu3 }
 0x3b2   : > { %v1457_v8 = vadd.f32 %v1441_v26, %v1352_v7  ;;  %v1346_v7 = vpop.permute.xlu0 %1345 }
 0x3b4   : > { %1465 = vst.msk [vmem:[#allocation4 + $0x60] sm:$0xff] %vm522_vm0, %v1457_v8  ;;  %v1261_v16 = vpop.xlane.xlu1 %1260  ;;  %v1355_v8 = vmul.f32 %v1346_v7, %v1307_v52 }
 0x3b5   : > { %v1283_v2 = vadd.f32 %v1261_v16, %v1251_v14  ;;  %v4607_v14 = vpop.f32.mrf.mxu1 }
 0x3b7   : > { %1291 = vst.msk [vmem:[#allocation3 + $0x40] sm:$0xff] %vm457_vm2, %v1283_v2 }
 0x3bb   : > { %1272 = vadd.xlane.f32.xlu2 %v1271_v53  ;;  %v1249_v53 = vld [vmem:[#allocation3 + $0x70] sm:$0xff] }
 0x3bc   : > { %v1257_v29 = vmul.f32 %v4489_v5, %v1249_v53 }
 0x3c3   : > { %1281 = vadd.xlane.f32.xlu2 %v1280_v62 }
 0x3c5   : > { %v1444_v23 = vpop.f32.mrf.mxu3 }
 0x3c6   : > { %v1458_v19 = vadd.f32 %v1444_v23, %v1353_v59  ;;  %v5129_v23 = vld [vmem:[#allocation10_spill] sm:$0xff] }
 0x3c8   : > { %1466 = vst.msk [vmem:[#allocation4 + $0x68] sm:$0xff] %vm522_vm0, %v1458_v19 }
 0x3cc   : > { %v2111_v0 = vpop.permute.xlu1 %2110 }
 0x3cd   : > { %v2148_v19 = vsub.f32 %v5129_v23, %v2111_v0 }
 0x3d1   : > { %1266 = vadd.xlane.f32.xlu0 %v1265_v24  ;;  %v4616_v24 = vpop.f32.mrf.mxu1 }
 0x3d2   : > { %v1609_v7 = vsel %vm685_vm1, %v4616_v24, -inf }
 0x3d9   : > { %1275 = vadd.xlane.f32.xlu0 %v1274_v58  ;;  %v4618_v58 = vld [vmem:[#allocation2 + $0x88] sm:$0xff]  ;;  %v4630_v57 = vpop.f32.mrf.mxu1 }
 0x3db   : > { %2135 = vperm.xlu2 %3190, %v4559_v47  }
 0x3dd   : > { %v2063_v63 = vpop.xlane.xlu2 %2062 }
 0x3de   : > { %v4582_v1 = vmax.f32 %v4577_v4, %v2063_v63  ;;  %v2156_v63 = vmul.f32 1.442695, %v2148_v19 }
 0x3e0   : > { %v2087_v46 = vsub.f32 %v4577_v4, %v4582_v1  ;;  %2394 = vst.msk [vmem:[#allocation2 + $0xd8] sm:$0xff] %vm457_vm2, %v4582_v1  ;;  %2125 = vperm.xlu1 %3192, %v4582_v1   ;;  %3277 = vpow2.f32 %v2156_v63  ;;  %v2405_v1 = vld [vmem:[#allocation3 + $0x18] sm:$0xff] }
 0x3e1   : > { %1592 = vmax.xlane.f32.xlu0 %v1591_v17 }
 0x3e2   : > { %v2098_v33 = vmul.f32 1.442695, %v2087_v46 }
 0x3e5   : > { %v2072_v34 = vpop.xlane.xlu2 %2071 }
 0x3e6   : > { %v4596_v37 = vmax.f32 %v4591_v18, %v2072_v34 }
 0x3e8   : > { %2397 = vst.msk [vmem:[#allocation2 + $0xf0] sm:$0xff] %vm457_vm2, %v4596_v37 }
 0x3ed   : > { %v1264_v49 = vpop.xlane.xlu2 %1263 }
 0x3ee   : > { %v1284_v28 = vadd.f32 %v1264_v49, %v1252_v31  ;;  %v1606_v31 = vsel %vm685_vm1, %v4607_v14, -inf }
 0x3f0   : > { %1292 = vst.msk [vmem:[#allocation3 + $0x48] sm:$0xff] %vm457_vm2, %v1284_v28  ;;  %v4632_v28 = vpop.eup %3277 }
 0x3f1   : > { %v2189_v0 = vsel %vm685_vm1, %v4632_v28, 0.0 }
 0x3f2   : > { %v1447_v42 = vpop.f32.mrf.mxu3 }
 0x3f3   : > { %v1459_v51 = vadd.f32 %v1447_v42, %v1354_v61 }
 0x3f5   : > { %1467 = vst.msk [vmem:[#allocation4 + $0x70] sm:$0xff] %vm522_vm0, %v1459_v51  ;;  %2130 = vperm.xlu0 %3191, %v4512_v48   ;;  %v2116_v43 = vpop.permute.xlu2 %2115  ;;  %v1600_v51 = vsel %vm685_vm1, %v4593_v60, -inf }
 0x3f6   : > { %v2149_v34 = vsub.f32 %v4252_v12, %v2116_v43  ;;  %v1612_v12 = vsel %vm685_vm1, %v4630_v57, -inf  ;;  %v1245_v43 = vld [vmem:[#allocation3 + $0x50] sm:$0xff] }
 0x3f7   : > { %v1270_v10 = vpop.xlane.xlu1 %1269 }
 0x3f8   : > { %v1286_v26 = vadd.f32 %v1270_v10, %v1254_v3  ;;  %v2158_v49 = vmul.f32 1.442695, %v2149_v34  ;;  %v1247_v10 = vld [vmem:[#allocation3 + $0x60] sm:$0xff] }
 0x3fa   : > { %1294 = vst.msk [vmem:[#allocation3 + $0x58] sm:$0xff] %vm457_vm2, %v1286_v26  ;;  %v1450_v16 = vpop.f32.mrf.mxu3  ;;  %3279 = vpow2.f32 %v2158_v49  ;;  %v4647_v26 = vpop.f32.mrf.mxu1 }
 0x3fb   : > { %v1460_v2 = vadd.f32 %v1450_v16, %v1355_v8  ;;  %v1255_v8 = vmul.f32 %v4453_v11, %v1247_v10 }
 0x3fd   : > { %1468 = vst.msk [vmem:[#allocation4 + $0x78] sm:$0xff] %vm522_vm0, %v1460_v2  ;;  %v2073_v2 = vsel %vm685_vm1, %v4647_v26, -inf }
 0x3ff   : > { %v1279_v62 = vpop.xlane.xlu1 %1278 }
 0x400   : > { %v1289_v59 = vadd.f32 %v1279_v62, %v1257_v29  ;;  %v4638_v61 = vpop.eup %3279 }
 0x401   : > { %v2192_v42 = vsel %vm685_vm1, %v4638_v61, 0.0 }
 0x402   : > { %1297 = vst.msk [vmem:[#allocation3 + $0x70] sm:$0xff] %vm457_vm2, %v1289_v59 }
 0x404   : > { %1598 = vmax.xlane.f32.xlu2 %v1597_v25 }
 0x407   : > { %v1596_v17 = vpop.xlane.xlu1 %1595 }
 0x408   : > { %v4622_v5 = vmax.f32 %v4618_v58, %v1596_v17  ;;  %v1253_v17 = vmul.f32 %v4415_v22, %v1245_v43 }
 0x40a   : > { %1931 = vst.msk [vmem:[#allocation2 + $0x88] sm:$0xff] %vm457_vm2, %v4622_v5  ;;  %1604 = vmax.xlane.f32.xlu1 %v1603_v21 }
 0x40c   : > { %1607 = vmax.xlane.f32.xlu2 %v1606_v31 }
 0x412   : > { %1613 = vmax.xlane.f32.xlu1 %v1612_v12 }
 0x414   : > { %2190 = vadd.xlane.f32.xlu2 %v2189_v0 }
 0x419   : > { %v2121_v15 = vpop.permute.xlu0 %2120 }
 0x41a   : > { %2193 = vadd.xlane.f32.xlu1 %v2192_v42  ;;  %v2150_v52 = vsub.f32 %v4381_v44, %v2121_v15  ;;  %v1250_v44 = vld [vmem:[#allocation3 + $0x78] sm:$0xff] }
 0x41b   : > { %v1258_v62 = vmul.f32 %v4462_v20, %v1250_v44  ;;  %v1248_v20 = vld [vmem:[#allocation3 + $0x68] sm:$0xff] }
 0x41c   : > { %v2160_v3 = vmul.f32 1.442695, %v2150_v52  ;;  %v1256_v12 = vmul.f32 %v4432_v45, %v1248_v20 }
 0x41e   : > { %3281 = vpow2.f32 %v2160_v3 }
 0x41f   : > { %1601 = vmax.xlane.f32.xlu0 %v1600_v51  ;;  %v1583_v51 = vld [vmem:[#allocation2 + $0x80] sm:$0xff] }
 0x424   : > { %v4653_v29 = vpop.eup %3281 }
 0x425   : > { %v2195_v23 = vsel %vm685_vm1, %v4653_v29, 0.0 }
 0x427   : > { %1610 = vmax.xlane.f32.xlu0 %v1609_v7 }
 0x42e   : > { %v1273_v16 = vpop.xlane.xlu2 %1272 }
 0x42f   : > { %v1287_v53 = vadd.f32 %v1273_v16, %v1255_v8  ;;  %2074 = vmax.xlane.f32.xlu0 %v2073_v2 }
 0x431   : > { %1295 = vst.msk [vmem:[#allocation3 + $0x60] sm:$0xff] %vm457_vm2, %v1287_v53 }
 0x436   : > { %v1282_v59 = vpop.xlane.xlu2 %1281 }
 0x437   : > { %v1290_v19 = vadd.f32 %v1282_v59, %v1258_v62  ;;  %2196 = vadd.xlane.f32.xlu0 %v2195_v23  ;;  %v5130_v59 = vld [vmem:[#allocation12_spill] sm:$0xff] }
 0x438   : > { %v2084_v23 = vsub.f32 %v5130_v59, %v5125_v40 }
 0x439   : > { %1298 = vst.msk [vmem:[#allocation3 + $0x78] sm:$0xff] %vm457_vm2, %v1290_v19  ;;  %v1585_v19 = vld [vmem:[#allocation2 + $0x90] sm:$0xff] }
 0x43a   : > { %v2092_v43 = vmul.f32 1.442695, %v2084_v23 }
 0x43e   : > { %v2136_v11 = vpop.permute.xlu2 %2135 }
 0x43f   : > { %v2153_v25 = vsub.f32 %v4484_v54, %v2136_v11 }
 0x441   : > { %v2166_v63 = vmul.f32 1.442695, %v2153_v25 }
 0x443   : > { %3283 = vpow2.f32 %v2166_v63  ;;  %v4692_v63 = vld [vmem:[#allocation2 + $0xa0] sm:$0xff] }
 0x444   : > { %v1267_v34 = vpop.xlane.xlu0 %1266 }
 0x445   : > { %v1285_v21 = vadd.f32 %v1267_v34, %v1253_v17  ;;  %v1588_v34 = vld [vmem:[#allocation2 + $0xa8] sm:$0xff] }
 0x447   : > { %1293 = vst.msk [vmem:[#allocation3 + $0x50] sm:$0xff] %vm457_vm2, %v1285_v21 }
 0x449   : > { %v4662_v31 = vpop.eup %3283 }
 0x44a   : > { %v2204_v49 = vsel %vm685_vm1, %v4662_v31, 0.0 }
 0x44b   : > { %2205 = vadd.xlane.f32.xlu0 %v2204_v49 }
 0x44c   : > { %v1276_v0 = vpop.xlane.xlu0 %1275 }
 0x44d   : > { %v1288_v54 = vadd.f32 %v1276_v0, %v1256_v12  ;;  %v2173_v0 = vld [vmem:[#allocation3 + $0xc0] sm:$0xff] }
 0x44f   : > { %1296 = vst.msk [vmem:[#allocation3 + $0x68] sm:$0xff] %vm457_vm2, %v1288_v54 }
 0x452   : > { %v2126_v42 = vpop.permute.xlu1 %2125 }
 0x453   : > { %v2151_v22 = vsub.f32 %v4395_v35, %v2126_v42 }
 0x454   : > { %v1593_v15 = vpop.xlane.xlu0 %1592 }
 0x455   : > { %v2162_v52 = vmul.f32 1.442695, %v2151_v22  ;;  %v4669_v7 = vmax.f32 %v1583_v51, %v1593_v15 }
 0x457   : > { %3285 = vpow2.f32 %v2162_v52  ;;  %1930 = vst.msk [vmem:[#allocation2 + $0x80] sm:$0xff] %vm457_vm2, %v4669_v7  ;;  %v1623_v3 = vsub.f32 %v1583_v51, %v4669_v7 }
 0x459   : > { %v1631_v10 = vmul.f32 1.442695, %v1623_v3 }
 0x45b   : > { %3287 = vpow2.f32 %v1631_v10  ;;  %v2174_v10 = vld [vmem:[#allocation3 + $0xc8] sm:$0xff] }
 0x45d   : > { %v4674_v45 = vpop.eup %3285 }
 0x45e   : > { %v2198_v8 = vsel %vm685_vm1, %v4674_v45, 0.0 }
 0x45f   : > { %1654 = vperm.xlu0 %3191, %v4622_v5   ;;  %2199 = vadd.xlane.f32.xlu2 %v2198_v8 }
 0x461   : > { %v4679_v35 = vpop.eup %3287 }
 0x467   : > { %v2131_v16 = vpop.permute.xlu0 %2130  ;;  %1779 = vperm.xlu0 %3191, %v4679_v35  }
 0x468   : > { %v2152_v2 = vsub.f32 %v4409_v41, %v2131_v16  ;;  %v2085_v41 = vsub.f32 %v4345_v9, %v4351_v32  ;;  %v4706_v32 = vld [vmem:[#allocation2 + $0xb8] sm:$0xff] }
 0x46a   : > { %v2164_v53 = vmul.f32 1.442695, %v2152_v2  ;;  %v2094_v20 = vmul.f32 1.442695, %v2085_v41 }
 0x46c   : > { %3289 = vpow2.f32 %v2164_v53 }
 0x46d   : > { %3291 = vpow2.f32 %v2092_v43 }
 0x46e   : > { %3293 = vpow2.f32 %v2094_v20 }
 0x472   : > { %v4683_v44 = vpop.eup %3289 }
 0x473   : > { %v2201_v62 = vsel %vm685_vm1, %v4683_v44, 0.0  ;;  %v3292_v9 = vpop.eup %3291 }
 0x474   : > { %2202 = vadd.xlane.f32.xlu1 %v2201_v62  ;;  %v2181_v51 = vmul.f32 %v3292_v9, %v2173_v0  ;;  %v4715_v3 = vpop.eup %3293  ;;  %v1586_v62 = vld [vmem:[#allocation2 + $0x98] sm:$0xff]  ;;  %v2096_v0 = vmul.f32 1.442695, %v2086_v55 }
 0x475   : > { %v2182_v8 = vmul.f32 %v4715_v3, %v2174_v10 }
 0x477   : > { %v1599_v11 = vpop.xlane.xlu2 %1598 }
 0x478   : > { %v1617_v25 = vmax.f32 %v1585_v19, %v1599_v11 }
 0x47a   : > { %1932 = vst.msk [vmem:[#allocation2 + $0x90] sm:$0xff] %vm457_vm2, %v1617_v25  ;;  %v1625_v2 = vsub.f32 %v1585_v19, %v1617_v25 }
 0x47c   : > { %v1635_v59 = vmul.f32 1.442695, %v1625_v2 }
 0x47d   : > { %v1605_v17 = vpop.xlane.xlu1 %1604 }
 0x47e   : > { %v4695_v21 = vmax.f32 %v4692_v63, %v1605_v17  ;;  %3295 = vpow2.f32 %v1635_v59  ;;  %v1589_v17 = vld [vmem:[#allocation2 + $0xb0] sm:$0xff] }
 0x47f   : > { %v1608_v49 = vpop.xlane.xlu2 %1607 }
 0x480   : > { %v1627_v40 = vsub.f32 %v4692_v63, %v4695_v21  ;;  %1934 = vst.msk [vmem:[#allocation2 + $0xa0] sm:$0xff] %vm457_vm2, %v4695_v21  ;;  %v4701_v12 = vmax.f32 %v1588_v34, %v1608_v49  ;;  %1669 = vperm.xlu0 %3191, %v4695_v21  }
 0x482   : > { %1935 = vst.msk [vmem:[#allocation2 + $0xa8] sm:$0xff] %vm457_vm2, %v4701_v12 }
 0x484   : > { %v4726_v49 = vpop.eup %3295 }
 0x485   : > { %v1614_v54 = vpop.xlane.xlu1 %1613 }
 0x486   : > { %v4709_v42 = vmax.f32 %v4706_v32, %v1614_v54 }
 0x487   : > { %v2191_v22 = vpop.xlane.xlu2 %2190 }
 0x488   : > { %v1630_v15 = vsub.f32 %v4706_v32, %v4709_v42  ;;  %1937 = vst.msk [vmem:[#allocation2 + $0xb8] sm:$0xff] %vm457_vm2, %v4709_v42  ;;  %v2213_v52 = vadd.f32 %v2191_v22, %v2181_v51  ;;  %v1628_v51 = vsub.f32 %v1588_v34, %v4701_v12 }
 0x48a   : > { %2221 = vst.msk [vmem:[#allocation3 + $0xc0] sm:$0xff] %vm457_vm2, %v2213_v52  ;;  %v1641_v10 = vmul.f32 1.442695, %v1628_v51  ;;  %v2402_v51 = vld [vmem:[#allocation3] sm:$0xff] }
 0x48d   : > { %2140 = vperm.xlu1 %3192, %v4596_v37   ;;  %v2194_v16 = vpop.xlane.xlu1 %2193 }
 0x48e   : > { %v2214_v53 = vadd.f32 %v2194_v16, %v2182_v8  ;;  %v2175_v8 = vld [vmem:[#allocation3 + $0xd0] sm:$0xff] }
 0x490   : > { %2222 = vst.msk [vmem:[#allocation3 + $0xc8] sm:$0xff] %vm457_vm2, %v2214_v53 }
 0x492   : > { %v1602_v23 = vpop.xlane.xlu0 %1601 }
 0x493   : > { %v4721_v11 = vmax.f32 %v1586_v62, %v1602_v23  ;;  %v2102_v23 = vmul.f32 1.442695, %v2089_v30 }
 0x495   : > { %v1626_v43 = vsub.f32 %v1586_v62, %v4721_v11  ;;  %1933 = vst.msk [vmem:[#allocation2 + $0x98] sm:$0xff] %vm457_vm2, %v4721_v11  ;;  %1659 = vperm.xlu1 %3192, %v1617_v25   ;;  %v4736_v25 = vld [vmem:[#allocation2 + $0xf8] sm:$0xff]  ;;  %v2090_v62 = vsub.f32 %v4591_v18, %v4596_v37  ;;  %v2178_v37 = vld [vmem:[#allocation3 + $0xe8] sm:$0xff] }
 0x497   : > { %v1637_v41 = vmul.f32 1.442695, %v1626_v43 }
 0x499   : > { %3297 = vpow2.f32 %v1637_v41 }
 0x49a   : > { %v1611_v20 = vpop.xlane.xlu0 %1610  ;;  %3299 = vpow2.f32 %v2096_v0 }
 0x49b   : > { %v1621_v19 = vmax.f32 %v1589_v17, %v1611_v20  ;;  %3301 = vpow2.f32 %v1641_v10  ;;  %v3405_v20 = vld [vmem:[%s3611_s27 + $0x30] sm:$0xff] }
 0x49d   : > { %1936 = vst.msk [vmem:[#allocation2 + $0xb0] sm:$0xff] %vm457_vm2, %v1621_v19  ;;  %1789 = vperm.xlu1 %3192, %v4726_v49   ;;  %v1629_v55 = vsub.f32 %v1589_v17, %v1621_v19 }
 0x49f   : > { %v4733_v54 = vpop.eup %3297  ;;  %v1643_v2 = vmul.f32 1.442695, %v1629_v55 }
 0x4a0   : > { %1794 = vperm.xlu0 %3191, %v4733_v54   ;;  %v3300_v56 = vpop.eup %3299 }
 0x4a1   : > { %v2183_v16 = vmul.f32 %v3300_v56, %v2175_v8  ;;  %3303 = vpow2.f32 %v1643_v2  ;;  %v4749_v59 = vpop.eup %3301  ;;  %v3408_v2 = vld [vmem:[%s3611_s27] sm:$0xff] }
 0x4a2   : > { %v2075_v22 = vpop.xlane.xlu0 %2074  ;;  %3305 = vpow2.f32 %v2102_v23  ;;  %v3409_v23 = vld [vmem:[%s3611_s27 + $0x10] sm:$0xff] }
 0x4a3   : > { %v4740_v52 = vmax.f32 %v4736_v25, %v2075_v22  ;;  %v2176_v22 = vld [vmem:[#allocation3 + $0xd8] sm:$0xff] }
 0x4a5   : > { %v2091_v36 = vsub.f32 %v4736_v25, %v4740_v52  ;;  %2398 = vst.msk [vmem:[#allocation2 + $0xf8] sm:$0xff] %vm457_vm2, %v4740_v52  ;;  %1679 = vperm.xlu1 %3192, %v1621_v19   ;;  %v3406_v19 = vld [vmem:[%s3611_s27 + $0x28] sm:$0xff]  ;;  %v3411_v25 = vld [vmem:[%s3611_s27 + $0x20] sm:$0xff] }
 0x4a6   : > { %v3198_v0 = vpack.i.bf16 %v3406_v19, %v3405_v20 }
 0x4a7   : > { %v4755_v43 = vpop.eup %3303 }
 0x4a8   : > { %2240 = vperm.xlu0 %3191, %v3292_v9   ;;  %v2104_v9 = vmul.f32 1.442695, %v2090_v62  ;;  %v3306_v18 = vpop.eup %3305 }
 0x4a9   : > { %v2186_v47 = vmul.f32 %v3306_v18, %v2178_v37 }
 0x4aa   : > { %v2197_v34 = vpop.xlane.xlu0 %2196  ;;  %3307 = vpow2.f32 %v2104_v9  ;;  %v3410_v9 = vld [vmem:[%s3611_s27 + $0x8] sm:$0xff] }
 0x4ab   : > { %v2215_v53 = vadd.f32 %v2197_v34, %v2183_v16  ;;  %3309 = vpow2.f32 %v2098_v33  ;;  %v3407_v16 = vld [vmem:[%s3611_s27 + $0x38] sm:$0xff]  ;;  %v3208_v37 = vpack.i.bf16 %v3410_v9, %v3409_v23  ;;  %v2407_v9 = vld [vmem:[#allocation3 + $0x28] sm:$0xff] }
 0x4ac   : > { %3311 = vrcp.f32 %v2402_v51  ;;  %v3193_v34 = vpack.i.bf16 %v3407_v16, %v3408_v2  ;;  %v2408_v16 = vld [vmem:[#allocation3 + $0x30] sm:$0xff] }
 0x4ad   : > { %2223 = vst.msk [vmem:[#allocation3 + $0xd0] sm:$0xff] %vm457_vm2, %v2215_v53  ;;  %2250 = vperm.xlu1 %3192, %v3300_v56   ;;  %3313 = vrcp.f32 %v2405_v1  ;;  %v2088_v53 = vsub.f32 %v4508_v38, %v4512_v48 }
 0x4af   : > { %v2100_v62 = vmul.f32 1.442695, %v2088_v53  ;;  %v2475_v53 = vld [vmem:[#allocation3 + $0x48] sm:$0xff] }
 0x4b0   : > { %1804 = vperm.xlu0 %3191, %v4749_v59   ;;  %v4759_v41 = vpop.eup %3307 }
 0x4b1   : > { %v3310_v4 = vpop.eup %3309  ;;  %3315 = vpow2.f32 %v2100_v62  ;;  %v1624_v62 = vsub.f32 %v4618_v58, %v4622_v5 }
 0x4b2   : > { %v3312_v46 = vpop.eup %3311  ;;  %v2184_v10 = vmul.f32 %v3310_v4, %v2176_v22 }
 0x4b3   : > { %v3314_v8 = vpop.eup %3313 }
 0x4b5   : > { %1809 = vperm.xlu1 %3192, %v4755_v43  }
 0x4b7   : > { %v4779_v33 = vpop.eup %3315 }
 0x4b8   : > { %1684 = vperm.xlu0 %3191, %v4709_v42  }
 0x4bd   : > { %2270 = vperm.xlu1 %3192, %v4759_v41  }
 0x4be   : > { %v2206_v30 = vpop.xlane.xlu0 %2205 }
 0x4bf   : > { %v2218_v17 = vadd.f32 %v2206_v30, %v2186_v47  ;;  %v2177_v47 = vld [vmem:[#allocation3 + $0xe0] sm:$0xff] }
 0x4c0   : > { %2145 = vperm.xlu0 %3191, %v4740_v52   ;;  %v2185_v30 = vmul.f32 %v4779_v33, %v2177_v47  ;;  %v3412_v52 = vld [vmem:[%s3611_s27 + $0x18] sm:$0xff] }
 0x4c1   : > { %2226 = vst.msk [vmem:[#allocation3 + $0xe8] sm:$0xff] %vm457_vm2, %v2218_v17 }
 0x4c5   : > { %3199 = vrot.lane.b32.xlu1 %v3198_v0, %s3455_s29 }
 0x4c8   : > { %2255 = vperm.xlu0 %3191, %v3310_v4  }
 0x4cd   : > { %2428 = vperm.xlu1 %3192, %v3312_v46  }
 0x4d0   : > { %2265 = vperm.xlu0 %3191, %v3306_v18   ;;  %v2404_v18 = vld [vmem:[#allocation3 + $0x10] sm:$0xff] }
 0x4d1   : > { %3317 = vrcp.f32 %v2404_v18  ;;  %v1655_v20 = vpop.permute.xlu0 %1654  ;;  %v1633_v18 = vmul.f32 1.442695, %v1624_v62  ;;  %v1713_v62 = vld [vmem:[#allocation3 + $0x88] sm:$0xff] }
 0x4d2   : > { %v2200_v56 = vpop.xlane.xlu2 %2199  ;;  %v1688_v19 = vsub.f32 %v4538_v6, %v1655_v20 }
 0x4d3   : > { %v2216_v55 = vadd.f32 %v2200_v56, %v2184_v10 }
 0x4d4   : > { %v1697_v0 = vmul.f32 1.442695, %v1688_v19 }
 0x4d5   : > { %2224 = vst.msk [vmem:[#allocation3 + $0xd8] sm:$0xff] %vm457_vm2, %v2216_v55  ;;  %2443 = vperm.xlu1 %3192, %v3314_v8  }
 0x4d6   : > { %3319 = vpow2.f32 %v1697_v0  ;;  %v1639_v0 = vmul.f32 1.442695, %v1627_v40 }
 0x4d7   : > { %v3318_v38 = vpop.eup %3317 }
 0x4d8   : > { %3194 = vrot.lane.b32.xlu0 %v3193_v34, %s3455_s29 }
 0x4d9   : > { %v4798_v34 = vpop.permute.xlu0 %1779 }
 0x4dc   : > { %v4784_v51 = vpop.eup %3319 }
 0x4dd   : > { %v1731_v4 = vsel %vm685_vm1, %v4784_v51, 0.0 }
 0x4e0   : > { %3209 = vrot.lane.b32.xlu0 %v3208_v37, %s3455_s29 }
 0x4e7   : > { %v2203_v48 = vpop.xlane.xlu1 %2202 }
 0x4e8   : > { %v2217_v17 = vadd.f32 %v2203_v48, %v2185_v30  ;;  %2438 = vperm.xlu0 %3191, %v3318_v38   ;;  %v2474_v38 = vld [vmem:[#allocation3 + $0x40] sm:$0xff] }
 0x4ea   : > { %2225 = vst.msk [vmem:[#allocation3 + $0xe0] sm:$0xff] %vm457_vm2, %v2217_v17 }
 0x4f2   : > { %v1670_v23 = vpop.permute.xlu0 %1669 }
 0x4f3   : > { %v1691_v19 = vsub.f32 %v4601_v13, %v1670_v23 }
 0x4ff   : > { %1732 = vadd.xlane.f32.xlu1 %v1731_v4  ;;  %v2141_v1 = vpop.permute.xlu1 %2140 }
 0x500   : > { %v2154_v46 = vsub.f32 %v4521_v50, %v2141_v1  ;;  %v1703_v1 = vmul.f32 1.442695, %v1691_v19 }
 0x502   : > { %v2168_v22 = vmul.f32 1.442695, %v2154_v46 }
 0x504   : > { %3321 = vpow2.f32 %v2168_v22 }
 0x507   : > { %v1660_v10 = vpop.permute.xlu1 %1659 }
 0x508   : > { %v1689_v56 = vsub.f32 %v4579_v27, %v1660_v10 }
 0x50a   : > { %v4790_v55 = vpop.eup %3321  ;;  %v1699_v8 = vmul.f32 1.442695, %v1689_v56 }
 0x50b   : > { %v2207_v6 = vsel %vm685_vm1, %v4790_v55, 0.0 }
 0x50c   : > { %3323 = vpow2.f32 %v1699_v8  ;;  %2208 = vadd.xlane.f32.xlu2 %v2207_v6  ;;  %v2106_v8 = vmul.f32 1.442695, %v2091_v36  ;;  %v2478_v6 = vld [vmem:[#allocation3 + $0x60] sm:$0xff]  ;;  %v3203_v36 = vpack.i.bf16 %v3412_v52, %v3411_v25 }
 0x50d   : > { %3325 = vrcp.f32 %v2408_v16 }
 0x50e   : > { %3327 = vrcp.f32 %v2475_v53 }
 0x50f   : > { %3329 = vrcp.f32 %v2407_v9  ;;  %v4802_v47 = vpop.permute.xlu1 %1789 }
 0x510   : > { %3331 = vpow2.f32 %v1633_v18 }
 0x511   : > { %3333 = vrcp.f32 %v2474_v38  ;;  %v2179_v38 = vld [vmem:[#allocation3 + $0xf0] sm:$0xff] }
 0x512   : > { %v4794_v2 = vpop.eup %3323  ;;  %v4805_v30 = vpop.permute.xlu0 %1794  ;;  %3335 = vpow2.f32 %v1639_v0 }
 0x513   : > { %v1734_v50 = vsel %vm685_vm1, %v4794_v2, 0.0  ;;  %v3326_v27 = vpop.eup %3325  ;;  %3337 = vpow2.f32 %v1703_v1 }
 0x514   : > { %1735 = vadd.xlane.f32.xlu0 %v1734_v50  ;;  %v3328_v37 = vpop.eup %3327 }
 0x515   : > { %v3330_v48 = vpop.eup %3329 }
 0x516   : > { %v3332_v17 = vpop.eup %3331 }
 0x517   : > { %v4807_v58 = vpop.permute.xlu1 %1679  ;;  %v3334_v5 = vpop.eup %3333  ;;  %v1721_v23 = vmul.f32 %v3332_v17, %v1713_v62 }
 0x518   : > { %2458 = vperm.xlu1 %3192, %v3326_v27   ;;  %v4823_v22 = vpop.eup %3335 }
 0x519   : > { %v4826_v13 = vpop.eup %3337 }
 0x51a   : > { %v4809_v20 = vpop.permute.xlu0 %2240  ;;  %v1740_v63 = vsel %vm685_vm1, %v4826_v13, 0.0 }
 0x520   : > { %2505 = vperm.xlu1 %3192, %v3328_v37  }
 0x522   : > { %v4818_v4 = vpop.permute.xlu0 %1804 }
 0x524   : > { %1649 = vperm.xlu2 %3190, %v4669_v7   ;;  %v4813_v7 = vpop.permute.xlu1 %2250 }
 0x528   : > { %2453 = vperm.xlu0 %3191, %v3330_v48   ;;  %v2187_v48 = vmul.f32 %v4759_v41, %v2179_v38 }
 0x52c   : > { %1784 = vperm.xlu2 %3190, %v3332_v17   ;;  %v4821_v46 = vpop.permute.xlu1 %1809 }
 0x530   : > { %2500 = vperm.xlu0 %3191, %v3334_v5  }
 0x534   : > { %1664 = vperm.xlu2 %3190, %v4721_v11   ;;  %v1685_v11 = vpop.permute.xlu0 %1684  ;;  %v4830_v21 = vpop.permute.xlu1 %2270 }
 0x535   : > { %v1694_v1 = vsub.f32 %v4630_v57, %v1685_v11 }
 0x53c   : > { %1674 = vperm.xlu2 %3190, %v4701_v12   ;;  %v2146_v40 = vpop.permute.xlu0 %2145  ;;  %v1645_v12 = vmul.f32 1.442695, %v1630_v15  ;;  %v3200_v10 = vpop.permute.xlu1 %3199  ;;  %v2481_v15 = vld [vmem:[#allocation3 + $0x78] sm:$0xff] }
 0x53d   : > { %v3201_v52 = vunpack.i.l.bf16 %v3200_v10  ;;  %v2155_v57 = vsub.f32 %v4647_v26, %v2146_v40 }
 0x53e   : > { %3339 = vpow2.f32 %v1645_v12  ;;  %v1709_v12 = vmul.f32 1.442695, %v1694_v1 }
 0x53f   : > { %3341 = vrcp.f32 %v2478_v6  ;;  %v2170_v11 = vmul.f32 1.442695, %v2155_v57 }
 0x540   : > { %3343 = vpow2.f32 %v2106_v8 }
 0x541   : > { %3345 = vrcp.f32 %v2481_v15 }
 0x542   : > { %3347 = vpow2.f32 %v1709_v12 }
 0x544   : > { %1799 = vperm.xlu2 %3190, %v4823_v22   ;;  %v4837_v56 = vpop.permute.xlu0 %2255  ;;  %v4842_v16 = vpop.eup %3339 }
 0x545   : > { %v4845_v32 = vpop.permute.xlu1 %2428 }
 0x54a   : > { %1741 = vadd.xlane.f32.xlu1 %v1740_v63  ;;  %v1714_v63 = vld [vmem:[#allocation3 + $0x90] sm:$0xff] }
 0x54b   : > { %v1722_v17 = vmul.f32 %v4726_v49, %v1714_v63  ;;  %v3202_v49 = vunpack.i.h.bf16 %v3200_v10 }
 0x54c   : > { %2245 = vperm.xlu2 %3190, %v4715_v3   ;;  %v4847_v42 = vpop.permute.xlu0 %2265  ;;  %v3342_v3 = vpop.eup %3341 }
 0x54d   : > { %v4854_v53 = vpop.permute.xlu1 %2443 }
 0x554   : > { %2260 = vperm.xlu2 %3190, %v4779_v33   ;;  %v4849_v33 = vpop.eup %3343  ;;  %v4856_v27 = vpop.permute.xlu0 %3194 }
 0x555   : > { %v3346_v50 = vpop.eup %3345  ;;  %v3197_v25 = vunpack.i.h.bf16 %v4856_v27 }
 0x557   : > { %2342 = vmatpush.msrb.mxu2 %v3197_v25  ;;  %3095 = vmatpush.msra.mxu3 %v3197_v25 }
 0x559   : > { %2343 = vmatpush.msrb.mxu2 %v3201_v52  ;;  %3096 = vmatpush.msra.mxu3 %v3201_v52  ;;  %v2477_v52 = vld [vmem:[#allocation3 + $0x58] sm:$0xff] }
 0x55b   : > { %2344 = vmatpush.msrb.mxu2 %v3202_v49  ;;  %3097 = vmatpush.msra.mxu3 %v3202_v49 }
 0x55c   : > { %1814 = vperm.xlu2 %3190, %v4842_v16   ;;  %v4859_v18 = vpop.permute.xlu0 %3209 }
 0x563   : > { %2520 = vperm.xlu1 %3192, %v3342_v3  }
 0x564   : > { %2275 = vperm.xlu2 %3190, %v4849_v33   ;;  %v4863_v5 = vpop.permute.xlu0 %2438 }
 0x56b   : > { %2535 = vperm.xlu1 %3192, %v3346_v50  }
 0x56c   : > { %3204 = vrot.lane.b32.xlu2 %v3203_v36, %s3455_s29  ;;  %v4874_v36 = vpop.eup %3347 }
 0x56d   : > { %v1749_v26 = vsel %vm685_vm1, %v4874_v36, 0.0 }
 0x572   : > { %v1733_v9 = vpop.xlane.xlu1 %1732 }
 0x573   : > { %v1753_v37 = vadd.f32 %v1733_v9, %v1721_v23 }
 0x575   : > { %1761 = vst.msk [vmem:[#allocation3 + $0x88] sm:$0xff] %vm457_vm2, %v1753_v37 }
 0x57f   : > { %v2209_v19 = vpop.xlane.xlu2 %2208 }
 0x580   : > { %v2219_v0 = vadd.f32 %v2209_v19, %v2187_v48 }
 0x582   : > { %2227 = vst.msk [vmem:[#allocation3 + $0xf0] sm:$0xff] %vm457_vm2, %v2219_v0  ;;  %v2403_v0 = vld [vmem:[#allocation3 + $0x8] sm:$0xff] }
 0x587   : > { %v1650_v8 = vpop.permute.xlu2 %1649  ;;  %v1736_v6 = vpop.xlane.xlu0 %1735 }
 0x588   : > { %v1687_v15 = vsub.f32 %v4535_v39, %v1650_v8  ;;  %v1754_v3 = vadd.f32 %v1736_v6, %v1722_v17  ;;  %v2406_v17 = vld [vmem:[#allocation3 + $0x20] sm:$0xff] }
 0x589   : > { %v2618_v8 = vld [vmem:[#allocation3 + $0xc0] sm:$0xff] }
 0x58a   : > { %v1695_v41 = vmul.f32 1.442695, %v1687_v15  ;;  %1762 = vst.msk [vmem:[#allocation3 + $0x90] sm:$0xff] %vm457_vm2, %v1754_v3  ;;  %v4894_v63 = vpop.permute.xlu1 %2458  ;;  %v1693_v15 = vsub.f32 %v4616_v24, %v4807_v58  ;;  %v2621_v3 = vld [vmem:[#allocation3 + $0xd8] sm:$0xff] }
 0x58c   : > { %3349 = vpow2.f32 %v1695_v41  ;;  %v1707_v49 = vmul.f32 1.442695, %v1693_v15  ;;  %v3211_v15 = vunpack.i.l.bf16 %v4859_v18 }
 0x58d   : > { %3351 = vpow2.f32 %v2170_v11  ;;  %v1716_v11 = vld [vmem:[#allocation3 + $0xa0] sm:$0xff] }
 0x58f   : > { %v4872_v39 = vpop.permute.xlu2 %1784 }
 0x592   : > { %v3350_v50 = vpop.eup %3349  ;;  %v2506_v41 = vpop.permute.xlu1 %2505 }
 0x593   : > { %3052 = vmatmul.msk.f32.vlgmr.msrb.gmra.mxu3 %vm685_vm1, %v3350_v50  ;;  %v1728_v62 = vsel %vm685_vm1, %v3350_v50, 0.0  ;;  %v4880_v10 = vpop.eup %3351  ;;  %v2624_v50 = vld [vmem:[#allocation3 + $0xf0] sm:$0xff] }
 0x594   : > { %v2210_v9 = vsel %vm685_vm1, %v4880_v10, 0.0 }
 0x595   : > { %1750 = vadd.xlane.f32.xlu1 %v1749_v26  ;;  %1729 = vadd.xlane.f32.xlu2 %v1728_v62  ;;  %v2480_v26 = vld [vmem:[#allocation3 + $0x70] sm:$0xff] }
 0x597   : > { %v1665_v40 = vpop.permute.xlu2 %1664 }
 0x598   : > { %v1690_v23 = vsub.f32 %v4593_v60, %v1665_v40 }
 0x59a   : > { %v1701_v37 = vmul.f32 1.442695, %v1690_v23 }
 0x59b   : > { %3053 = vmatmul.msk.f32.gmra.mxu3 %vm685_vm1, %v4784_v51 }
 0x59c   : > { %3353 = vpow2.f32 %v1701_v37  ;;  %v2620_v37 = vld [vmem:[#allocation3 + $0xd0] sm:$0xff] }
 0x59d   : > { %2211 = vadd.xlane.f32.xlu1 %v2210_v9 }
 0x59f   : > { %v1675_v38 = vpop.permute.xlu2 %1674 }
 0x5a0   : > { %v1692_v48 = vsub.f32 %v4607_v14, %v1675_v38 }
 0x5a2   : > { %v1705_v19 = vmul.f32 1.442695, %v1692_v48  ;;  %v4892_v1 = vpop.eup %3353 }
 0x5a3   : > { %3054 = vmatmul.msk.f32.gmra.mxu3 %vm685_vm1, %v4794_v2 }
 0x5a4   : > { %3355 = vpow2.f32 %v1705_v19  ;;  %v2491_v19 = vld [vmem:[#allocation4 + $0x48] sm:$0xff] }
 0x5a5   : > { %3357 = vrcp.f32 %v2403_v0  ;;  %v2539_v0 = vmul.f32 %v2506_v41, %v2491_v19 }
 0x5a6   : > { %3359 = vrcp.f32 %v2406_v17 }
 0x5a7   : > { %v4890_v60 = vpop.permute.xlu2 %1799  ;;  %3361 = vrcp.f32 %v2618_v8  ;;  %v4921_v8 = vpop.permute.xlu0 %2453 }
 0x5a8   : > { %3363 = vrcp.f32 %v2621_v3  ;;  %v2494_v3 = vld [vmem:[#allocation4 + $0x60] sm:$0xff] }
 0x5a9   : > { %3365 = vrcp.f32 %v2477_v52  ;;  %v2548_v52 = vld [vmem:[#allocation3 + $0x90] sm:$0xff] }
 0x5aa   : > { %v3356_v51 = vpop.eup %3355  ;;  %3367 = vpow2.f32 %v1707_v49 }
 0x5ab   : > { %3055 = vmatmul.msk.f32.gmra.mxu3 %vm685_vm1, %v4892_v1  ;;  %v1743_v14 = vsel %vm685_vm1, %v3356_v51, 0.0  ;;  %v3358_v12 = vpop.eup %3357  ;;  %3369 = vrcp.f32 %v2624_v50  ;;  %v1737_v50 = vsel %vm685_vm1, %v4892_v1, 0.0 }
 0x5ac   : > { %1744 = vadd.xlane.f32.xlu0 %v1743_v14  ;;  %v3360_v6 = vpop.eup %3359  ;;  %3371 = vrcp.f32 %v2480_v26 }
 0x5ad   : > { %2433 = vperm.xlu2 %3190, %v3358_v12   ;;  %v3362_v25 = vpop.eup %3361  ;;  %3373 = vrcp.f32 %v2620_v37 }
 0x5ae   : > { %v3364_v62 = vpop.eup %3363 }
 0x5af   : > { %v4899_v2 = vpop.permute.xlu2 %2245  ;;  %v3366_v40 = vpop.eup %3365 }
 0x5b0   : > { %v4912_v9 = vpop.eup %3367 }
 0x5b3   : > { %3056 = vmatmul.msk.f32.gmra.mxu3 %vm685_vm1, %v4826_v13  ;;  %v1724_v13 = vmul.f32 %v4823_v22, %v1716_v11  ;;  %v3370_v22 = vpop.eup %3369  ;;  %v3196_v11 = vunpack.i.l.bf16 %v4856_v27 }
 0x5b4   : > { %v3372_v38 = vpop.eup %3371 }
 0x5b5   : > { %2448 = vperm.xlu2 %3190, %v3360_v6   ;;  %v3374_v14 = vpop.eup %3373 }
 0x5b6   : > { %2644 = vperm.xlu1 %3192, %v3362_v25   ;;  %v3212_v25 = vunpack.i.h.bf16 %v4859_v18  ;;  %v2490_v18 = vld [vmem:[#allocation4 + $0x40] sm:$0xff] }
 0x5b7   : > { %v4905_v57 = vpop.permute.xlu2 %2260 }
 0x5bb   : > { %3057 = vmatmul.msk.f32.gmra.mxu3 %vm685_vm1, %v3356_v51  ;;  %v2623_v51 = vld [vmem:[#allocation3 + $0xe8] sm:$0xff] }
 0x5bc   : > { %3375 = vrcp.f32 %v2623_v51  ;;  %v1769_v51 = vld [vmem:[#allocation4 + $0x80] sm:$0xff] }
 0x5bd   : > { %v1742_v24 = vpop.xlane.xlu1 %1741  ;;  %3377 = vrcp.f32 %v2548_v52  ;;  %v1746_v52 = vsel %vm685_vm1, %v4912_v9, 0.0 }
 0x5be   : > { %v1756_v58 = vadd.f32 %v1742_v24, %v1724_v13  ;;  %2659 = vperm.xlu1 %3192, %v3364_v62   ;;  %v2501_v13 = vpop.permute.xlu0 %2500 }
 0x5bf   : > { %v4909_v23 = vpop.permute.xlu2 %1814  ;;  %v2538_v27 = vmul.f32 %v2501_v13, %v2490_v18 }
 0x5c0   : > { %1764 = vst.msk [vmem:[#allocation3 + $0xa0] sm:$0xff] %vm457_vm2, %v1756_v58  ;;  %2515 = vperm.xlu0 %3191, %v3366_v40  }
 0x5c2   : > { %v3376_v49 = vpop.eup %3375 }
 0x5c3   : > { %3058 = vmatmul.msk.f32.gmra.mxu3 %vm685_vm1, %v4912_v9  ;;  %v3378_v62 = vpop.eup %3377  ;;  %v2493_v9 = vld [vmem:[#allocation4 + $0x58] sm:$0xff] }
 0x5c6   : > { %2674 = vperm.xlu1 %3192, %v3370_v22  }
 0x5c7   : > { %v4916_v48 = vpop.permute.xlu2 %2275 }
 0x5c8   : > { %2530 = vperm.xlu0 %3191, %v3372_v38  }
 0x5cb   : > { %3059 = vmatmul.msk.f32.gmra.mxu3 %vm685_vm1, %v4874_v36 }
 0x5ce   : > { %2700 = vrot.lane.b32.xlu1 %v2539_v0, %s3455_s29 }
 0x5cf   : > { %v3205_v17 = vpop.permute.xlu2 %3204 }
 0x5d0   : > { %2654 = vperm.xlu0 %3191, %v3374_v14   ;;  %v3206_v12 = vunpack.i.l.bf16 %v3205_v17  ;;  %v3207_v6 = vunpack.i.h.bf16 %v3205_v17  ;;  %v1770_v17 = vld [vmem:[#allocation4 + $0x88] sm:$0xff] }
 0x5d2   : > { %2345 = vmatpush.msrb.mxu2 %v3206_v12  ;;  %3098 = vmatpush.msra.mxu3 %v3206_v12  ;;  %v1717_v12 = vld [vmem:[#allocation3 + $0xa8] sm:$0xff] }
 0x5d4   : > { %2346 = vmatpush.msrb.mxu2 %v3207_v6  ;;  %3099 = vmatpush.msra.mxu3 %v3207_v6  ;;  %v1818_v6 = vmul.f32 %v4872_v39, %v1770_v17 }
 0x5d5   : > { %v2521_v36 = vpop.permute.xlu1 %2520 }
 0x5d6   : > { %v2542_v41 = vmul.f32 %v2521_v36, %v2494_v3  ;;  %2347 = vmatpush.msrb.mxu2 %v3211_v15  ;;  %3100 = vmatpush.msra.mxu3 %v3211_v15 }
 0x5d8   : > { %2669 = vperm.xlu0 %3191, %v3376_v49   ;;  %2706 = vrot.lane.b32.xlu1 %v2542_v41, %s3455_s29 }
 0x5d9   : > { %2348 = vmatpush.msrb.mxu2 %v3212_v25  ;;  %3101 = vmatpush.msra.mxu3 %v3212_v25  ;;  %v1771_v25 = vld [vmem:[#allocation4 + $0x90] sm:$0xff] }
 0x5db   : > { %2349 = vmatpush.msrb.mxu2 %v3196_v11  ;;  %3102 = vmatpush.msra.mxu3 %v3196_v11  ;;  %v1772_v11 = vld [vmem:[#allocation4 + $0x98] sm:$0xff] }
 0x5dc   : > { %3076 = vmatmul.msk.f32.vlgmr.msrb.gmra.mxu2 %vm685_vm1, %v4632_v28  ;;  %3083 = vmatmul.msk.f32.vlgmr.msra.gmra.mxu3 %vm685_vm1, %v4880_v10  ;;  %v2409_v28 = vld [vmem:[#allocation3 + $0x38] sm:$0xff]  ;;  %v2476_v10 = vld [vmem:[#allocation3 + $0x50] sm:$0xff]  ;;  %v1820_v13 = vmul.f32 %v4805_v30, %v1772_v11 }
 0x5dd   : > { %3379 = vrcp.f32 %v2409_v28  ;;  %v2536_v58 = vpop.permute.xlu1 %2535 }
 0x5de   : > { %1738 = vadd.xlane.f32.xlu2 %v1737_v50  ;;  %3381 = vrcp.f32 %v2476_v10 }
 0x5e0   : > { %2698 = vrot.lane.b32.xlu0 %v2538_v27, %s3455_s29  ;;  %2582 = vperm.xlu1 %3192, %v3378_v62  }
 0x5e3   : > { %v3380_v24 = vpop.eup %3379 }
 0x5e4   : > { %3077 = vmatmul.msk.f32.gmra.mxu2 %vm685_vm1, %v4638_v61  ;;  %v3382_v1 = vpop.eup %3381  ;;  %v1712_v61 = vld [vmem:[#allocation3 + $0x80] sm:$0xff] }
 0x5e5   : > { %v1720_v26 = vmul.f32 %v4679_v35, %v1712_v61  ;;  %v1817_v35 = vmul.f32 %v4798_v34, %v1769_v51  ;;  %v1819_v34 = vmul.f32 %v4802_v47, %v1771_v25  ;;  %v1773_v47 = vld [vmem:[#allocation4 + $0xa0] sm:$0xff]  ;;  %v2497_v61 = vld [vmem:[#allocation4 + $0x78] sm:$0xff] }
 0x5e6   : > { %v2545_v30 = vmul.f32 %v2536_v58, %v2497_v61  ;;  %v2237_v61 = vld [vmem:[#allocation4 + $0xf8] sm:$0xff] }
 0x5ec   : > { %3078 = vmatmul.msk.f32.gmra.mxu2 %vm685_vm1, %v4653_v29  ;;  %v1719_v29 = vld [vmem:[#allocation3 + $0xb8] sm:$0xff] }
 0x5ed   : > { %v1727_v40 = vmul.f32 %v4842_v16, %v1719_v29 }
 0x5f4   : > { %3079 = vmatmul.msk.f32.gmra.mxu2 %vm685_vm1, %v4674_v45 }
 0x5f6   : > { %2463 = vperm.xlu2 %3190, %v3380_v24   ;;  %v1821_v24 = vmul.f32 %v4890_v60, %v1773_v47 }
 0x5fc   : > { %3080 = vmatmul.msk.f32.gmra.mxu2 %vm685_vm1, %v4683_v44  ;;  %v2180_v44 = vld [vmem:[#allocation3 + $0xf8] sm:$0xff] }
 0x5fe   : > { %2510 = vperm.xlu2 %3190, %v3382_v1   ;;  %v2479_v1 = vld [vmem:[#allocation3 + $0x68] sm:$0xff] }
 0x604   : > { %3081 = vmatmul.msk.f32.gmra.mxu2 %vm685_vm1, %v4662_v31  ;;  %v2188_v31 = vmul.f32 %v4849_v33, %v2180_v44  ;;  %v2547_v44 = vld [vmem:[#allocation3 + $0x88] sm:$0xff] }
 0x608   : > { %v1730_v45 = vpop.xlane.xlu2 %1729  ;;  %v1751_v22 = vpop.xlane.xlu1 %1750 }
 0x609   : > { %v1752_v37 = vadd.f32 %v1730_v45, %v1720_v26  ;;  %v1759_v38 = vadd.f32 %v1751_v22, %v1727_v40  ;;  %v1774_v45 = vld [vmem:[#allocation4 + $0xa8] sm:$0xff]  ;;  %v2496_v22 = vld [vmem:[#allocation4 + $0x70] sm:$0xff] }
 0x60b   : > { %1760 = vst.msk [vmem:[#allocation3 + $0x80] sm:$0xff] %vm457_vm2, %v1752_v37 }
 0x60c   : > { %1767 = vst.msk [vmem:[#allocation3 + $0xb8] sm:$0xff] %vm457_vm2, %v1759_v38  ;;  %3082 = vmatmul.msk.f32.gmra.mxu2 %vm685_vm1, %v4790_v55  ;;  %v1725_v55 = vmul.f32 %v4749_v59, %v1717_v12  ;;  %v1775_v12 = vld [vmem:[#allocation4 + $0xb0] sm:$0xff] }
 0x610   : > { %v2212_v19 = vpop.xlane.xlu1 %2211  ;;  %v2434_v60 = vpop.permute.xlu2 %2433 }
 0x611   : > { %v2220_v0 = vadd.f32 %v2212_v19, %v2188_v31  ;;  %v1822_v31 = vmul.f32 %v4818_v4, %v1774_v45  ;;  %v2619_v19 = vld [vmem:[#allocation3 + $0xc8] sm:$0xff] }
 0x613   : > { %2228 = vst.msk [vmem:[#allocation3 + $0xf8] sm:$0xff] %vm457_vm2, %v2220_v0  ;;  %v2419_v0 = vld [vmem:[#allocation4 + $0x8] sm:$0xff]  ;;  %v2553_v11 = vld [vmem:[#allocation3 + $0xb8] sm:$0xff] }
 0x616   : > { %v1890_v16 = vpop.f32.mrf.mxu3 }
 0x617   : > { %v1914_v14 = vadd.f32 %v1890_v16, %v1817_v35  ;;  %v2467_v35 = vmul.f32 %v2434_v60, %v2419_v0  ;;  %v2231_v60 = vld [vmem:[#allocation4 + $0xc8] sm:$0xff]  ;;  %v2232_v0 = vld [vmem:[#allocation4 + $0xd0] sm:$0xff] }
 0x619   : > { %1922 = vst.msk [vmem:[#allocation4 + $0x80] sm:$0xff] %vm522_vm0, %v1914_v14 }
 0x61e   : > { %v1893_v15 = vpop.f32.mrf.mxu3 }
 0x61f   : > { %v1915_v3 = vadd.f32 %v1893_v15, %v1818_v6  ;;  %v1745_v33 = vpop.xlane.xlu0 %1744  ;;  %v2550_v6 = vld [vmem:[#allocation3 + $0xa0] sm:$0xff]  ;;  %v1823_v15 = vmul.f32 %v4821_v46, %v1775_v12 }
 0x620   : > { %v1757_v36 = vadd.f32 %v1745_v33, %v1725_v55  ;;  %v2622_v55 = vld [vmem:[#allocation3 + $0xe0] sm:$0xff]  ;;  %v2449_v33 = vpop.permute.xlu2 %2448 }
 0x621   : > { %1923 = vst.msk [vmem:[#allocation4 + $0x88] sm:$0xff] %vm522_vm0, %v1915_v3 }
 0x622   : > { %1765 = vst.msk [vmem:[#allocation3 + $0xa8] sm:$0xff] %vm457_vm2, %v1757_v36 }
 0x626   : > { %v1896_v41 = vpop.f32.mrf.mxu3 }
 0x627   : > { %v1916_v49 = vadd.f32 %v1896_v41, %v1819_v34  ;;  %1747 = vadd.xlane.f32.xlu2 %v1746_v52  ;;  %v2422_v34 = vld [vmem:[#allocation4 + $0x20] sm:$0xff]  ;;  %v1776_v52 = vld [vmem:[#allocation4 + $0xb8] sm:$0xff] }
 0x628   : > { %v4961_v39 = vpop.permute.xlu1 %2644  ;;  %v2470_v41 = vmul.f32 %v2449_v33, %v2422_v34 }
 0x629   : > { %1924 = vst.msk [vmem:[#allocation4 + $0x90] sm:$0xff] %vm522_vm0, %v1916_v49  ;;  %v2551_v59 = vld [vmem:[#allocation3 + $0xa8] sm:$0xff] }
 0x62a   : > { %3383 = vrcp.f32 %v2551_v59 }
 0x62b   : > { %3385 = vrcp.f32 %v2479_v1 }
 0x62c   : > { %3387 = vrcp.f32 %v2547_v44 }
 0x62d   : > { %3389 = vrcp.f32 %v2619_v19 }
 0x62e   : > { %v1899_v18 = vpop.f32.mrf.mxu3  ;;  %3391 = vrcp.f32 %v2550_v6 }
 0x62f   : > { %v1917_v50 = vadd.f32 %v1899_v18, %v1820_v13  ;;  %3393 = vrcp.f32 %v2622_v55  ;;  %v1824_v13 = vmul.f32 %v4909_v23, %v1776_v52  ;;  %v1715_v18 = vld [vmem:[#allocation3 + $0x98] sm:$0xff]  ;;  %v2230_v23 = vld [vmem:[#allocation4 + $0xc0] sm:$0xff] }
 0x630   : > { %v3384_v27 = vpop.eup %3383  ;;  %v4965_v62 = vpop.permute.xlu1 %2659  ;;  %3395 = vrcp.f32 %v2553_v11  ;;  %v2564_v11 = vld [vmem:[#allocation4 + $0x90] sm:$0xff] }
 0x631   : > { %1925 = vst.msk [vmem:[#allocation4 + $0x98] sm:$0xff] %vm522_vm0, %v1917_v50  ;;  %2597 = vperm.xlu1 %3192, %v3384_v27   ;;  %v3386_v58 = vpop.eup %3385 }
 0x632   : > { %v2516_v28 = vpop.permute.xlu0 %2515  ;;  %v3388_v4 = vpop.eup %3387 }
 0x633   : > { %v2541_v10 = vmul.f32 %v2516_v28, %v2493_v9  ;;  %v3390_v3 = vpop.eup %3389  ;;  %v1723_v9 = vmul.f32 %v4733_v54, %v1715_v18 }
 0x634   : > { %v3392_v46 = vpop.eup %3391 }
 0x635   : > { %2704 = vrot.lane.b32.xlu0 %v2541_v10, %s3455_s29  ;;  %v3394_v50 = vpop.eup %3393 }
 0x636   : > { %v1902_v29 = vpop.f32.mrf.mxu3 }
 0x637   : > { %v1918_v26 = vadd.f32 %v1902_v29, %v1821_v24  ;;  %v3396_v24 = vpop.eup %3395  ;;  %v2278_v29 = vmul.f32 %v4809_v20, %v2230_v23 }
 0x638   : > { %v4970_v40 = vpop.permute.xlu1 %2674 }
 0x639   : > { %1926 = vst.msk [vmem:[#allocation4 + $0xa0] sm:$0xff] %vm522_vm0, %v1918_v26  ;;  %2712 = vrot.lane.b32.xlu1 %v2545_v30, %s3455_s29  ;;  %v2285_v30 = vmul.f32 %v4916_v48, %v2237_v61 }
 0x63a   : > { %v2531_v37 = vpop.permute.xlu0 %2530 }
 0x63b   : > { %v2544_v38 = vmul.f32 %v2531_v37, %v2496_v22  ;;  %v2492_v37 = vld [vmem:[#allocation4 + $0x50] sm:$0xff] }
 0x63d   : > { %2710 = vrot.lane.b32.xlu0 %v2544_v38, %s3455_s29 }
 0x63e   : > { %v1905_v51 = vpop.f32.mrf.mxu3 }
 0x63f   : > { %v1919_v16 = vadd.f32 %v1905_v51, %v1822_v31  ;;  %2525 = vperm.xlu2 %3190, %v3386_v58   ;;  %v2279_v31 = vmul.f32 %v4899_v2, %v2231_v60  ;;  %v2280_v51 = vmul.f32 %v4813_v7, %v2232_v0 }
 0x640   : > { %v2701_v14 = vpop.permute.xlu1 %2700 }
 0x641   : > { %1927 = vst.msk [vmem:[#allocation4 + $0xa8] sm:$0xff] %vm522_vm0, %v1919_v16  ;;  %v4978_v17 = vsel %vm522_vm0, %v2467_v35, %v2701_v14  ;;  %v2233_v14 = vld [vmem:[#allocation4 + $0xd8] sm:$0xff] }
 0x642   : > { %v2281_v12 = vmul.f32 %v4837_v56, %v2233_v14  ;;  %v2235_v56 = vld [vmem:[#allocation4 + $0xe8] sm:$0xff] }
 0x643   : > { %v2283_v34 = vmul.f32 %v4847_v42, %v2235_v56 }
 0x645   : > { %2577 = vperm.xlu0 %3191, %v3388_v4   ;;  %v2655_v4 = vpop.permute.xlu0 %2654 }
 0x646   : > { %v1908_v36 = vpop.f32.mrf.mxu3 }
 0x647   : > { %v1920_v25 = vadd.f32 %v1908_v36, %v1823_v15  ;;  %2649 = vperm.xlu2 %3190, %v3390_v3  }
 0x648   : > { %v2567_v61 = vld [vmem:[#allocation4 + $0xa8] sm:$0xff] }
 0x649   : > { %1928 = vst.msk [vmem:[#allocation4 + $0xb0] sm:$0xff] %vm522_vm0, %v1920_v25 }
 0x64a   : > { %v2707_v49 = vpop.permute.xlu1 %2706 }
 0x64b   : > { %v4983_v59 = vsel %vm522_vm0, %v2470_v41, %v2707_v49 }
 0x64d   : > { %2592 = vperm.xlu0 %3191, %v3392_v46  }
 0x64e   : > { %v1911_v27 = vpop.f32.mrf.mxu3 }
 0x64f   : > { %v1921_v47 = vadd.f32 %v1911_v27, %v1824_v13  ;;  %2664 = vperm.xlu2 %3190, %v3394_v50   ;;  %v1718_v27 = vld [vmem:[#allocation3 + $0xb0] sm:$0xff] }
 0x650   : > { %v1726_v42 = vmul.f32 %v4755_v43, %v1718_v27 }
 0x651   : > { %1929 = vst.msk [vmem:[#allocation4 + $0xb8] sm:$0xff] %vm522_vm0, %v1921_v47  ;;  %v1739_v28 = vpop.xlane.xlu2 %1738 }
 0x652   : > { %v1755_v10 = vadd.f32 %v1739_v28, %v1723_v9  ;;  %v2583_v41 = vpop.permute.xlu1 %2582 }
 0x653   : > { %v2612_v46 = vmul.f32 %v2583_v41, %v2564_v11 }
 0x654   : > { %1763 = vst.msk [vmem:[#allocation3 + $0x98] sm:$0xff] %vm457_vm2, %v1755_v10  ;;  %v2495_v10 = vld [vmem:[#allocation4 + $0x68] sm:$0xff] }
 0x655   : > { %2607 = vperm.xlu0 %3191, %v3396_v24  }
 0x659   : > { %v4989_v1 = vpop.permute.xlu2 %2463 }
 0x65b   : > { %v2549_v60 = vld [vmem:[#allocation3 + $0x98] sm:$0xff] }
 0x65f   : > { %v2351_v26 = vpop.f32.mrf.mxu2  ;;  %v2372_v45 = vpop.f32.mrf.mxu3 }
 0x660   : > { %v2375_v22 = vadd.f32 %v2351_v26, %v2278_v29  ;;  %v2382_v54 = vadd.f32 %v2372_v45, %v2285_v30  ;;  %v2546_v29 = vld [vmem:[#allocation3 + $0x80] sm:$0xff]  ;;  %v2421_v26 = vld [vmem:[#allocation4 + $0x18] sm:$0xff] }
 0x661   : > { %v2511_v38 = vpop.permute.xlu2 %2510  ;;  %v2469_v45 = vmul.f32 %v4854_v53, %v2421_v26  ;;  %3397 = vrcp.f32 %v2546_v29  ;;  %v2424_v53 = vld [vmem:[#allocation4 + $0x30] sm:$0xff] }
 0x662   : > { %2383 = vst.msk [vmem:[#allocation4 + $0xc0] sm:$0xff] %vm522_vm0, %v2375_v22  ;;  %v2540_v44 = vmul.f32 %v2511_v38, %v2492_v37  ;;  %3399 = vrcp.f32 %v2549_v60 }
 0x663   : > { %2390 = vst.msk [vmem:[#allocation4 + $0xf8] sm:$0xff] %vm522_vm0, %v2382_v54  ;;  %v2425_v54 = vld [vmem:[#allocation4 + $0x38] sm:$0xff] }
 0x664   : > { %2702 = vrot.lane.b32.xlu2 %v2540_v44, %s3455_s29  ;;  %v2473_v38 = vmul.f32 %v4989_v1, %v2425_v54 }
 0x667   : > { %v2354_v19 = vpop.f32.mrf.mxu2 }
 0x668   : > { %v2376_v20 = vadd.f32 %v2354_v19, %v2279_v31  ;;  %v3398_v31 = vpop.eup %3397 }
 0x669   : > { %v2634_v58 = vld [vmem:[#allocation4 + $0xc0] sm:$0xff] }
 0x66a   : > { %2384 = vst.msk [vmem:[#allocation4 + $0xc8] sm:$0xff] %vm522_vm0, %v2376_v20  ;;  %v2682_v48 = vmul.f32 %v4961_v39, %v2634_v58  ;;  %v2234_v39 = vld [vmem:[#allocation4 + $0xe0] sm:$0xff]  ;;  %v2472_v58 = vmul.f32 %v4894_v63, %v2424_v53 }
 0x66b   : > { %v2282_v3 = vmul.f32 %v4905_v57, %v2234_v39  ;;  %v2236_v57 = vld [vmem:[#allocation4 + $0xf0] sm:$0xff]  ;;  %v2566_v63 = vld [vmem:[#allocation4 + $0xa0] sm:$0xff] }
 0x66c   : > { %2762 = vrot.lane.b32.xlu1 %v2682_v48, %s3453_s12  ;;  %v2284_v13 = vmul.f32 %v4830_v21, %v2236_v57 }
 0x66f   : > { %v2357_v35 = vpop.f32.mrf.mxu2 }
 0x670   : > { %v2377_v16 = vadd.f32 %v2357_v35, %v2280_v51  ;;  %v3400_v51 = vpop.eup %3399  ;;  %v2563_v35 = vld [vmem:[#allocation4 + $0x88] sm:$0xff] }
 0x672   : > { %2385 = vst.msk [vmem:[#allocation4 + $0xd0] sm:$0xff] %vm522_vm0, %v2377_v16 }
 0x677   : > { %v2360_v2 = vpop.f32.mrf.mxu2 }
 0x678   : > { %v2378_v6 = vadd.f32 %v2360_v2, %v2281_v12 }
 0x679   : > { %v2636_v15 = vld [vmem:[#allocation4 + $0xd0] sm:$0xff] }
 0x67a   : > { %2386 = vst.msk [vmem:[#allocation4 + $0xd8] sm:$0xff] %vm522_vm0, %v2378_v6  ;;  %v2684_v55 = vmul.f32 %v2655_v4, %v2636_v15 }
 0x67c   : > { %2766 = vrot.lane.b32.xlu0 %v2684_v55, %s3453_s12  ;;  %v2569_v55 = vld [vmem:[#allocation4 + $0xb8] sm:$0xff] }
 0x67f   : > { %v2363_v7 = vpop.f32.mrf.mxu2 }
 0x680   : > { %v2379_v33 = vadd.f32 %v2363_v7, %v2282_v3  ;;  %v2635_v7 = vld [vmem:[#allocation4 + $0xc8] sm:$0xff] }
 0x681   : > { %v2637_v36 = vld [vmem:[#allocation4 + $0xd8] sm:$0xff] }
 0x682   : > { %2387 = vst.msk [vmem:[#allocation4 + $0xe0] sm:$0xff] %vm522_vm0, %v2379_v33  ;;  %v2685_v25 = vmul.f32 %v4965_v62, %v2637_v36  ;;  %v5014_v62 = vpop.permute.xlu0 %2669 }
 0x684   : > { %2768 = vrot.lane.b32.xlu1 %v2685_v25, %s3453_s12 }
 0x687   : > { %v2366_v52 = vpop.f32.mrf.mxu2 }
 0x688   : > { %v2380_v49 = vadd.f32 %v2366_v52, %v2283_v34 }
 0x689   : > { %v2638_v34 = vld [vmem:[#allocation4 + $0xe0] sm:$0xff] }
 0x68a   : > { %2388 = vst.msk [vmem:[#allocation4 + $0xe8] sm:$0xff] %vm522_vm0, %v2380_v49  ;;  %v5018_v28 = vpop.permute.xlu0 %2698 }
 0x68c   : > { %2734 = vrot.lane.b32.xlu1 %v2612_v46, %s3454_s28  ;;  %v2420_v46 = vld [vmem:[#allocation4 + $0x10] sm:$0xff] }
 0x68d   : > { %v2468_v57 = vmul.f32 %v4863_v5, %v2420_v46 }
 0x68f   : > { %v2369_v18 = vpop.f32.mrf.mxu2 }
 0x690   : > { %v2381_v50 = vadd.f32 %v2369_v18, %v2284_v13  ;;  %v2423_v13 = vld [vmem:[#allocation4 + $0x28] sm:$0xff] }
 0x691   : > { %v2639_v36 = vld [vmem:[#allocation4 + $0xe8] sm:$0xff]  ;;  %v2471_v18 = vmul.f32 %v4921_v8, %v2423_v13 }
 0x692   : > { %2389 = vst.msk [vmem:[#allocation4 + $0xf0] sm:$0xff] %vm522_vm0, %v2381_v50  ;;  %v2687_v56 = vmul.f32 %v5014_v62, %v2639_v36 }
 0x699   : > { %v2640_v37 = vld [vmem:[#allocation4 + $0xf0] sm:$0xff] }
 0x69a   : > { %v1748_v47 = vpop.xlane.xlu2 %1747  ;;  %v2688_v20 = vmul.f32 %v4970_v40, %v2640_v37  ;;  %v2625_v40 = vld [vmem:[#allocation3 + $0xf8] sm:$0xff] }
 0x69b   : > { %v1758_v9 = vadd.f32 %v1748_v47, %v1726_v42 }
 0x69d   : > { %1766 = vst.msk [vmem:[#allocation3 + $0xb0] sm:$0xff] %vm457_vm2, %v1758_v9 }
 0x6a2   : > { %v2526_v24 = vpop.permute.xlu2 %2525 }
 0x6a3   : > { %v2543_v23 = vmul.f32 %v2526_v24, %v2495_v10  ;;  %v2598_v21 = vpop.permute.xlu1 %2597  ;;  %v2562_v10 = vld [vmem:[#allocation4 + $0x80] sm:$0xff] }
 0x6a4   : > { %v2615_v30 = vmul.f32 %v2598_v21, %v2567_v61  ;;  %v2552_v1 = vld [vmem:[#allocation3 + $0xb0] sm:$0xff] }
 0x6a5   : > { %2708 = vrot.lane.b32.xlu2 %v2543_v23, %s3455_s29  ;;  %3401 = vrcp.f32 %v2552_v1  ;;  %v2565_v23 = vld [vmem:[#allocation4 + $0x98] sm:$0xff] }
 0x6a6   : > { %2740 = vrot.lane.b32.xlu1 %v2615_v30, %s3454_s28  ;;  %3403 = vrcp.f32 %v2625_v40  ;;  %v2568_v30 = vld [vmem:[#allocation4 + $0xb0] sm:$0xff] }
 0x6a7   : > { %v2705_v43 = vpop.permute.xlu0 %2704 }
 0x6a8   : > { %v5024_v22 = vsel %vm522_vm0, %v2469_v45, %v2705_v43  ;;  %v2641_v43 = vld [vmem:[#allocation4 + $0xf8] sm:$0xff] }
 0x6aa   : > { %v2650_v15 = vpop.permute.xlu2 %2649 }
 0x6ab   : > { %v2713_v44 = vpop.permute.xlu1 %2712  ;;  %v3402_v12 = vpop.eup %3401  ;;  %v2683_v33 = vmul.f32 %v2650_v15, %v2635_v7 }
 0x6ac   : > { %v5028_v19 = vsel %vm522_vm0, %v2473_v38, %v2713_v44  ;;  %v3404_v4 = vpop.eup %3403 }
 0x6ad   : > { %2572 = vperm.xlu2 %3190, %v3398_v31  }
 0x6ae   : > { %2774 = vrot.lane.b32.xlu1 %v2688_v20, %s3453_s12 }
 0x6af   : > { %v2711_v48 = vpop.permute.xlu0 %2710 }
 0x6b0   : > { %v5034_v0 = vsel %vm522_vm0, %v2472_v58, %v2711_v48 }
 0x6b2   : > { %v2665_v25 = vpop.permute.xlu2 %2664 }
 0x6b3   : > { %v2686_v41 = vmul.f32 %v2665_v25, %v2638_v34 }
 0x6b5   : > { %2587 = vperm.xlu2 %3190, %v3400_v51  }
 0x6b7   : > { %v2578_v16 = vpop.permute.xlu0 %2577 }
 0x6b8   : > { %v2611_v14 = vmul.f32 %v2578_v16, %v2563_v35  ;;  %v2418_v16 = vld [vmem:[#allocation4] sm:$0xff] }
 0x6ba   : > { %2732 = vrot.lane.b32.xlu0 %v2611_v14, %s3454_s28  ;;  %v2466_v14 = vmul.f32 %v4845_v32, %v2418_v16 }
 0x6bc   : > { %v2786_v40 = vsel %vm522_vm0, %v2466_v14, %v5018_v28 }
 0x6bd   : > { %2602 = vperm.xlu2 %3190, %v3402_v12  }
 0x6be   : > { %v2703_v11 = vpop.permute.xlu2 %2702 }
 0x6bf   : > { %v2593_v2 = vpop.permute.xlu0 %2592  ;;  %v2788_v50 = vsel %vm522_vm0, %v2468_v57, %v2703_v11 }
 0x6c0   : > { %v2614_v6 = vmul.f32 %v2593_v2, %v2566_v63 }
 0x6c2   : > { %2738 = vrot.lane.b32.xlu0 %v2614_v6, %s3454_s28 }
 0x6c5   : > { %2679 = vperm.xlu2 %3190, %v3404_v4  }
 0x6c7   : > { %v2608_v39 = vpop.permute.xlu0 %2607 }
 0x6c8   : > { %v2617_v3 = vmul.f32 %v2608_v39, %v2569_v55 }
 0x6ca   : > { %2744 = vrot.lane.b32.xlu0 %v2617_v3, %s3454_s28 }
 0x6cd   : > { %2764 = vrot.lane.b32.xlu2 %v2683_v33, %s3453_s12 }
 0x6d2   : > { %2772 = vrot.lane.b32.xlu0 %v2687_v56, %s3453_s12 }
 0x6d5   : > { %2770 = vrot.lane.b32.xlu2 %v2686_v41, %s3453_s12 }
 0x6de   : > { %v2763_v52 = vpop.permute.xlu1 %2762 }
 0x6ee   : > { %v2767_v27 = vpop.permute.xlu0 %2766 }
 0x6f6   : > { %v2769_v49 = vpop.permute.xlu1 %2768 }
 0x6fe   : > { %v2735_v62 = vpop.permute.xlu1 %2734 }
 0x6ff   : > { %v2796_v42 = vsel %vm685_vm1, %v2788_v50, %v2735_v62  ;;  %v2709_v47 = vpop.permute.xlu2 %2708 }
 0x700   : > { %v2805_v9 = vsel %vm2802_vm3, %v2796_v42, %v2767_v27  ;;  %v2791_v5 = vsel %vm522_vm0, %v2471_v18, %v2709_v47 }
 0x701   : > { %2813 = vst [vmem:[%s5051_s6 + $0x10] sm:$0xff] %v2805_v9 }
 0x707   : > { %v2573_v8 = vpop.permute.xlu2 %2572 }
 0x708   : > { %v2610_v24 = vmul.f32 %v2573_v8, %v2562_v10 }
 0x70a   : > { %2730 = vrot.lane.b32.xlu2 %v2610_v24, %s3454_s28 }
 0x70f   : > { %v2588_v61 = vpop.permute.xlu2 %2587 }
 0x710   : > { %v2613_v21 = vmul.f32 %v2588_v61, %v2565_v23 }
 0x712   : > { %2736 = vrot.lane.b32.xlu2 %v2613_v21, %s3454_s28 }
 0x717   : > { %v2603_v29 = vpop.permute.xlu2 %2602 }
 0x718   : > { %v2616_v26 = vmul.f32 %v2603_v29, %v2568_v30  ;;  %v2741_v1 = vpop.permute.xlu1 %2740 }
 0x719   : > { %v2799_v51 = vsel %vm685_vm1, %v2791_v5, %v2741_v1 }
 0x71a   : > { %2742 = vrot.lane.b32.xlu2 %v2616_v26, %s3454_s28 }
 0x71f   : > { %v2680_v45 = vpop.permute.xlu2 %2679 }
 0x720   : > { %v2689_v54 = vmul.f32 %v2680_v45, %v2641_v43  ;;  %v2775_v55 = vpop.permute.xlu1 %2774 }
 0x722   : > { %2776 = vrot.lane.b32.xlu2 %v2689_v54, %s3453_s12 }
 0x727   : > { %v2765_v37 = vpop.permute.xlu2 %2764 }
 0x72c   : > { %v2733_v38 = vpop.permute.xlu0 %2732 }
 0x72d   : > { %v2795_v44 = vsel %vm685_vm1, %v4978_v17, %v2733_v38 }
 0x72e   : > { %v2804_v60 = vsel %vm2802_vm3, %v2795_v44, %v2765_v37 }
 0x72f   : > { %2812 = vst [vmem:[%s5051_s6 + $0x8] sm:$0xff] %v2804_v60  ;;  %v2771_v20 = vpop.permute.xlu2 %2770 }
 0x734   : > { %v2739_v31 = vpop.permute.xlu0 %2738 }
 0x735   : > { %v2798_v53 = vsel %vm685_vm1, %v4983_v59, %v2739_v31 }
 0x736   : > { %v2807_v58 = vsel %vm2802_vm3, %v2798_v53, %v2771_v20 }
 0x737   : > { %2815 = vst [vmem:[%s5051_s6 + $0x20] sm:$0xff] %v2807_v58 }
 0x73c   : > { %v2745_v48 = vpop.permute.xlu0 %2744 }
 0x73d   : > { %v2801_v39 = vsel %vm685_vm1, %v5028_v19, %v2745_v48 }
 0x744   : > { %v2773_v35 = vpop.permute.xlu0 %2772 }
 0x745   : > { %v2808_v17 = vsel %vm2802_vm3, %v2799_v51, %v2773_v35 }
 0x746   : > { %2816 = vst [vmem:[%s5051_s6 + $0x28] sm:$0xff] %v2808_v17 }
 0x764   : > { %v2731_v59 = vpop.permute.xlu2 %2730 }
 0x765   : > { %v2794_v12 = vsel %vm685_vm1, %v2786_v40, %v2731_v59 }
 0x766   : > { %v2803_v63 = vsel %vm2802_vm3, %v2794_v12, %v2763_v52 }
 0x767   : > { %2811 = vst [vmem:[%s5051_s6] sm:$0xff] %v2803_v63 }
 0x76c   : > { %v2737_v2 = vpop.permute.xlu2 %2736 }
 0x76d   : > { %v2797_v6 = vsel %vm685_vm1, %v5024_v22, %v2737_v2 }
 0x76e   : > { %v2806_v4 = vsel %vm2802_vm3, %v2797_v6, %v2769_v49 }
 0x76f   : > { %2814 = vst [vmem:[%s5051_s6 + $0x18] sm:$0xff] %v2806_v4 }
 0x774   : > { %v2743_v15 = vpop.permute.xlu2 %2742 }
 0x775   : > { %v2800_v32 = vsel %vm685_vm1, %v5034_v0, %v2743_v15 }
 0x776   : > { %v2809_v28 = vsel %vm2802_vm3, %v2800_v32, %v2775_v55 }
 0x777   : > { %2817 = vst [vmem:[%s5051_s6 + $0x30] sm:$0xff] %v2809_v28 }
 0x77c   : > { %v2777_v3 = vpop.permute.xlu2 %2776 }
 0x77d   : > { %v2810_v7 = vsel %vm2802_vm3, %v2801_v39, %v2777_v3 }
 0x77e   : > { %2818 = vst [vmem:[%s5051_s6 + $0x38] sm:$0xff] %v2810_v7 }
 0x77f PF: > { %s13_s16 = sadd.s32 1, %s3451_s16   ;;  %s5131_s12 = smov %s3439_s13 }
 0x780   : > { %p10_p10 = scmp.ge.s32.totalorder %s13_s16, 4   ;;  %s5132_s13 = smov %s3518_s21 }
 0x781   : > { %s5133_s14 = smov %s3447_s15  ;;  %s5134_s15 = smov %s5136_s17 }
 0x782   :  { %12 = sbr.rel (!%p10_p10) target bundleno = 3 (0x3), region = 214 }

</bundles_post_ra>
